<compile_context>
chip_gen: v7x
topology: tpu7x:2x2x1
jax: 0.10.0
libtpu: 0.0.40
codegen_flags: <defaults>
</compile_context>

<pallas_src>
import functools

import jax
import jax.numpy as jnp
from jax.experimental import pallas as pl
from jax.experimental.pallas import tpu as pltpu


def _pad_hw(x):
    """Zero-pad (H, W, C) -> (H+2, W+16, C): 1 row top/bottom, 8 cols each side.

    8-wide column pads keep every concatenate piece sublane-aligned; only the
    innermost column of each pad is actually used by the 3x3 taps.
    """
    h, w, c = x.shape
    zc = jnp.zeros((h, 8, c), x.dtype)
    xpw = jnp.concatenate([zc, x, zc], axis=1)        # (h, w+16, c)
    zr = jnp.zeros((1, w + 16, c), x.dtype)
    return jnp.concatenate([zr, xpw, zr], axis=0)     # (h+2, w+16, c)


def _conv3x3_taps(xp, w_ref, h, w, cout):
    """xp: (h+2, w+16, cin) padded input; w_ref: (9, cin, cout) VMEM ref.

    out[y, x, co] = sum_{kh, kw, ci} xp[y+kh, 7+x+kw, ci] * w[kh*3+kw, ci, co]
    which is the standard padding=1 3x3 convolution.  Returns (h*w, cout) f32.
    """
    acc = jnp.zeros((h * w, cout), jnp.float32)
    for t in range(9):
        kh, kw = divmod(t, 3)
        patch = xp[kh:kh + h, 7 + kw:7 + kw + w, :]           # (h, w, cin)
        acc = acc + jnp.dot(patch.reshape(h * w, patch.shape[-1]),
                            w_ref[t],
                            preferred_element_type=jnp.float32)
    return acc


def _basic_block_kernel(x_ref, w1_ref, s1_ref, b1_ref, w2_ref, s2_ref, b2_ref,
                        out_ref, *, H, W, Cin, Cout):
    """One grid step = one batch image (all channels, full spatial extent).

    x_ref   : (1, H, W, Cin)  f32 VMEM
    w1_ref  : (9, Cin, Cout)  f32 VMEM   (conv1 taps)
    s1/b1   : (1, Cout)       f32 VMEM   (folded BN1 scale / bias)
    w2_ref  : (9, Cout, Cout) f32 VMEM   (conv2 taps)
    s2/b2   : (1, Cout)       f32 VMEM   (folded BN2 scale / bias)
    out_ref : (1, H, W, Cout) f32 VMEM
    """
    x = x_ref[0].astype(jnp.float32)                          # (H, W, Cin)

    # conv1 -> bn1 -> relu
    acc1 = _conv3x3_taps(_pad_hw(x), w1_ref, H, W, Cout)      # (H*W, Cout)
    h1 = jnp.maximum(acc1 * s1_ref[...] + b1_ref[...], 0.0)

    # conv2 -> bn2 -> +identity -> relu
    acc2 = _conv3x3_taps(_pad_hw(h1.reshape(H, W, Cout)), w2_ref, H, W, Cout)
    res = acc2 * s2_ref[...] + b2_ref[...] + x.reshape(H * W, Cin)
    out_ref[0] = jnp.maximum(res, 0.0).reshape(H, W, Cout).astype(out_ref.dtype)


def basic_block_forward(x, w1, gamma1, beta1, mean1, var1,
                        w2, gamma2, beta2, mean2, var2, *, eps=1e-5):
    """Pallas implementation of BasicBlock_b.forward (stride=1, no downsample).

    x  : (N, H, W, C)   NHWC activations
    w1 : (3, 3, C, C)   HWIO conv1 weight
    w2 : (3, 3, C, C)   HWIO conv2 weight
    gamma/beta/mean/var : (C,) BatchNorm parameters / running stats (eval mode)
    """
    N, H, W, Cin = x.shape
    Cout = w1.shape[-1]
    assert w1.shape == (3, 3, Cin, Cout)
    assert w2.shape == (3, 3, Cout, Cout)
    assert Cin == Cout, "identity residual requires inplanes == planes"

    # Fold eval-mode BatchNorm into per-channel scale / bias.
    inv1 = gamma1 / jnp.sqrt(var1 + eps)
    inv2 = gamma2 / jnp.sqrt(var2 + eps)
    s1 = inv1.reshape(1, Cout).astype(jnp.float32)
    b1 = (beta1 - mean1 * inv1).reshape(1, Cout).astype(jnp.float32)
    s2 = inv2.reshape(1, Cout).astype(jnp.float32)
    b2 = (beta2 - mean2 * inv2).reshape(1, Cout).astype(jnp.float32)

    w1r = w1.reshape(9, Cin, Cout).astype(jnp.float32)
    w2r = w2.reshape(9, Cout, Cout).astype(jnp.float32)

    kernel_fn = functools.partial(_basic_block_kernel,
                                  H=H, W=W, Cin=Cin, Cout=Cout)

    return pl.pallas_call(
        kernel_fn,
        out_shape=jax.ShapeDtypeStruct((N, H, W, Cout), jnp.float32),
        grid_spec=pltpu.PrefetchScalarGridSpec(
            num_scalar_prefetch=0,
            grid=(N,),
            in_specs=[
                pl.BlockSpec((1, H, W, Cin), lambda n: (n, 0, 0, 0)),   # x
                pl.BlockSpec((9, Cin, Cout), lambda n: (0, 0, 0)),      # w1
                pl.BlockSpec((1, Cout), lambda n: (0, 0)),              # s1
                pl.BlockSpec((1, Cout), lambda n: (0, 0)),              # b1
                pl.BlockSpec((9, Cout, Cout), lambda n: (0, 0, 0)),     # w2
                pl.BlockSpec((1, Cout), lambda n: (0, 0)),              # s2
                pl.BlockSpec((1, Cout), lambda n: (0, 0)),              # b2
            ],
            out_specs=pl.BlockSpec((1, H, W, Cout), lambda n: (n, 0, 0, 0)),
        ),
        compiler_params=pltpu.CompilerParams(
            dimension_semantics=("parallel",)),
    )(x, w1r, s1, b1, w2r, s2, b2)


def basic_block_reference(x, w1, gamma1, beta1, mean1, var1,
                          w2, gamma2, beta2, mean2, var2, *, eps=1e-5):
    """Pure-JAX reference mirroring the PyTorch forward (eval-mode BN)."""
    dn = jax.lax.conv_dimension_numbers(x.shape, w1.shape,
                                        ('NHWC', 'HWIO', 'NHWC'))
    hi = jax.lax.Precision.HIGHEST

    y = jax.lax.conv_general_dilated(x, w1, (1, 1), 'SAME',
                                     dimension_numbers=dn, precision=hi)
    y = (y - mean1) / jnp.sqrt(var1 + eps) * gamma1 + beta1
    y = jnp.maximum(y, 0.0)
    y = jax.lax.conv_general_dilated(y, w2, (1, 1), 'SAME',
                                     dimension_numbers=dn, precision=hi)
    y = (y - mean2) / jnp.sqrt(var2 + eps) * gamma2 + beta2
    return jnp.maximum(y + x, 0.0)


if __name__ == "__main__":
    # Small shapes consistent with the module: batch=2, 16x16 spatial,
    # inplanes = planes = 64 (stride=1, downsample=None -> identity residual).
    N, H, W, C = 2, 16, 16, 64
    key = jax.random.PRNGKey(0)
    ks = jax.random.split(key, 11)

    wstd = (2.0 / (9 * C)) ** 0.5          # kaiming-like init scale
    x = jax.random.normal(ks[0], (N, H, W, C), dtype=jnp.float32)
    w1 = jax.random.normal(ks[1], (3, 3, C, C), dtype=jnp.float32) * wstd
    w2 = jax.random.normal(ks[2], (3, 3, C, C), dtype=jnp.float32) * wstd

    gamma1 = jax.random.uniform(ks[3], (C,), jnp.float32, minval=0.5, maxval=1.5)
    beta1 = jax.random.normal(ks[4], (C,), jnp.float32) * 0.1
    mean1 = jax.random.normal(ks[5], (C,), jnp.float32) * 0.1
    var1 = jax.random.uniform(ks[6], (C,), jnp.float32, minval=0.5, maxval=1.5)

    gamma2 = jax.random.uniform(ks[7], (C,), jnp.float32, minval=0.5, maxval=1.5)
    beta2 = jax.random.normal(ks[8], (C,), jnp.float32) * 0.1
    mean2 = jax.random.normal(ks[9], (C,), jnp.float32) * 0.1
    var2 = jax.random.uniform(ks[10], (C,), jnp.float32, minval=0.5, maxval=1.5)

    out = basic_block_forward(x, w1, gamma1, beta1, mean1, var1,
                              w2, gamma2, beta2, mean2, var2)
    out = jax.block_until_ready(out)

    ref = basic_block_reference(x, w1, gamma1, beta1, mean1, var1,
                                w2, gamma2, beta2, mean2, var2)

    assert out.shape == (N, H, W, C)
    max_err = float(jnp.max(jnp.abs(out - ref)))
    assert jnp.allclose(out, ref, atol=1e-2, rtol=1e-2), max_err

    print("KERNEL_OK")
</pallas_src>

<mosaic_0001>
module attributes {stable_mosaic.version = 11 : i64} {
  func.func @_basic_block_kernel(%arg0: i32, %arg1: memref<1x16x16x64xf32, #tpu.memory_space<vmem>>, %arg2: memref<9x64x64xf32, #tpu.memory_space<vmem>>, %arg3: memref<1x64xf32, #tpu.memory_space<vmem>>, %arg4: memref<1x64xf32, #tpu.memory_space<vmem>>, %arg5: memref<9x64x64xf32, #tpu.memory_space<vmem>>, %arg6: memref<1x64xf32, #tpu.memory_space<vmem>>, %arg7: memref<1x64xf32, #tpu.memory_space<vmem>>, %arg8: memref<1x16x16x64xf32, #tpu.memory_space<vmem>>) attributes {dimension_semantics = [#tpu.dimension_semantics<parallel>], iteration_bounds = array<i64: 2>, scalar_prefetch = 0 : i64, scratch_operands = 0 : i64, tpu.core_type = #tpu.core_type<tc>, window_params = [{transform_indices = @transform_0, window_bounds = array<i64: 1, 16, 16, 64>}, {pipeline_mode = #tpu.pipeline_mode<synchronous>, transform_indices = @transform_1, window_bounds = array<i64: 9, 64, 64>}, {pipeline_mode = #tpu.pipeline_mode<synchronous>, transform_indices = @transform_2, window_bounds = array<i64: 1, 64>}, {pipeline_mode = #tpu.pipeline_mode<synchronous>, transform_indices = @transform_3, window_bounds = array<i64: 1, 64>}, {pipeline_mode = #tpu.pipeline_mode<synchronous>, transform_indices = @transform_4, window_bounds = array<i64: 9, 64, 64>}, {pipeline_mode = #tpu.pipeline_mode<synchronous>, transform_indices = @transform_5, window_bounds = array<i64: 1, 64>}, {pipeline_mode = #tpu.pipeline_mode<synchronous>, transform_indices = @transform_6, window_bounds = array<i64: 1, 64>}, {transform_indices = @transform_7, window_bounds = array<i64: 1, 16, 16, 64>}]} {
    %c0 = arith.constant 0 : index
    %c0_0 = arith.constant 0 : index
    %c0_1 = arith.constant 0 : index
    %c0_2 = arith.constant 0 : index
    %0 = vector.load %arg1[%c0, %c0_0, %c0_1, %c0_2] : memref<1x16x16x64xf32, #tpu.memory_space<vmem>>, vector<1x16x16x64xf32>
    %1 = vector.shape_cast %0 : vector<1x16x16x64xf32> to vector<16x16x64xf32>
    %cst = arith.constant 0.000000e+00 : f32
    %2 = vector.broadcast %cst : f32 to vector<16x8x64xf32>
    %3 = tpu.concatenate %2, %1, %2 in 1 : vector<16x8x64xf32>, vector<16x16x64xf32>, vector<16x8x64xf32> -> vector<16x32x64xf32>
    %cst_3 = arith.constant 0.000000e+00 : f32
    %4 = vector.broadcast %cst_3 : f32 to vector<1x32x64xf32>
    %5 = tpu.concatenate %4, %3, %4 in 0 : vector<1x32x64xf32>, vector<16x32x64xf32>, vector<1x32x64xf32> -> vector<18x32x64xf32>
    %cst_4 = arith.constant 0.000000e+00 : f32
    %6 = vector.broadcast %cst_4 : f32 to vector<256x64xf32>
    %7 = vector.extract_strided_slice %5 {offsets = [0, 7, 0], sizes = [16, 16, 64], strides = [1, 1, 1]} : vector<18x32x64xf32> to vector<16x16x64xf32>
    %8 = vector.shape_cast %7 : vector<16x16x64xf32> to vector<256x64xf32>
    %c0_5 = arith.constant 0 : index
    %c0_6 = arith.constant 0 : index
    %c0_7 = arith.constant 0 : index
    %9 = vector.load %arg2[%c0_5, %c0_6, %c0_7] : memref<9x64x64xf32, #tpu.memory_space<vmem>>, vector<1x64x64xf32>
    %10 = vector.shape_cast %9 : vector<1x64x64xf32> to vector<64x64xf32>
    %cst_8 = arith.constant dense<0.000000e+00> : vector<256x64xf32>
    %11 = tpu.matmul %8, %10, %cst_8 {dimension_numbers = #tpu.dot_dimension_numbers<[1], [0], [0], [1], [0, 0, 1, 1], [], []>} : vector<256x64xf32>, vector<64x64xf32>, vector<256x64xf32> -> vector<256x64xf32>
    %12 = arith.addf %6, %11 : vector<256x64xf32>
    %13 = vector.extract_strided_slice %5 {offsets = [0, 8, 0], sizes = [16, 16, 64], strides = [1, 1, 1]} : vector<18x32x64xf32> to vector<16x16x64xf32>
    %14 = vector.shape_cast %13 : vector<16x16x64xf32> to vector<256x64xf32>
    %c1 = arith.constant 1 : index
    %c0_9 = arith.constant 0 : index
    %c0_10 = arith.constant 0 : index
    %15 = vector.load %arg2[%c1, %c0_9, %c0_10] : memref<9x64x64xf32, #tpu.memory_space<vmem>>, vector<1x64x64xf32>
    %16 = vector.shape_cast %15 : vector<1x64x64xf32> to vector<64x64xf32>
    %cst_11 = arith.constant dense<0.000000e+00> : vector<256x64xf32>
    %17 = tpu.matmul %14, %16, %cst_11 {dimension_numbers = #tpu.dot_dimension_numbers<[1], [0], [0], [1], [0, 0, 1, 1], [], []>} : vector<256x64xf32>, vector<64x64xf32>, vector<256x64xf32> -> vector<256x64xf32>
    %18 = arith.addf %12, %17 : vector<256x64xf32>
    %19 = vector.extract_strided_slice %5 {offsets = [0, 9, 0], sizes = [16, 16, 64], strides = [1, 1, 1]} : vector<18x32x64xf32> to vector<16x16x64xf32>
    %20 = vector.shape_cast %19 : vector<16x16x64xf32> to vector<256x64xf32>
    %c2 = arith.constant 2 : index
    %c0_12 = arith.constant 0 : index
    %c0_13 = arith.constant 0 : index
    %21 = vector.load %arg2[%c2, %c0_12, %c0_13] : memref<9x64x64xf32, #tpu.memory_space<vmem>>, vector<1x64x64xf32>
    %22 = vector.shape_cast %21 : vector<1x64x64xf32> to vector<64x64xf32>
    %cst_14 = arith.constant dense<0.000000e+00> : vector<256x64xf32>
    %23 = tpu.matmul %20, %22, %cst_14 {dimension_numbers = #tpu.dot_dimension_numbers<[1], [0], [0], [1], [0, 0, 1, 1], [], []>} : vector<256x64xf32>, vector<64x64xf32>, vector<256x64xf32> -> vector<256x64xf32>
    %24 = arith.addf %18, %23 : vector<256x64xf32>
    %25 = vector.extract_strided_slice %5 {offsets = [1, 7, 0], sizes = [16, 16, 64], strides = [1, 1, 1]} : vector<18x32x64xf32> to vector<16x16x64xf32>
    %26 = vector.shape_cast %25 : vector<16x16x64xf32> to vector<256x64xf32>
    %c3 = arith.constant 3 : index
    %c0_15 = arith.constant 0 : index
    %c0_16 = arith.constant 0 : index
    %27 = vector.load %arg2[%c3, %c0_15, %c0_16] : memref<9x64x64xf32, #tpu.memory_space<vmem>>, vector<1x64x64xf32>
    %28 = vector.shape_cast %27 : vector<1x64x64xf32> to vector<64x64xf32>
    %cst_17 = arith.constant dense<0.000000e+00> : vector<256x64xf32>
    %29 = tpu.matmul %26, %28, %cst_17 {dimension_numbers = #tpu.dot_dimension_numbers<[1], [0], [0], [1], [0, 0, 1, 1], [], []>} : vector<256x64xf32>, vector<64x64xf32>, vector<256x64xf32> -> vector<256x64xf32>
    %30 = arith.addf %24, %29 : vector<256x64xf32>
    %31 = vector.extract_strided_slice %5 {offsets = [1, 8, 0], sizes = [16, 16, 64], strides = [1, 1, 1]} : vector<18x32x64xf32> to vector<16x16x64xf32>
    %32 = vector.shape_cast %31 : vector<16x16x64xf32> to vector<256x64xf32>
    %c4 = arith.constant 4 : index
    %c0_18 = arith.constant 0 : index
    %c0_19 = arith.constant 0 : index
    %33 = vector.load %arg2[%c4, %c0_18, %c0_19] : memref<9x64x64xf32, #tpu.memory_space<vmem>>, vector<1x64x64xf32>
    %34 = vector.shape_cast %33 : vector<1x64x64xf32> to vector<64x64xf32>
    %cst_20 = arith.constant dense<0.000000e+00> : vector<256x64xf32>
    %35 = tpu.matmul %32, %34, %cst_20 {dimension_numbers = #tpu.dot_dimension_numbers<[1], [0], [0], [1], [0, 0, 1, 1], [], []>} : vector<256x64xf32>, vector<64x64xf32>, vector<256x64xf32> -> vector<256x64xf32>
    %36 = arith.addf %30, %35 : vector<256x64xf32>
    %37 = vector.extract_strided_slice %5 {offsets = [1, 9, 0], sizes = [16, 16, 64], strides = [1, 1, 1]} : vector<18x32x64xf32> to vector<16x16x64xf32>
    %38 = vector.shape_cast %37 : vector<16x16x64xf32> to vector<256x64xf32>
    %c5 = arith.constant 5 : index
    %c0_21 = arith.constant 0 : index
    %c0_22 = arith.constant 0 : index
    %39 = vector.load %arg2[%c5, %c0_21, %c0_22] : memref<9x64x64xf32, #tpu.memory_space<vmem>>, vector<1x64x64xf32>
    %40 = vector.shape_cast %39 : vector<1x64x64xf32> to vector<64x64xf32>
    %cst_23 = arith.constant dense<0.000000e+00> : vector<256x64xf32>
    %41 = tpu.matmul %38, %40, %cst_23 {dimension_numbers = #tpu.dot_dimension_numbers<[1], [0], [0], [1], [0, 0, 1, 1], [], []>} : vector<256x64xf32>, vector<64x64xf32>, vector<256x64xf32> -> vector<256x64xf32>
    %42 = arith.addf %36, %41 : vector<256x64xf32>
    %43 = vector.extract_strided_slice %5 {offsets = [2, 7, 0], sizes = [16, 16, 64], strides = [1, 1, 1]} : vector<18x32x64xf32> to vector<16x16x64xf32>
    %44 = vector.shape_cast %43 : vector<16x16x64xf32> to vector<256x64xf32>
    %c6 = arith.constant 6 : index
    %c0_24 = arith.constant 0 : index
    %c0_25 = arith.constant 0 : index
    %45 = vector.load %arg2[%c6, %c0_24, %c0_25] : memref<9x64x64xf32, #tpu.memory_space<vmem>>, vector<1x64x64xf32>
    %46 = vector.shape_cast %45 : vector<1x64x64xf32> to vector<64x64xf32>
    %cst_26 = arith.constant dense<0.000000e+00> : vector<256x64xf32>
    %47 = tpu.matmul %44, %46, %cst_26 {dimension_numbers = #tpu.dot_dimension_numbers<[1], [0], [0], [1], [0, 0, 1, 1], [], []>} : vector<256x64xf32>, vector<64x64xf32>, vector<256x64xf32> -> vector<256x64xf32>
    %48 = arith.addf %42, %47 : vector<256x64xf32>
    %49 = vector.extract_strided_slice %5 {offsets = [2, 8, 0], sizes = [16, 16, 64], strides = [1, 1, 1]} : vector<18x32x64xf32> to vector<16x16x64xf32>
    %50 = vector.shape_cast %49 : vector<16x16x64xf32> to vector<256x64xf32>
    %c7 = arith.constant 7 : index
    %c0_27 = arith.constant 0 : index
    %c0_28 = arith.constant 0 : index
    %51 = vector.load %arg2[%c7, %c0_27, %c0_28] : memref<9x64x64xf32, #tpu.memory_space<vmem>>, vector<1x64x64xf32>
    %52 = vector.shape_cast %51 : vector<1x64x64xf32> to vector<64x64xf32>
    %cst_29 = arith.constant dense<0.000000e+00> : vector<256x64xf32>
    %53 = tpu.matmul %50, %52, %cst_29 {dimension_numbers = #tpu.dot_dimension_numbers<[1], [0], [0], [1], [0, 0, 1, 1], [], []>} : vector<256x64xf32>, vector<64x64xf32>, vector<256x64xf32> -> vector<256x64xf32>
    %54 = arith.addf %48, %53 : vector<256x64xf32>
    %55 = vector.extract_strided_slice %5 {offsets = [2, 9, 0], sizes = [16, 16, 64], strides = [1, 1, 1]} : vector<18x32x64xf32> to vector<16x16x64xf32>
    %56 = vector.shape_cast %55 : vector<16x16x64xf32> to vector<256x64xf32>
    %c8 = arith.constant 8 : index
    %c0_30 = arith.constant 0 : index
    %c0_31 = arith.constant 0 : index
    %57 = vector.load %arg2[%c8, %c0_30, %c0_31] : memref<9x64x64xf32, #tpu.memory_space<vmem>>, vector<1x64x64xf32>
    %58 = vector.shape_cast %57 : vector<1x64x64xf32> to vector<64x64xf32>
    %cst_32 = arith.constant dense<0.000000e+00> : vector<256x64xf32>
    %59 = tpu.matmul %56, %58, %cst_32 {dimension_numbers = #tpu.dot_dimension_numbers<[1], [0], [0], [1], [0, 0, 1, 1], [], []>} : vector<256x64xf32>, vector<64x64xf32>, vector<256x64xf32> -> vector<256x64xf32>
    %60 = arith.addf %54, %59 : vector<256x64xf32>
    %c0_33 = arith.constant 0 : index
    %c0_34 = arith.constant 0 : index
    %61 = vector.load %arg3[%c0_33, %c0_34] : memref<1x64xf32, #tpu.memory_space<vmem>>, vector<1x64xf32>
    %62 = vector.broadcast %61 : vector<1x64xf32> to vector<256x64xf32>
    %63 = arith.mulf %60, %62 : vector<256x64xf32>
    %c0_35 = arith.constant 0 : index
    %c0_36 = arith.constant 0 : index
    %64 = vector.load %arg4[%c0_35, %c0_36] : memref<1x64xf32, #tpu.memory_space<vmem>>, vector<1x64xf32>
    %65 = vector.broadcast %64 : vector<1x64xf32> to vector<256x64xf32>
    %66 = arith.addf %63, %65 : vector<256x64xf32>
    %cst_37 = arith.constant 0.000000e+00 : f32
    %67 = vector.broadcast %cst_37 : f32 to vector<256x64xf32>
    %68 = arith.maximumf %66, %67 : vector<256x64xf32>
    %69 = vector.shape_cast %68 : vector<256x64xf32> to vector<16x16x64xf32>
    %cst_38 = arith.constant 0.000000e+00 : f32
    %70 = vector.broadcast %cst_38 : f32 to vector<16x8x64xf32>
    %71 = tpu.concatenate %70, %69, %70 in 1 : vector<16x8x64xf32>, vector<16x16x64xf32>, vector<16x8x64xf32> -> vector<16x32x64xf32>
    %cst_39 = arith.constant 0.000000e+00 : f32
    %72 = vector.broadcast %cst_39 : f32 to vector<1x32x64xf32>
    %73 = tpu.concatenate %72, %71, %72 in 0 : vector<1x32x64xf32>, vector<16x32x64xf32>, vector<1x32x64xf32> -> vector<18x32x64xf32>
    %cst_40 = arith.constant 0.000000e+00 : f32
    %74 = vector.broadcast %cst_40 : f32 to vector<256x64xf32>
    %75 = vector.extract_strided_slice %73 {offsets = [0, 7, 0], sizes = [16, 16, 64], strides = [1, 1, 1]} : vector<18x32x64xf32> to vector<16x16x64xf32>
    %76 = vector.shape_cast %75 : vector<16x16x64xf32> to vector<256x64xf32>
    %c0_41 = arith.constant 0 : index
    %c0_42 = arith.constant 0 : index
    %c0_43 = arith.constant 0 : index
    %77 = vector.load %arg5[%c0_41, %c0_42, %c0_43] : memref<9x64x64xf32, #tpu.memory_space<vmem>>, vector<1x64x64xf32>
    %78 = vector.shape_cast %77 : vector<1x64x64xf32> to vector<64x64xf32>
    %cst_44 = arith.constant dense<0.000000e+00> : vector<256x64xf32>
    %79 = tpu.matmul %76, %78, %cst_44 {dimension_numbers = #tpu.dot_dimension_numbers<[1], [0], [0], [1], [0, 0, 1, 1], [], []>} : vector<256x64xf32>, vector<64x64xf32>, vector<256x64xf32> -> vector<256x64xf32>
    %80 = arith.addf %74, %79 : vector<256x64xf32>
    %81 = vector.extract_strided_slice %73 {offsets = [0, 8, 0], sizes = [16, 16, 64], strides = [1, 1, 1]} : vector<18x32x64xf32> to vector<16x16x64xf32>
    %82 = vector.shape_cast %81 : vector<16x16x64xf32> to vector<256x64xf32>
    %c1_45 = arith.constant 1 : index
    %c0_46 = arith.constant 0 : index
    %c0_47 = arith.constant 0 : index
    %83 = vector.load %arg5[%c1_45, %c0_46, %c0_47] : memref<9x64x64xf32, #tpu.memory_space<vmem>>, vector<1x64x64xf32>
    %84 = vector.shape_cast %83 : vector<1x64x64xf32> to vector<64x64xf32>
    %cst_48 = arith.constant dense<0.000000e+00> : vector<256x64xf32>
    %85 = tpu.matmul %82, %84, %cst_48 {dimension_numbers = #tpu.dot_dimension_numbers<[1], [0], [0], [1], [0, 0, 1, 1], [], []>} : vector<256x64xf32>, vector<64x64xf32>, vector<256x64xf32> -> vector<256x64xf32>
    %86 = arith.addf %80, %85 : vector<256x64xf32>
    %87 = vector.extract_strided_slice %73 {offsets = [0, 9, 0], sizes = [16, 16, 64], strides = [1, 1, 1]} : vector<18x32x64xf32> to vector<16x16x64xf32>
    %88 = vector.shape_cast %87 : vector<16x16x64xf32> to vector<256x64xf32>
    %c2_49 = arith.constant 2 : index
    %c0_50 = arith.constant 0 : index
    %c0_51 = arith.constant 0 : index
    %89 = vector.load %arg5[%c2_49, %c0_50, %c0_51] : memref<9x64x64xf32, #tpu.memory_space<vmem>>, vector<1x64x64xf32>
    %90 = vector.shape_cast %89 : vector<1x64x64xf32> to vector<64x64xf32>
    %cst_52 = arith.constant dense<0.000000e+00> : vector<256x64xf32>
    %91 = tpu.matmul %88, %90, %cst_52 {dimension_numbers = #tpu.dot_dimension_numbers<[1], [0], [0], [1], [0, 0, 1, 1], [], []>} : vector<256x64xf32>, vector<64x64xf32>, vector<256x64xf32> -> vector<256x64xf32>
    %92 = arith.addf %86, %91 : vector<256x64xf32>
    %93 = vector.extract_strided_slice %73 {offsets = [1, 7, 0], sizes = [16, 16, 64], strides = [1, 1, 1]} : vector<18x32x64xf32> to vector<16x16x64xf32>
    %94 = vector.shape_cast %93 : vector<16x16x64xf32> to vector<256x64xf32>
    %c3_53 = arith.constant 3 : index
    %c0_54 = arith.constant 0 : index
    %c0_55 = arith.constant 0 : index
    %95 = vector.load %arg5[%c3_53, %c0_54, %c0_55] : memref<9x64x64xf32, #tpu.memory_space<vmem>>, vector<1x64x64xf32>
    %96 = vector.shape_cast %95 : vector<1x64x64xf32> to vector<64x64xf32>
    %cst_56 = arith.constant dense<0.000000e+00> : vector<256x64xf32>
    %97 = tpu.matmul %94, %96, %cst_56 {dimension_numbers = #tpu.dot_dimension_numbers<[1], [0], [0], [1], [0, 0, 1, 1], [], []>} : vector<256x64xf32>, vector<64x64xf32>, vector<256x64xf32> -> vector<256x64xf32>
    %98 = arith.addf %92, %97 : vector<256x64xf32>
    %99 = vector.extract_strided_slice %73 {offsets = [1, 8, 0], sizes = [16, 16, 64], strides = [1, 1, 1]} : vector<18x32x64xf32> to vector<16x16x64xf32>
    %100 = vector.shape_cast %99 : vector<16x16x64xf32> to vector<256x64xf32>
    %c4_57 = arith.constant 4 : index
    %c0_58 = arith.constant 0 : index
    %c0_59 = arith.constant 0 : index
    %101 = vector.load %arg5[%c4_57, %c0_58, %c0_59] : memref<9x64x64xf32, #tpu.memory_space<vmem>>, vector<1x64x64xf32>
    %102 = vector.shape_cast %101 : vector<1x64x64xf32> to vector<64x64xf32>
    %cst_60 = arith.constant dense<0.000000e+00> : vector<256x64xf32>
    %103 = tpu.matmul %100, %102, %cst_60 {dimension_numbers = #tpu.dot_dimension_numbers<[1], [0], [0], [1], [0, 0, 1, 1], [], []>} : vector<256x64xf32>, vector<64x64xf32>, vector<256x64xf32> -> vector<256x64xf32>
    %104 = arith.addf %98, %103 : vector<256x64xf32>
    %105 = vector.extract_strided_slice %73 {offsets = [1, 9, 0], sizes = [16, 16, 64], strides = [1, 1, 1]} : vector<18x32x64xf32> to vector<16x16x64xf32>
    %106 = vector.shape_cast %105 : vector<16x16x64xf32> to vector<256x64xf32>
    %c5_61 = arith.constant 5 : index
    %c0_62 = arith.constant 0 : index
    %c0_63 = arith.constant 0 : index
    %107 = vector.load %arg5[%c5_61, %c0_62, %c0_63] : memref<9x64x64xf32, #tpu.memory_space<vmem>>, vector<1x64x64xf32>
    %108 = vector.shape_cast %107 : vector<1x64x64xf32> to vector<64x64xf32>
    %cst_64 = arith.constant dense<0.000000e+00> : vector<256x64xf32>
    %109 = tpu.matmul %106, %108, %cst_64 {dimension_numbers = #tpu.dot_dimension_numbers<[1], [0], [0], [1], [0, 0, 1, 1], [], []>} : vector<256x64xf32>, vector<64x64xf32>, vector<256x64xf32> -> vector<256x64xf32>
    %110 = arith.addf %104, %109 : vector<256x64xf32>
    %111 = vector.extract_strided_slice %73 {offsets = [2, 7, 0], sizes = [16, 16, 64], strides = [1, 1, 1]} : vector<18x32x64xf32> to vector<16x16x64xf32>
    %112 = vector.shape_cast %111 : vector<16x16x64xf32> to vector<256x64xf32>
    %c6_65 = arith.constant 6 : index
    %c0_66 = arith.constant 0 : index
    %c0_67 = arith.constant 0 : index
    %113 = vector.load %arg5[%c6_65, %c0_66, %c0_67] : memref<9x64x64xf32, #tpu.memory_space<vmem>>, vector<1x64x64xf32>
    %114 = vector.shape_cast %113 : vector<1x64x64xf32> to vector<64x64xf32>
    %cst_68 = arith.constant dense<0.000000e+00> : vector<256x64xf32>
    %115 = tpu.matmul %112, %114, %cst_68 {dimension_numbers = #tpu.dot_dimension_numbers<[1], [0], [0], [1], [0, 0, 1, 1], [], []>} : vector<256x64xf32>, vector<64x64xf32>, vector<256x64xf32> -> vector<256x64xf32>
    %116 = arith.addf %110, %115 : vector<256x64xf32>
    %117 = vector.extract_strided_slice %73 {offsets = [2, 8, 0], sizes = [16, 16, 64], strides = [1, 1, 1]} : vector<18x32x64xf32> to vector<16x16x64xf32>
    %118 = vector.shape_cast %117 : vector<16x16x64xf32> to vector<256x64xf32>
    %c7_69 = arith.constant 7 : index
    %c0_70 = arith.constant 0 : index
    %c0_71 = arith.constant 0 : index
    %119 = vector.load %arg5[%c7_69, %c0_70, %c0_71] : memref<9x64x64xf32, #tpu.memory_space<vmem>>, vector<1x64x64xf32>
    %120 = vector.shape_cast %119 : vector<1x64x64xf32> to vector<64x64xf32>
    %cst_72 = arith.constant dense<0.000000e+00> : vector<256x64xf32>
    %121 = tpu.matmul %118, %120, %cst_72 {dimension_numbers = #tpu.dot_dimension_numbers<[1], [0], [0], [1], [0, 0, 1, 1], [], []>} : vector<256x64xf32>, vector<64x64xf32>, vector<256x64xf32> -> vector<256x64xf32>
    %122 = arith.addf %116, %121 : vector<256x64xf32>
    %123 = vector.extract_strided_slice %73 {offsets = [2, 9, 0], sizes = [16, 16, 64], strides = [1, 1, 1]} : vector<18x32x64xf32> to vector<16x16x64xf32>
    %124 = vector.shape_cast %123 : vector<16x16x64xf32> to vector<256x64xf32>
    %c8_73 = arith.constant 8 : index
    %c0_74 = arith.constant 0 : index
    %c0_75 = arith.constant 0 : index
    %125 = vector.load %arg5[%c8_73, %c0_74, %c0_75] : memref<9x64x64xf32, #tpu.memory_space<vmem>>, vector<1x64x64xf32>
    %126 = vector.shape_cast %125 : vector<1x64x64xf32> to vector<64x64xf32>
    %cst_76 = arith.constant dense<0.000000e+00> : vector<256x64xf32>
    %127 = tpu.matmul %124, %126, %cst_76 {dimension_numbers = #tpu.dot_dimension_numbers<[1], [0], [0], [1], [0, 0, 1, 1], [], []>} : vector<256x64xf32>, vector<64x64xf32>, vector<256x64xf32> -> vector<256x64xf32>
    %128 = arith.addf %122, %127 : vector<256x64xf32>
    %c0_77 = arith.constant 0 : index
    %c0_78 = arith.constant 0 : index
    %129 = vector.load %arg6[%c0_77, %c0_78] : memref<1x64xf32, #tpu.memory_space<vmem>>, vector<1x64xf32>
    %130 = vector.broadcast %129 : vector<1x64xf32> to vector<256x64xf32>
    %131 = arith.mulf %128, %130 : vector<256x64xf32>
    %c0_79 = arith.constant 0 : index
    %c0_80 = arith.constant 0 : index
    %132 = vector.load %arg7[%c0_79, %c0_80] : memref<1x64xf32, #tpu.memory_space<vmem>>, vector<1x64xf32>
    %133 = vector.broadcast %132 : vector<1x64xf32> to vector<256x64xf32>
    %134 = arith.addf %131, %133 : vector<256x64xf32>
    %135 = vector.shape_cast %1 : vector<16x16x64xf32> to vector<256x64xf32>
    %136 = arith.addf %134, %135 : vector<256x64xf32>
    %cst_81 = arith.constant 0.000000e+00 : f32
    %137 = vector.broadcast %cst_81 : f32 to vector<256x64xf32>
    %138 = arith.maximumf %136, %137 : vector<256x64xf32>
    %139 = vector.shape_cast %138 : vector<256x64xf32> to vector<16x16x64xf32>
    %c0_82 = arith.constant 0 : index
    %c0_83 = arith.constant 0 : index
    %c0_84 = arith.constant 0 : index
    %c0_85 = arith.constant 0 : index
    %140 = vector.load %arg8[%c0_82, %c0_83, %c0_84, %c0_85] : memref<1x16x16x64xf32, #tpu.memory_space<vmem>>, vector<1x16x16x64xf32>
    %141 = vector.shape_cast %140 : vector<1x16x16x64xf32> to vector<16x16x64xf32>
    %142 = vector.shape_cast %139 : vector<16x16x64xf32> to vector<1x16x16x64xf32>
    tpu.vector_store %arg8[%c0_82, %c0_83, %c0_84, %c0_85], %142 {strides = array<i32>} : memref<1x16x16x64xf32, #tpu.memory_space<vmem>>, vector<1x16x16x64xf32>,
    return
  }
  func.func @transform_0(%arg0: i32) -> (i32, i32, i32, i32) {
    %c0_i32 = arith.constant 0 : i32
    %c0_i32_0 = arith.constant 0 : i32
    %c0_i32_1 = arith.constant 0 : i32
    %c0_i32_2 = arith.constant 0 : i32
    return %arg0, %c0_i32, %c0_i32_0, %c0_i32_1 : i32, i32, i32, i32
  }
  func.func @transform_1(%arg0: i32) -> (i32, i32, i32) {
    %c0_i32 = arith.constant 0 : i32
    %c0_i32_0 = arith.constant 0 : i32
    %c0_i32_1 = arith.constant 0 : i32
    %c0_i32_2 = arith.constant 0 : i32
    return %c0_i32, %c0_i32_0, %c0_i32_1 : i32, i32, i32
  }
  func.func @transform_2(%arg0: i32) -> (i32, i32) {
    %c0_i32 = arith.constant 0 : i32
    %c0_i32_0 = arith.constant 0 : i32
    %c0_i32_1 = arith.constant 0 : i32
    return %c0_i32, %c0_i32_0 : i32, i32
  }
  func.func @transform_3(%arg0: i32) -> (i32, i32) {
    %c0_i32 = arith.constant 0 : i32
    %c0_i32_0 = arith.constant 0 : i32
    %c0_i32_1 = arith.constant 0 : i32
    return %c0_i32, %c0_i32_0 : i32, i32
  }
  func.func @transform_4(%arg0: i32) -> (i32, i32, i32) {
    %c0_i32 = arith.constant 0 : i32
    %c0_i32_0 = arith.constant 0 : i32
    %c0_i32_1 = arith.constant 0 : i32
    %c0_i32_2 = arith.constant 0 : i32
    return %c0_i32, %c0_i32_0, %c0_i32_1 : i32, i32, i32
  }
  func.func @transform_5(%arg0: i32) -> (i32, i32) {
    %c0_i32 = arith.constant 0 : i32
    %c0_i32_0 = arith.constant 0 : i32
    %c0_i32_1 = arith.constant 0 : i32
    return %c0_i32, %c0_i32_0 : i32, i32
  }
  func.func @transform_6(%arg0: i32) -> (i32, i32) {
    %c0_i32 = arith.constant 0 : i32
    %c0_i32_0 = arith.constant 0 : i32
    %c0_i32_1 = arith.constant 0 : i32
    return %c0_i32, %c0_i32_0 : i32, i32
  }
  func.func @transform_7(%arg0: i32) -> (i32, i32, i32, i32) {
    %c0_i32 = arith.constant 0 : i32
    %c0_i32_0 = arith.constant 0 : i32
    %c0_i32_1 = arith.constant 0 : i32
    %c0_i32_2 = arith.constant 0 : i32
    return %arg0, %c0_i32, %c0_i32_0, %c0_i32_1 : i32, i32, i32, i32
  }
}

</mosaic_0001>

<bundles_post_ra>
// kernel: tpu_custom_call.1
= control target key start
LH: loop header
LB: loop body
LE: loop exit
PB: predicated region body
PF: predicated region fallthrough
CT: control target
= control target key end

     0   :  { %12 = vsyncpa [#allocation3], 0  ;;  %s12134_s0 = inlined_call_operand.hbm [shape: f32[2,16,16,64], index: 0, kind: input, shape index: {}]   ;;  %s12135_s1 = inlined_call_operand.hbm [shape: f32[9,64,64], index: 1, kind: input, shape index: {}]   ;;  %s12136_s2 = inlined_call_operand.vmem [shape: f32[1,64], index: 2, kind: input, shape index: {}]   ;;  %s12137_s3 = inlined_call_operand.vmem [shape: f32[1,64], index: 3, kind: input, shape index: {}]   ;;  %s12138_s4 = inlined_call_operand.hbm [shape: f32[9,64,64], index: 4, kind: input, shape index: {}]   ;;  %s12139_s5 = inlined_call_operand.vmem [shape: f32[1,64], index: 5, kind: input, shape index: {}]   ;;  %s12140_s6 = inlined_call_operand.vmem [shape: f32[1,64], index: 6, kind: input, shape index: {}]   ;;  %s12141_s7 = inlined_call_operand.hbm [shape: f32[2,16,16,64], index: 7, kind: output, shape index: {}]  }
   0x1   :  { %14 = vsyncpa [#allocation3 + $0x1], 0 }
   0x2   :  { %15 = vsyncpa [#allocation6], 0 }
   0x3   :  { %16 = vsyncpa [#allocation4], 0 }
   0x4   :  { %18 = vsyncpa [#allocation4 + $0x1], 0  ;;  %s9722_s24 = smov 0   ;;  %s9724_s25 = smov 0  }
   0x5   :  { %s9726_s26 = smov 0   ;;  %s9728_s27 = smov 0  }
   0x6 LB: > { %s9743_s28 = sadd.s32 4294967295, %s9671_s27   ;;  %s6124_s29 = sadd.s32 4294967294, %s9671_s27   ;;  %s9671_s27 = sphi %s9728_s27, %s12535_s27   ;;  %s9667_s26 = sphi %s9726_s26, %s12534_s26   ;;  %s9663_s25 = sphi %s9724_s25, %s12533_s25   ;;  %s9659_s24 = sphi %s9722_s24, %s12532_s24  }
   0x7   : > { %p44_p0 = scmp.ne.s32.totalorder %s9663_s25, %s9659_s24  ;;  %p12142_p1 = scmp.eq.s32.totalorder %s9743_s28, 0 }
   0x8   : > { %p200_p3 = scmp.eq.s32.totalorder %s6124_s29, 1  ;;  %p6125_p5 = scmp.ge.s32.totalorder %s9671_s27, 1 }
   0x9   : > { %p9752_p4 = por %p12142_p1, %p44_p0  ;;  %p207_p7 = scmp.lt.s32.totalorder %s9671_s27, 3 }
   0xa   : > { %p9757_p6 = por %p200_p3, %p44_p0  ;;  %s9673_s10 = smov [#allocation5]  }
   0xb   : > { %s12299_s30 = scalar_select %p9752_p4, 1, 0 }
   0xc   : > { %s12300_s8 = scalar_select %p9757_p6, 1, 0 }
   0xd   : > { %p9762_p8 = pnand %p6125_p5, %p207_p7  ;;  %s219_s11 = sshll.u32 %s9673_s10, 4  ;;  %s9766_s11 = int_to_ptr.vmem [resolvable:$true] %s219_s11 }
   0xe   : > { %s9674_s13 = smov [#allocation7]   ;;  %s9515_s17 = scalar_lea.hbm %s12135_s1, 9216 }
   0xf   : > { %p9400_p9 = pneg %p9762_p8  ;;  %s238_s14 = sshll.u32 %s9674_s13, 4  ;;  %s9777_s14 = int_to_ptr.vmem [resolvable:$true] %s238_s14 }
  0x10   : > { %p9516_p12 = scmp.ne.s32.totalorder %s12135_s1, %s9515_s17  ;;  %p9522_p5 = scmp.lt.u32.totalorder %s9515_s17, %s12135_s1 }
  0x11   : > { %p9773_p11 = pnand %p9400_p9, %p12142_p1 }
  0x13   : > { %p9517_p13 = pneg %p9773_p11 }
  0x15   : > { %p9518_p0 = pnand %p9517_p13, %p9516_p12 }
  0x17   : > { %p9519_p3 = pneg %p9518_p0 }
  0x19   : > { %p9524_p7 = pnand %p9522_p5, %p9519_p3 }
  0x1b   : > { %9527 = shalt.err (!%p9524_p7)
}
  0x1c   : > { %s9528_s22 = scalar_lea.vmem %s9766_s11, 9216  ;;  %p9536_p2 = scmp.lt.s32.totalorder %s9766_s11, %s9766_s11 }
  0x1d   : > { %p9529_p9 = scmp.ne.s32.totalorder %s9766_s11, %s9528_s22  ;;  %p9537_p12 = scmp.lt.s32.totalorder %s9528_s22, %s9528_s22 }
  0x1f   : > { %p9531_p10 = pnand %p9529_p9, %p9517_p13  ;;  %p9538_p0 = por %p9537_p12, %p9536_p2 }
  0x21   : > { %p9532_p1 = pneg %p9531_p10 }
  0x23   : > { %p9539_p6 = pnand %p9538_p0, %p9532_p1 }
  0x25   : > { %9542 = shalt.err (!%p9539_p6)
}
  0x26   : > { %s12143_s23 = smov 128   ;;  %s9676_s29 = smov 8  }
  0x27   : > { %9403 = dma.hbm_to_vmem [thread:$0]  (!%p9773_p11), %s12135_s1, 9216, %s9766_s11, [#allocation6], %s12143_s23, %s12143_s23, %s9676_s29  }
  0x28   : > { %s9543_s17 = scalar_lea.hbm %s12138_s4, 9216 }
  0x29   : > { %p9544_p1 = scmp.ne.s32.totalorder %s12138_s4, %s9543_s17  ;;  %p9550_p10 = scmp.lt.u32.totalorder %s9543_s17, %s12138_s4 }
  0x2b   : > { %p9546_p2 = pnand %p9544_p1, %p9517_p13 }
  0x2d   : > { %p9547_p6 = pneg %p9546_p2 }
  0x2f   : > { %p9552_p3 = pnand %p9550_p10, %p9547_p6 }
  0x31   : > { %9555 = shalt.err (!%p9552_p3)
}
  0x32   : > { %s9556_s11 = scalar_lea.vmem %s9777_s14, 9216  ;;  %p9564_p12 = scmp.lt.s32.totalorder %s9777_s14, %s9777_s14 }
  0x33   : > { %p9557_p5 = scmp.ne.s32.totalorder %s9777_s14, %s9556_s11  ;;  %p9565_p0 = scmp.lt.s32.totalorder %s9556_s11, %s9556_s11 }
  0x35   : > { %p9559_p7 = pnand %p9557_p5, %p9517_p13  ;;  %p9566_p1 = por %p9565_p0, %p9564_p12 }
  0x37   : > { %p9560_p9 = pneg %p9559_p7 }
  0x39   : > { %p9567_p2 = pnand %p9566_p1, %p9560_p9 }
  0x3b   : > { %9570 = shalt.err (!%p9567_p2)
}
  0x3c   : > { %9406 = dma.hbm_to_vmem [thread:$0]  (!%p9773_p11), %s12138_s4, 9216, %s9777_s14, [#allocation6], %s12143_s23, %s12143_s23, %s9676_s29  }
  0x3d   : > { %s9838_s12 = sadd.s32 1, %s9671_s27   ;;  %s31_s13 = sadd.s32 1, %s9667_s26 }
  0x3e   : > { %s28_s15 = ssub.s32 %s9671_s27, %s9838_s12  ;;  %p38_p13 = scmp.ne.s32.totalorder %s9667_s26, %s9663_s25 }
  0x3f   : > { %p29_p6 = scmp.eq.s32.totalorder %s28_s15, 0  ;;  %p39_p10 = scmp.eq.s32.totalorder %s9671_s27, 0 }
  0x40   : > { %p12303_p3 = scmp.eq.s32.totalorder %s9743_s28, 1  ;;  %p9417_p7 = scmp.lt.s32.totalorder %s9671_s27, 2 }
  0x41   : > { %s9854_s17 = scalar_select %p29_p6, %s9667_s26, %s31_s13  }
  0x42   : > { %p9848_p5 = por %p12303_p3, %p38_p13  ;;  %p40_p9 = por %p39_p10, %p38_p13 }
  0x43   : > { %s258_s18 = sand.u32 1, %s9667_s26   ;;  %s6714_s14 = sshll.u32 %s9671_s27, 12 }
  0x44   : > { %s12304_s16 = scalar_select %p9848_p5, 1, 0 }
  0x45   : > { %s6129_s19 = sshll.u32 %s258_s18, 8  ;;  %s9861_s11 = scalar_lea.hbm %s12134_s0, %s6714_s14 }
  0x46   : > { %s262_s22 = scalar_lea.vmem [#allocation2], %s6129_s19  ;;  %p9865_p11 = pnand %p9417_p7, %p40_p9 }
  0x47   : > { %s269_s10 = sshll.u32 %s262_s22, 4  ;;  %s9869_s15 = scalar_lea.sflag [#allocation3], %s258_s18  ;;  %s9863_s10 = int_to_ptr.vmem [resolvable:$true] %s269_s10 }
  0x48   : > { %s9571_s23 = scalar_lea.hbm %s9861_s11, 4096  ;;  %p9573_p0 = pneg %p9865_p11 }
  0x49   : > { %p9572_p12 = scmp.ne.s32.totalorder %s9861_s11, %s9571_s23  ;;  %s9576_s20 = scalar_lea.hbm %s12134_s0, 8192 }
  0x4a   : > { %p9577_p13 = scmp.lt.u32.totalorder %s9861_s11, %s12134_s0  ;;  %p9578_p6 = scmp.lt.u32.totalorder %s9576_s20, %s9571_s23 }
  0x4b   : > { %p9574_p1 = pnand %p9573_p0, %p9572_p12  ;;  %p9580_p3 = scmp.lt.u32.totalorder %s9571_s23, %s9861_s11 }
  0x4c   : > { %p9579_p10 = por %p9578_p6, %p9577_p13 }
  0x4d   : > { %p9575_p2 = pneg %p9574_p1 }
  0x4e   : > { %p9581_p7 = por %p9580_p3, %p9579_p10 }
  0x50   : > { %p9582_p9 = pnand %p9581_p7, %p9575_p2 }
  0x52   : > { %9585 = shalt.err (!%p9582_p9)
}
  0x53   : > { %s9586_s18 = scalar_lea.vmem %s9863_s10, 4096  ;;  %s9677_s19 = smov [#allocation2]  }
  0x54   : > { %p9587_p12 = scmp.ne.s32.totalorder %s9863_s10, %s9586_s18  ;;  %s9591_s14 = sshll.u32 %s9677_s19, 4  ;;  %s9592_s14 = int_to_ptr.vmem [resolvable:$false] %s9591_s14 }
  0x55   : > { %s9593_s21 = scalar_lea.vmem %s9592_s14, 8192  ;;  %p9594_p4 = scmp.lt.s32.totalorder %s9863_s10, %s9592_s14 }
  0x56   : > { %p9589_p1 = pnand %p9587_p12, %p9573_p0  ;;  %p9595_p13 = scmp.lt.s32.totalorder %s9593_s21, %s9586_s18 }
  0x58   : > { %p9590_p5 = pneg %p9589_p1  ;;  %p9596_p6 = por %p9595_p13, %p9594_p4 }
  0x5a   : > { %p9597_p10 = pnand %p9596_p6, %p9590_p5 }
  0x5c   : > { %9600 = shalt.err (!%p9597_p10)
}
  0x5d   : > { %s12306_s23 = smov 128   ;;  %281 = sbr.rel (%p9762_p8) target bundleno = 1662 (0x67e), region = 48 }
  0x5e   : > { %9410 = dma.hbm_to_vmem [thread:$0]  (!%p9865_p11), %s9861_s11, 4096, %s9863_s10, %s9869_s15, %s12306_s23, %s12306_s23, %s9676_s29  }
  0x64   : > { %s9903_s20 = sand.u32 1, %s9663_s25   ;;  %p12307_p4 = scmp.ne.s32.totalorder %s12299_s30, 0 }
  0x65   : > { %s6133_s22 = sshll.u32 %s9903_s20, 8  ;;  %s284_s18 = scalar_lea.sflag [#allocation3], %s9903_s20 }
  0x66   : > { %s9909_s13 = scalar_lea.vmem [#allocation2], %s6133_s22 }
  0x67   : > { %9646 = dma.done.wait (%p12307_p4), %s284_s18, 4096  }
  0x68   : > { %9648 = vsyncadd (%p12307_p4), %s284_s18, 4294963200  ;;  %p12308_p5 = scmp.eq.s32.totalorder %s9743_s28, 0 }
  0x6a   : > { %9650 = dma.done.wait (%p12308_p5), [#allocation6], 18432   ;;  %p12309_p8 = pmov %p12308_p5 }
  0x6b   : > { %v12146_v0 = vmov 0.0   ;;  %v461_v1 = vld [vmem:[#allocation5 + $0x40] sm:$0xff]  ;;  %v462_v2 = vld [vmem:[#allocation5 + $0x48] sm:$0xff]  ;;  %v463_v3 = vld [vmem:[#allocation5 + $0x50] sm:$0xff]  ;;  %vm469_vm0 = vcmask 523264   ;;  %vm389_vm1 = vcmask 1040384  }
  0x6c   : > { %9652 = vsyncadd (%p12309_p8), [#allocation6], 4294948864  ;;  %7452 = vmatprep.mubr.f32.mxu0 %v12146_v0  ;;  %8028 = vmatprep.mubr.f32.mxu1 %v12146_v0  ;;  %v8588_v4 = vpack.c.bf16 %v462_v2, %v461_v1  ;;  %v464_v5 = vld [vmem:[#allocation5 + $0x58] sm:$0xff]  ;;  %v465_v7 = vld [vmem:[#allocation5 + $0x60] sm:$0xff]  ;;  %v10069_v57 = vrot.slane %v12146_v0, 7  ;;  %vm1044_vm2 = vcmask 1046528  }
  0x6d   : > { %v8592_v6 = vpack.c.bf16 %v464_v5, %v463_v3  ;;  %v466_v8 = vld [vmem:[#allocation5 + $0x68] sm:$0xff]  ;;  %v467_v10 = vld [vmem:[#allocation5 + $0x70] sm:$0xff]  ;;  %v468_v11 = vld [vmem:[#allocation5 + $0x78] sm:$0xff]  ;;  %s11931_s21 = scalar_lea.vmem [#allocation8], %s6133_s22  ;;  %s6715_s23 = sshll.u32 %s9743_s28, 12 }
  0x6e   : > { %8589 = vmatprep.subr.bf16.mxu0 %v8588_v4  ;;  %v8596_v9 = vpack.c.bf16 %v466_v8, %v465_v7  ;;  %v8600_v12 = vpack.c.bf16 %v468_v11, %v467_v10  ;;  %v452_v13 = vld [vmem:[#allocation5] sm:$0xff]  ;;  %v453_v14 = vld [vmem:[#allocation5 + $0x8] sm:$0xff]  ;;  %v454_v16 = vld [vmem:[#allocation5 + $0x10] sm:$0xff]  ;;  %12315 = vst [vmem:[#allocation17_spill] sm:$0xff] %v10069_v57  ;;  %s6032_s22 = sshll.u32 %s11931_s21, 4  ;;  %s12084_s9 = scalar_lea.hbm %s12141_s7, %s6715_s23  ;;  %s12086_s22 = int_to_ptr.vmem [resolvable:$true] %s6032_s22 }
  0x6f   : > { %8591 = vmatpush3.bf16.msra.mxu0 %v8588_v4  ;;  %v8604_v15 = vpack.c.bf16 %v453_v14, %v452_v13  ;;  %v455_v17 = vld [vmem:[#allocation5 + $0x18] sm:$0xff]  ;;  %v9922_v18 = vld [vmem:[%s9909_s13] sm:$0xff]  ;;  %v457_v21 = vld [vmem:[#allocation5 + $0x28] sm:$0xff]  ;;  %s6019_s28 = scalar_lea.sflag [#allocation4], %s9903_s20  ;;  %s9601_s29 = scalar_lea.vmem %s12086_s22, 4096 }
  0x70   : > { %8593 = vmatprep.subr.bf16.mxu0 %v8592_v6  ;;  %12310 = vst [vmem:[#allocation12_spill] sm:$0xff] %v9922_v18  ;;  %v8608_v19 = vpack.c.bf16 %v455_v17, %v454_v16  ;;  %v456_v20 = vld [vmem:[#allocation5 + $0x20] sm:$0xff]  ;;  %v9928_v22 = vld [vmem:[%s9909_s13 + $0x8] sm:$0xff]  ;;  %v9931_v23 = vld [vmem:[%s9909_s13 + $0x10] sm:$0xff]  ;;  %v392_v59 = vrot.slane %v9922_v18, 7  ;;  %p9602_p11 = scmp.ne.s32.totalorder %s12086_s22, %s9601_s29  ;;  %p12529_p0 = scmp.ne.s32.totalorder %s12304_s16, 0 }
  0x71   : > { %12311 = vst [vmem:[#allocation13_spill] sm:$0xff] %v9928_v22  ;;  %12312 = vst [vmem:[#allocation14_spill] sm:$0xff] %v9931_v23  ;;  %v8612_v24 = vpack.c.bf16 %v457_v21, %v456_v20  ;;  %v458_v25 = vld [vmem:[#allocation5 + $0x30] sm:$0xff]  ;;  %v459_v26 = vld [vmem:[#allocation5 + $0x38] sm:$0xff]  ;;  %v394_v62 = vrot.slane %v9928_v22, 7  ;;  %v396_v1 = vrot.slane %v9931_v23, 7 }
  0x72   : > { %v9938_v27 = vld [vmem:[%s9909_s13 + $0x18] sm:$0xff]  ;;  %v9941_v28 = vld [vmem:[%s9909_s13 + $0x20] sm:$0xff]  ;;  %v8616_v29 = vpack.c.bf16 %v459_v26, %v458_v25  ;;  %v1109_v31 = vld [vmem:[#allocation5 + $0x88] sm:$0xff]  ;;  %v10084_v63 = vsel %vm389_vm1, %v10069_v57, %v392_v59  ;;  %p9603_p2 = pnand %p9602_p11, %p12529_p0 }
  0x73   : > { %8595 = vmatpush3.bf16.msra.mxu0 %v8592_v6  ;;  %12313 = vst [vmem:[#allocation15_spill] sm:$0xff] %v9938_v27  ;;  %v1108_v30 = vld [vmem:[#allocation5 + $0x80] sm:$0xff]  ;;  %v9948_v32 = vld [vmem:[%s9909_s13 + $0x28] sm:$0xff]  ;;  %v9951_v33 = vld [vmem:[%s9909_s13 + $0x30] sm:$0xff]  ;;  %v10093_v5 = vsel %vm389_vm1, %v392_v59, %v394_v62  ;;  %v398_v6 = vrot.slane %v9938_v27, 7  ;;  %v10098_v7 = vsel %vm389_vm1, %v10069_v57, %v396_v1  ;;  %v400_v8 = vrot.slane %v9941_v28, 7 }
  0x74   : > { %8597 = vmatprep.subr.bf16.mxu0 %v8596_v9  ;;  %12314 = vst [vmem:[#allocation16_spill] sm:$0xff] %v9948_v32  ;;  %v9953_v34 = vpack.c.bf16 %v1109_v31, %v1108_v30  ;;  %v9960_v35 = vld [vmem:[%s9909_s13 + $0x38] sm:$0xff]  ;;  %v9963_v36 = vld [vmem:[%s9909_s13 + $0x40] sm:$0xff]  ;;  %v9971_v37 = vld [vmem:[%s9909_s13 + $0x48] sm:$0xff]  ;;  %v402_v13 = vrot.slane %v9948_v32, 7  ;;  %p9604_p3 = pneg %p9603_p2 }
  0x75   : > { %v9974_v38 = vld [vmem:[%s9909_s13 + $0x50] sm:$0xff]  ;;  %v9981_v39 = vld [vmem:[%s9909_s13 + $0x58] sm:$0xff]  ;;  %v9984_v40 = vld [vmem:[%s9909_s13 + $0x60] sm:$0xff]  ;;  %v10111_v14 = vsel %vm389_vm1, %v10069_v57, %v400_v8  ;;  %v406_v21 = vrot.slane %v9960_v35, 7  ;;  %v408_v25 = vrot.slane %v9963_v36, 7  ;;  %v410_v30 = vrot.slane %v9971_v37, 7 }
  0x76   : > { %v9991_v41 = vld [vmem:[%s9909_s13 + $0x68] sm:$0xff]  ;;  %v9994_v42 = vld [vmem:[%s9909_s13 + $0x70] sm:$0xff]  ;;  %v10001_v43 = vld [vmem:[%s9909_s13 + $0x78] sm:$0xff]  ;;  %v10119_v20 = vsel %vm389_vm1, %v400_v8, %v402_v13  ;;  %v416_v62 = vrot.slane %v9984_v40, 7 }
  0x77   : > { %8599 = vmatpush3.bf16.msra.mxu0 %v8596_v9  ;;  %v10004_v44 = vld [vmem:[%s9909_s13 + $0x80] sm:$0xff]  ;;  %v10011_v45 = vld [vmem:[%s9909_s13 + $0x88] sm:$0xff]  ;;  %v10014_v46 = vld [vmem:[%s9909_s13 + $0x90] sm:$0xff]  ;;  %v10139_v31 = vsel %vm389_vm1, %v10069_v57, %v408_v25  ;;  %v10148_v59 = vsel %vm389_vm1, %v408_v25, %v410_v30  ;;  %v422_v8 = vrot.slane %v10001_v43, 7 }
  0x78   : > { %8601 = vmatprep.subr.bf16.mxu0 %v8600_v12  ;;  %v10021_v47 = vld [vmem:[%s9909_s13 + $0x98] sm:$0xff]  ;;  %v10024_v48 = vld [vmem:[%s9909_s13 + $0xa0] sm:$0xff]  ;;  %v10031_v49 = vld [vmem:[%s9909_s13 + $0xa8] sm:$0xff]  ;;  %v426_v13 = vrot.slane %v10011_v45, 7 }
  0x79   : > { %v10034_v50 = vld [vmem:[%s9909_s13 + $0xb0] sm:$0xff]  ;;  %v10041_v51 = vld [vmem:[%s9909_s13 + $0xb8] sm:$0xff]  ;;  %v10044_v52 = vld [vmem:[%s9909_s13 + $0xc0] sm:$0xff]  ;;  %v432_v25 = vrot.slane %v10024_v48, 7 }
  0x7a   : > { %v10051_v53 = vld [vmem:[%s9909_s13 + $0xc8] sm:$0xff]  ;;  %v10054_v54 = vld [vmem:[%s9909_s13 + $0xd0] sm:$0xff]  ;;  %v10061_v55 = vld [vmem:[%s9909_s13 + $0xd8] sm:$0xff] }
  0x7b   : > { %8603 = vmatpush3.bf16.msra.mxu0 %v8600_v12  ;;  %v10064_v56 = vld [vmem:[%s9909_s13 + $0xe0] sm:$0xff]  ;;  %v10074_v58 = vld [vmem:[%s9909_s13 + $0xe8] sm:$0xff]  ;;  %v1110_v60 = vld [vmem:[#allocation5 + $0x90] sm:$0xff]  ;;  %v10106_v12 = vsel %vm389_vm1, %v396_v1, %v398_v6 }
  0x7c   : > { %8605 = vmatprep.subr.bf16.mxu0 %v8604_v15  ;;  %v1111_v61 = vld [vmem:[#allocation5 + $0x98] sm:$0xff]  ;;  %v1112_v3 = vld [vmem:[#allocation5 + $0xa0] sm:$0xff]  ;;  %v1113_v4 = vld [vmem:[#allocation5 + $0xa8] sm:$0xff] }
  0x7d   : > { %v8624_v2 = vpack.c.bf16 %v1111_v61, %v1110_v60  ;;  %v8628_v9 = vpack.c.bf16 %v1113_v4, %v1112_v3  ;;  %v1114_v10 = vld [vmem:[#allocation5 + $0xb0] sm:$0xff]  ;;  %v1115_v11 = vld [vmem:[#allocation5 + $0xb8] sm:$0xff]  ;;  %v1442_v17 = vld [vmem:[#allocation5 + $0xc0] sm:$0xff]  ;;  %v414_v60 = vrot.slane %v9981_v39, 7  ;;  %v10166_v3 = vsel %vm389_vm1, %v10069_v57, %v416_v62 }
  0x7e   : > { %7453 = vmatmul.mubr.f32.vlgmr.msra.gmra.mrb[0].mxu0 %v12146_v0  ;;  %v8632_v16 = vpack.c.bf16 %v1115_v11, %v1114_v10  ;;  %v420_v4 = vrot.slane %v9994_v42, 7  ;;  %v424_v10 = vrot.slane %v10004_v44, 7  ;;  %v448_v0 = vrot.slane %v10064_v56, 7 }
  0x7f   : > { %8607 = vmatpush3.bf16.msra.mxu0 %v8604_v15  ;;  %7455 = vmatprep.mubr.msk.f32.mxu0 %vm469_vm0, %v9922_v18  ;;  %v404_v15 = vrot.slane %v9951_v33, 7 }
  0x80   : > { %8609 = vmatprep.subr.bf16.mxu0 %v8608_v19  ;;  %v10187_v11 = vsel %vm389_vm1, %v420_v4, %v422_v8 }
  0x82   : > { %7456 = vmatmul.mubr.msk.f32.gmra.mrb[2].mxu0 %vm469_vm0, %v9928_v22 }
  0x83   : > { %7458 = vmatprep.mubr.msk.f32.mxu0 %vm469_vm0, %v9931_v23  ;;  %8611 = vmatpush3.bf16.msra.mxu0 %v8608_v19  ;;  %v1443_v19 = vld [vmem:[#allocation5 + $0xc8] sm:$0xff] }
  0x84   : > { %8613 = vmatprep.subr.bf16.mxu0 %v8612_v24  ;;  %v10127_v26 = vpack.c.bf16 %v1443_v19, %v1442_v17  ;;  %v10200_v17 = vsel %vm389_vm1, %v424_v10, %v426_v13  ;;  %v430_v19 = vrot.slane %v10021_v47, 7 }
  0x85   : > { %12316 = vst [vmem:[#allocation18_spill] sm:$0xff] %v10200_v17 }
  0x86   : > { %7459 = vmatmul.mubr.msk.f32.gmra.mrb[4].mxu0 %vm469_vm0, %v9938_v27 }
  0x87   : > { %7461 = vmatprep.mubr.msk.f32.mxu0 %vm469_vm0, %v9941_v28  ;;  %8615 = vmatpush3.bf16.msra.mxu0 %v8612_v24  ;;  %v10124_v24 = vsel %vm389_vm1, %v10069_v57, %v404_v15 }
  0x88   : > { %8617 = vmatprep.subr.bf16.mxu0 %v8616_v29 }
  0x8a   : > { %7462 = vmatmul.mubr.msk.f32.gmra.mrb[6].mxu0 %vm469_vm0, %v9948_v32 }
  0x8b   : > { %7464 = vmatprep.mubr.msk.f32.mxu0 %vm469_vm0, %v9951_v33  ;;  %8619 = vmatpush3.bf16.msra.mxu0 %v8616_v29  ;;  %v10134_v29 = vsel %vm389_vm1, %v404_v15, %v406_v21  ;;  %v10192_v15 = vsel %vm389_vm1, %v10069_v57, %v424_v10  ;;  %v440_v10 = vrot.slane %v10044_v52, 7 }
  0x8c   : > { %8621 = vmatprep.subr.bf16.mxu0 %v9953_v34 }
  0x8e   : > { %7465 = vmatmul.mubr.msk.f32.gmra.mrb[8].mxu0 %vm469_vm0, %v9960_v35 }
  0x8f   : > { %7467 = vmatprep.mubr.msk.f32.mxu0 %vm469_vm0, %v9963_v36 }
  0x92   : > { %7468 = vmatmul.mubr.msk.f32.gmra.mrb[10].mxu0 %vm469_vm0, %v9971_v37 }
  0x93   : > { %7470 = vmatprep.mubr.msk.f32.mxu0 %vm469_vm0, %v9974_v38 }
  0x96   : > { %7471 = vmatmul.mubr.msk.f32.gmra.mrb[12].mxu0 %vm469_vm0, %v9981_v39 }
  0x97   : > { %7473 = vmatprep.mubr.msk.f32.mxu0 %vm469_vm0, %v9984_v40 }
  0x9a   : > { %7474 = vmatmul.mubr.msk.f32.gmra.mrb[14].mxu0 %vm469_vm0, %v9991_v41 }
  0x9b   : > { %7476 = vmatprep.mubr.msk.f32.mxu0 %vm469_vm0, %v9994_v42 }
  0x9e   : > { %7477 = vmatmul.mubr.msk.f32.gmra.mrb[16].mxu0 %vm469_vm0, %v10001_v43 }
  0x9f   : > { %7479 = vmatprep.mubr.msk.f32.mxu0 %vm469_vm0, %v10004_v44 }
  0xa2   : > { %7480 = vmatmul.mubr.msk.f32.gmra.mrb[18].mxu0 %vm469_vm0, %v10011_v45 }
  0xa3   : > { %7482 = vmatprep.mubr.msk.f32.mxu0 %vm469_vm0, %v10014_v46 }
  0xa6   : > { %7483 = vmatmul.mubr.msk.f32.gmra.mrb[20].mxu0 %vm469_vm0, %v10021_v47 }
  0xa7   : > { %7485 = vmatprep.mubr.msk.f32.mxu0 %vm469_vm0, %v10024_v48 }
  0xaa   : > { %7486 = vmatmul.mubr.msk.f32.gmra.mrb[22].mxu0 %vm469_vm0, %v10031_v49 }
  0xab   : > { %7488 = vmatprep.mubr.msk.f32.mxu0 %vm469_vm0, %v10034_v50 }
  0xae   : > { %7489 = vmatmul.mubr.msk.f32.gmra.mrb[24].mxu0 %vm469_vm0, %v10041_v51 }
  0xaf   : > { %7491 = vmatprep.mubr.msk.f32.mxu0 %vm469_vm0, %v10044_v52 }
  0xb2   : > { %7492 = vmatmul.mubr.msk.f32.gmra.mrb[26].mxu0 %vm469_vm0, %v10051_v53 }
  0xb3   : > { %7494 = vmatprep.mubr.msk.f32.mxu0 %vm469_vm0, %v10054_v54 }
  0xb6   : > { %7495 = vmatmul.mubr.msk.f32.gmra.mrb[28].mxu0 %vm469_vm0, %v10061_v55 }
  0xb7   : > { %7497 = vmatprep.mubr.msk.f32.mxu0 %vm469_vm0, %v10064_v56 }
  0xba   : > { %7498 = vmatmul.mubr.msk.f32.gmra.mrb[30].mxu0 %vm469_vm0, %v10074_v58 }
  0xbb   : > { %7516 = vmatprep.mubr.msk.f32.mxu0 %vm469_vm0, %v10069_v57 }
  0xbe   : > { %7517 = vmatmul.mubr.msk.f32.vlgmr.msra.gmra.mrb[0].mxu0 %vm469_vm0, %v10069_v57 }
  0xbf   : > { %8623 = vmatpush3.bf16.msra.mxu0 %v9953_v34  ;;  %7519 = vmatprep.mubr.msk.f32.mxu0 %vm469_vm0, %v10084_v63  ;;  %v412_v34 = vrot.slane %v9974_v38, 7 }
  0xc0   : > { %8625 = vmatprep.subr.bf16.mxu0 %v8624_v2 }
  0xc1   : > { %v10153_v61 = vsel %vm389_vm1, %v10069_v57, %v412_v34  ;;  %v10161_v1 = vsel %vm389_vm1, %v412_v34, %v414_v60  ;;  %v434_v34 = vrot.slane %v10031_v49, 7  ;;  %v10218_v60 = vsel %vm389_vm1, %v10069_v57, %v432_v25 }
  0xc2   : > { %7520 = vmatmul.mubr.msk.f32.gmra.mrb[2].mxu0 %vm469_vm0, %v10093_v5  ;;  %12319 = vst [vmem:[#allocation21_spill] sm:$0xff] %v10218_v60 }
  0xc3   : > { %7522 = vmatprep.mubr.msk.f32.mxu0 %vm469_vm0, %v10098_v7  ;;  %8627 = vmatpush3.bf16.msra.mxu0 %v8624_v2  ;;  %v418_v2 = vrot.slane %v9991_v41, 7 }
  0xc4   : > { %8629 = vmatprep.subr.bf16.mxu0 %v8628_v9 }
  0xc5   : > { %v10174_v6 = vsel %vm389_vm1, %v416_v62, %v418_v2  ;;  %v436_v62 = vrot.slane %v10034_v50, 7  ;;  %v10226_v2 = vsel %vm389_vm1, %v432_v25, %v434_v34  ;;  %v444_v25 = vrot.slane %v10054_v54, 7 }
  0xc6   : > { %7523 = vmatmul.mubr.msk.f32.gmra.mrb[4].mxu0 %vm469_vm0, %v10106_v12  ;;  %12320 = vst [vmem:[#allocation22_spill] sm:$0xff] %v10226_v2 }
  0xc7   : > { %7525 = vmatprep.mubr.msk.f32.mxu0 %vm469_vm0, %v10111_v14  ;;  %8631 = vmatpush3.bf16.msra.mxu0 %v8628_v9  ;;  %v10179_v9 = vsel %vm389_vm1, %v10069_v57, %v420_v4  ;;  %v438_v4 = vrot.slane %v10041_v51, 7  ;;  %v10231_v8 = vsel %vm389_vm1, %v10069_v57, %v436_v62 }
  0xc8   : > { %8633 = vmatprep.subr.bf16.mxu0 %v8632_v16  ;;  %12321 = vst [vmem:[#allocation23_spill] sm:$0xff] %v10231_v8 }
  0xc9   : > { %v10239_v13 = vsel %vm389_vm1, %v436_v62, %v438_v4  ;;  %v446_v62 = vrot.slane %v10061_v55, 7  ;;  %v10257_v4 = vsel %vm389_vm1, %v10069_v57, %v444_v25 }
  0xca   : > { %7526 = vmatmul.mubr.msk.f32.gmra.mrb[6].mxu0 %vm469_vm0, %v10119_v20  ;;  %12322 = vst [vmem:[#allocation24_spill] sm:$0xff] %v10239_v13  ;;  %12325 = vst [vmem:[#allocation27_spill] sm:$0xff] %v10257_v4 }
  0xcb   : > { %7528 = vmatprep.mubr.msk.f32.mxu0 %vm469_vm0, %v10124_v24  ;;  %8635 = vmatpush3.bf16.msra.mxu0 %v8632_v16  ;;  %v428_v16 = vrot.slane %v10014_v46, 7 }
  0xcc   : > { %8637 = vmatprep.subr.bf16.mxu0 %v10127_v26 }
  0xcd   : > { %v10205_v21 = vsel %vm389_vm1, %v10069_v57, %v428_v16  ;;  %v10213_v30 = vsel %vm389_vm1, %v428_v16, %v430_v19  ;;  %v442_v16 = vrot.slane %v10051_v53, 7  ;;  %v10244_v19 = vsel %vm389_vm1, %v10069_v57, %v440_v10 }
  0xce   : > { %7529 = vmatmul.mubr.msk.f32.gmra.mrb[8].mxu0 %vm469_vm0, %v10134_v29  ;;  %12317 = vst [vmem:[#allocation19_spill] sm:$0xff] %v10205_v21  ;;  %12318 = vst [vmem:[#allocation20_spill] sm:$0xff] %v10213_v30 }
  0xcf   : > { %7531 = vmatprep.mubr.msk.f32.mxu0 %vm469_vm0, %v10139_v31  ;;  %12323 = vst [vmem:[#allocation25_spill] sm:$0xff] %v10244_v19  ;;  %v10252_v34 = vsel %vm389_vm1, %v440_v10, %v442_v16  ;;  %v450_v10 = vrot.slane %v10074_v58, 7  ;;  %v10270_v16 = vsel %vm389_vm1, %v10069_v57, %v448_v0  ;;  %v1445_v57 = vld [vmem:[#allocation5 + $0xd8] sm:$0xff] }
  0xd0   : > { %12324 = vst [vmem:[#allocation26_spill] sm:$0xff] %v10252_v34  ;;  %12327 = vst [vmem:[#allocation29_spill] sm:$0xff] %v10270_v16 }
  0xd2   : > { %7532 = vmatmul.mubr.msk.f32.gmra.mrb[10].mxu0 %vm469_vm0, %v10148_v59 }
  0xd3   : > { %7534 = vmatprep.mubr.msk.f32.mxu0 %vm469_vm0, %v10153_v61 }
  0xd6   : > { %7535 = vmatmul.mubr.msk.f32.gmra.mrb[12].mxu0 %vm469_vm0, %v10161_v1 }
  0xd7   : > { %7537 = vmatprep.mubr.msk.f32.mxu0 %vm469_vm0, %v10166_v3 }
  0xda   : > { %7538 = vmatmul.mubr.msk.f32.gmra.mrb[14].mxu0 %vm469_vm0, %v10174_v6 }
  0xdb   : > { %7540 = vmatprep.mubr.msk.f32.mxu0 %vm469_vm0, %v10179_v9 }
  0xde   : > { %7541 = vmatmul.mubr.msk.f32.gmra.mrb[16].mxu0 %vm469_vm0, %v10187_v11 }
  0xdf   : > { %7543 = vmatprep.mubr.msk.f32.mxu0 %vm469_vm0, %v10192_v15 }
  0xe2   : > { %7544 = vmatmul.mubr.msk.f32.gmra.mrb[18].mxu0 %vm469_vm0, %v10200_v17 }
  0xe3   : > { %7546 = vmatprep.mubr.msk.f32.mxu0 %vm469_vm0, %v10205_v21 }
  0xe6   : > { %7547 = vmatmul.mubr.msk.f32.gmra.mrb[20].mxu0 %vm469_vm0, %v10213_v30 }
  0xe7   : > { %7549 = vmatprep.mubr.msk.f32.mxu0 %vm469_vm0, %v10218_v60 }
  0xea   : > { %7550 = vmatmul.mubr.msk.f32.gmra.mrb[22].mxu0 %vm469_vm0, %v10226_v2 }
  0xeb   : > { %7552 = vmatprep.mubr.msk.f32.mxu0 %vm469_vm0, %v10231_v8 }
  0xee   : > { %7553 = vmatmul.mubr.msk.f32.gmra.mrb[24].mxu0 %vm469_vm0, %v10239_v13  ;;  %v10265_v13 = vsel %vm389_vm1, %v444_v25, %v446_v62  ;;  %v1047_v25 = vrot.slane %v9922_v18, 1  ;;  %v1048_v62 = vrot.slane %v9928_v22, 1  ;;  %v1446_v18 = vld [vmem:[#allocation5 + $0xe0] sm:$0xff] }
  0xef   : > { %7555 = vmatprep.mubr.msk.f32.mxu0 %vm469_vm0, %v10244_v19  ;;  %12326 = vst [vmem:[#allocation28_spill] sm:$0xff] %v10265_v13  ;;  %v12328_v19 = vmov 0.0  }
  0xf0   : > { %v10275_v8 = vrot.slane %v12328_v19, 1  ;;  %v10289_v19 = vsel %vm1044_vm2, %v1047_v25, %v1048_v62 }
  0xf1   : > { %12331 = vst [vmem:[#allocation32_spill] sm:$0xff] %v10289_v19 }
  0xf2   : > { %7556 = vmatmul.mubr.msk.f32.gmra.mrb[26].mxu0 %vm469_vm0, %v10252_v34  ;;  %12329 = vst [vmem:[#allocation30_spill] sm:$0xff] %v10275_v8  ;;  %v1444_v34 = vld [vmem:[#allocation5 + $0xd0] sm:$0xff]  ;;  %v10300_v22 = vsel %vm1044_vm2, %v1048_v62, %v10275_v8  ;;  %v1059_v62 = vrot.slane %v9951_v33, 1 }
  0xf3   : > { %7558 = vmatprep.mubr.msk.f32.mxu0 %vm469_vm0, %v10257_v4  ;;  %v10280_v4 = vsel %vm389_vm1, %v448_v0, %v450_v10  ;;  %v1052_v0 = vrot.slane %v9938_v27, 1  ;;  %v8640_v10 = vpack.c.bf16 %v1445_v57, %v1444_v34  ;;  %v1055_v27 = vrot.slane %v9941_v28, 1 }
  0xf4   : > { %12330 = vst [vmem:[#allocation31_spill] sm:$0xff] %v10280_v4  ;;  %v1056_v57 = vrot.slane %v9948_v32, 1  ;;  %v1713_v32 = vld [vmem:[#allocation5 + $0x108] sm:$0xff] }
  0xf6   : > { %7559 = vmatmul.mubr.msk.f32.gmra.mrb[28].mxu0 %vm469_vm0, %v10265_v13  ;;  %v1447_v13 = vld [vmem:[#allocation5 + $0xe8] sm:$0xff] }
  0xf7   : > { %7561 = vmatprep.mubr.msk.f32.mxu0 %vm469_vm0, %v10270_v16  ;;  %v1051_v16 = vrot.slane %v9931_v23, 1  ;;  %v8644_v34 = vpack.c.bf16 %v1447_v13, %v1446_v18  ;;  %v1448_v23 = vld [vmem:[#allocation5 + $0xf0] sm:$0xff]  ;;  %v1060_v18 = vrot.slane %v9960_v35, 1 }
  0xf9   : > { %v10303_v25 = vsel %vm1044_vm2, %v1051_v16, %v1052_v0  ;;  %v10316_v16 = vsel %vm1044_vm2, %v1055_v27, %v1056_v57  ;;  %v10329_v27 = vsel %vm1044_vm2, %v1059_v62, %v1060_v18  ;;  %v1067_v62 = vrot.slane %v9974_v38, 1 }
  0xfa   : > { %7562 = vmatmul.mubr.msk.f32.gmra.mrb[30].mxu0 %vm469_vm0, %v10280_v4  ;;  %v1449_v4 = vld [vmem:[#allocation5 + $0xf8] sm:$0xff]  ;;  %12332 = vst [vmem:[#allocation33_spill] sm:$0xff] %v10316_v16 }
  0xfb   : > { %7580 = vmatprep.mubr.msk.f32.mxu0 %vm469_vm0, %v10275_v8  ;;  %v8648_v13 = vpack.c.bf16 %v1449_v4, %v1448_v23  ;;  %v1064_v23 = vrot.slane %v9971_v37, 1 }
  0xfe   : > { %7581 = vmatmul.mubr.msk.f32.vlgmr.msra.gmra.mrb[0].mxu0 %vm469_vm0, %v10275_v8 }
  0xff   : > { %8639 = vmatpush3.bf16.msra.mxu0 %v10127_v26  ;;  %7583 = vmatprep.mubr.msk.f32.mxu0 %vm469_vm0, %v10289_v19  ;;  %v10313_v26 = vsel %vm1044_vm2, %v1052_v0, %v10275_v8  ;;  %v1712_v19 = vld [vmem:[#allocation5 + $0x100] sm:$0xff]  ;;  %v10326_v0 = vsel %vm1044_vm2, %v1056_v57, %v10275_v8  ;;  %v10341_v57 = vsel %vm1044_vm2, %v1060_v18, %v10275_v8  ;;  %v1071_v18 = vrot.slane %v9984_v40, 1 }
 0x100   : > { %8641 = vmatprep.subr.bf16.mxu0 %v8640_v10  ;;  %v10333_v4 = vpack.c.bf16 %v1713_v32, %v1712_v19  ;;  %v10355_v32 = vsel %vm1044_vm2, %v1064_v23, %v10275_v8 }
 0x101   : > { %12334 = vst [vmem:[#allocation35_spill] sm:$0xff] %v10355_v32 }
 0x102   : > { %7584 = vmatmul.mubr.msk.f32.gmra.mrb[2].mxu0 %vm469_vm0, %v10300_v22 }
 0x103   : > { %7586 = vmatprep.mubr.msk.f32.mxu0 %vm469_vm0, %v10303_v25  ;;  %8643 = vmatpush3.bf16.msra.mxu0 %v8640_v10  ;;  %v1063_v10 = vrot.slane %v9963_v36, 1 }
 0x104   : > { %8645 = vmatprep.subr.bf16.mxu0 %v8644_v34 }
 0x106   : > { %7587 = vmatmul.mubr.msk.f32.gmra.mrb[4].mxu0 %vm469_vm0, %v10313_v26 }
 0x107   : > { %7589 = vmatprep.mubr.msk.f32.mxu0 %vm469_vm0, %v10316_v16  ;;  %8647 = vmatpush3.bf16.msra.mxu0 %v8644_v34  ;;  %v10344_v34 = vsel %vm1044_vm2, %v1063_v10, %v1064_v23  ;;  %v1068_v16 = vrot.slane %v9981_v39, 1 }
 0x108   : > { %8649 = vmatprep.subr.bf16.mxu0 %v8648_v13  ;;  %12333 = vst [vmem:[#allocation34_spill] sm:$0xff] %v10344_v34 }
 0x109   : > { %v10358_v19 = vsel %vm1044_vm2, %v1067_v62, %v1068_v16  ;;  %v10368_v10 = vsel %vm1044_vm2, %v1068_v16, %v10275_v8  ;;  %v1075_v62 = vrot.slane %v9994_v42, 1 }
 0x10a   : > { %7590 = vmatmul.mubr.msk.f32.gmra.mrb[6].mxu0 %vm469_vm0, %v10326_v0  ;;  %12335 = vst [vmem:[#allocation36_spill] sm:$0xff] %v10358_v19  ;;  %12336 = vst [vmem:[#allocation37_spill] sm:$0xff] %v10368_v10 }
 0x10b   : > { %7592 = vmatprep.mubr.msk.f32.mxu0 %vm469_vm0, %v10329_v27  ;;  %8651 = vmatpush3.bf16.msra.mxu0 %v8648_v13  ;;  %v1072_v13 = vrot.slane %v9991_v41, 1 }
 0x10c   : > { %8653 = vmatprep.subr.bf16.mxu0 %v10333_v4 }
 0x10d   : > { %v10371_v23 = vsel %vm1044_vm2, %v1071_v18, %v1072_v13  ;;  %v1079_v18 = vrot.slane %v10004_v44, 1 }
 0x10e   : > { %7593 = vmatmul.mubr.msk.f32.gmra.mrb[8].mxu0 %vm469_vm0, %v10341_v57  ;;  %12337 = vst [vmem:[#allocation38_spill] sm:$0xff] %v10371_v23 }
 0x10f   : > { %7595 = vmatprep.mubr.msk.f32.mxu0 %vm469_vm0, %v10344_v34  ;;  %v1076_v34 = vrot.slane %v10001_v43, 1 }
 0x111   : > { %v10384_v16 = vsel %vm1044_vm2, %v1075_v62, %v1076_v34  ;;  %v1083_v62 = vrot.slane %v10014_v46, 1 }
 0x112   : > { %7596 = vmatmul.mubr.msk.f32.gmra.mrb[10].mxu0 %vm469_vm0, %v10355_v32  ;;  %12339 = vst [vmem:[#allocation40_spill] sm:$0xff] %v10384_v16  ;;  %v1080_v32 = vrot.slane %v10011_v45, 1 }
 0x113   : > { %7598 = vmatprep.mubr.msk.f32.mxu0 %vm469_vm0, %v10358_v19  ;;  %v10381_v19 = vsel %vm1044_vm2, %v1072_v13, %v10275_v8 }
 0x114   : > { %12338 = vst [vmem:[#allocation39_spill] sm:$0xff] %v10381_v19  ;;  %v10397_v13 = vsel %vm1044_vm2, %v1079_v18, %v1080_v32  ;;  %v1087_v18 = vrot.slane %v10024_v48, 1 }
 0x115   : > { %12341 = vst [vmem:[#allocation42_spill] sm:$0xff] %v10397_v13 }
 0x116   : > { %7599 = vmatmul.mubr.msk.f32.gmra.mrb[12].mxu0 %vm469_vm0, %v10368_v10  ;;  %v1084_v10 = vrot.slane %v10021_v47, 1 }
 0x117   : > { %7601 = vmatprep.mubr.msk.f32.mxu0 %vm469_vm0, %v10371_v23  ;;  %v10394_v23 = vsel %vm1044_vm2, %v1076_v34, %v10275_v8 }
 0x118   : > { %12340 = vst [vmem:[#allocation41_spill] sm:$0xff] %v10394_v23  ;;  %v10410_v34 = vsel %vm1044_vm2, %v1083_v62, %v1084_v10  ;;  %v1091_v62 = vrot.slane %v10034_v50, 1 }
 0x119   : > { %12343 = vst [vmem:[#allocation44_spill] sm:$0xff] %v10410_v34 }
 0x11a   : > { %7602 = vmatmul.mubr.msk.f32.gmra.mrb[14].mxu0 %vm469_vm0, %v10381_v19  ;;  %v1088_v19 = vrot.slane %v10031_v49, 1 }
 0x11b   : > { %7604 = vmatprep.mubr.msk.f32.mxu0 %vm469_vm0, %v10384_v16  ;;  %v10407_v16 = vsel %vm1044_vm2, %v1080_v32, %v10275_v8 }
 0x11c   : > { %12342 = vst [vmem:[#allocation43_spill] sm:$0xff] %v10407_v16  ;;  %v10423_v32 = vsel %vm1044_vm2, %v1087_v18, %v1088_v19  ;;  %v1095_v18 = vrot.slane %v10044_v52, 1 }
 0x11d   : > { %12345 = vst [vmem:[#allocation46_spill] sm:$0xff] %v10423_v32 }
 0x11e   : > { %7605 = vmatmul.mubr.msk.f32.gmra.mrb[16].mxu0 %vm469_vm0, %v10394_v23  ;;  %v1092_v23 = vrot.slane %v10041_v51, 1 }
 0x11f   : > { %7607 = vmatprep.mubr.msk.f32.mxu0 %vm469_vm0, %v10397_v13  ;;  %v10420_v13 = vsel %vm1044_vm2, %v1084_v10, %v10275_v8 }
 0x120   : > { %12344 = vst [vmem:[#allocation45_spill] sm:$0xff] %v10420_v13  ;;  %v10436_v10 = vsel %vm1044_vm2, %v1091_v62, %v1092_v23  ;;  %v1099_v62 = vrot.slane %v10054_v54, 1 }
 0x121   : > { %12347 = vst [vmem:[#allocation48_spill] sm:$0xff] %v10436_v10 }
 0x122   : > { %7608 = vmatmul.mubr.msk.f32.gmra.mrb[18].mxu0 %vm469_vm0, %v10407_v16  ;;  %v1096_v16 = vrot.slane %v10051_v53, 1 }
 0x123   : > { %7610 = vmatprep.mubr.msk.f32.mxu0 %vm469_vm0, %v10410_v34  ;;  %v10433_v34 = vsel %vm1044_vm2, %v1088_v19, %v10275_v8 }
 0x124   : > { %12346 = vst [vmem:[#allocation47_spill] sm:$0xff] %v10433_v34  ;;  %v10449_v19 = vsel %vm1044_vm2, %v1095_v18, %v1096_v16  ;;  %v1103_v18 = vrot.slane %v10064_v56, 1 }
 0x125   : > { %12349 = vst [vmem:[#allocation50_spill] sm:$0xff] %v10449_v19 }
 0x126   : > { %7611 = vmatmul.mubr.msk.f32.gmra.mrb[20].mxu0 %vm469_vm0, %v10420_v13  ;;  %v1100_v13 = vrot.slane %v10061_v55, 1 }
 0x127   : > { %7613 = vmatprep.mubr.msk.f32.mxu0 %vm469_vm0, %v10423_v32  ;;  %v10446_v32 = vsel %vm1044_vm2, %v1092_v23, %v10275_v8 }
 0x128   : > { %12348 = vst [vmem:[#allocation49_spill] sm:$0xff] %v10446_v32  ;;  %v10462_v23 = vsel %vm1044_vm2, %v1099_v62, %v1100_v13 }
 0x129   : > { %12351 = vst [vmem:[#allocation52_spill] sm:$0xff] %v10462_v23 }
 0x12a   : > { %7614 = vmatmul.mubr.msk.f32.gmra.mrb[22].mxu0 %vm469_vm0, %v10433_v34  ;;  %v1104_v34 = vrot.slane %v10074_v58, 1 }
 0x12b   : > { %7616 = vmatprep.mubr.msk.f32.mxu0 %vm469_vm0, %v10436_v10  ;;  %v10459_v10 = vsel %vm1044_vm2, %v1096_v16, %v10275_v8 }
 0x12c   : > { %12350 = vst [vmem:[#allocation51_spill] sm:$0xff] %v10459_v10  ;;  %v10475_v16 = vsel %vm1044_vm2, %v1103_v18, %v1104_v34  ;;  %v10483_v62 = vsel %vm1044_vm2, %v1104_v34, %v10275_v8  ;;  %v1716_v18 = vld [vmem:[#allocation5 + $0x120] sm:$0xff] }
 0x12d   : > { %12352 = vst [vmem:[#allocation53_spill] sm:$0xff] %v10475_v16 }
 0x12e   : > { %7617 = vmatmul.mubr.msk.f32.gmra.mrb[24].mxu0 %vm469_vm0, %v10446_v32  ;;  %v1715_v32 = vld [vmem:[#allocation5 + $0x118] sm:$0xff] }
 0x12f   : > { %7619 = vmatprep.mubr.msk.f32.mxu0 %vm469_vm0, %v10449_v19  ;;  %v10472_v19 = vsel %vm1044_vm2, %v1100_v13, %v10275_v8  ;;  %v1718_v8 = vld [vmem:[#allocation5 + $0x130] sm:$0xff] }
 0x132   : > { %7620 = vmatmul.mubr.msk.f32.gmra.mrb[26].mxu0 %vm469_vm0, %v10459_v10  ;;  %v1714_v10 = vld [vmem:[#allocation5 + $0x110] sm:$0xff] }
 0x133   : > { %7622 = vmatprep.mubr.msk.f32.mxu0 %vm469_vm0, %v10462_v23  ;;  %v8656_v13 = vpack.c.bf16 %v1715_v32, %v1714_v10  ;;  %v1717_v23 = vld [vmem:[#allocation5 + $0x128] sm:$0xff]  ;;  %v1986_v32 = vld [vmem:[#allocation5 + $0x140] sm:$0xff] }
 0x134   : > { %v8660_v34 = vpack.c.bf16 %v1717_v23, %v1716_v18  ;;  %v12354_v10 = vld [vmem:[#allocation24_spill] sm:$0xff]  ;;  %v12355_v23 = vld [vmem:[#allocation25_spill] sm:$0xff]  ;;  %v12357_v18 = vld [vmem:[#allocation27_spill] sm:$0xff] }
 0x136   : > { %7623 = vmatmul.mubr.msk.f32.gmra.mrb[28].mxu0 %vm469_vm0, %v10472_v19 }
 0x137   : > { %7625 = vmatprep.mubr.msk.f32.mxu0 %vm469_vm0, %v10475_v16  ;;  %v1719_v16 = vld [vmem:[#allocation5 + $0x138] sm:$0xff] }
 0x13a   : > { %7626 = vmatmul.mubr.msk.f32.gmra.mrb[30].mxu0 %vm469_vm0, %v10483_v62 }
 0x13b   : > { %7644 = vmatprep.mubr.msk.f32.mxu0 %vm469_vm0, %v10084_v63  ;;  %v8664_v63 = vpack.c.bf16 %v1719_v16, %v1718_v8  ;;  %v12353_v8 = vld [vmem:[#allocation23_spill] sm:$0xff]  ;;  %v10539_v16 = vld [vmem:[%s9909_s13 + $0xf0] sm:$0xff] }
 0x13e   : > { %7645 = vmatmul.mubr.msk.f32.vlgmr.msra.gmra.mrb[0].mxu0 %vm469_vm0, %v10093_v5  ;;  %v1987_v5 = vld [vmem:[#allocation5 + $0x148] sm:$0xff] }
 0x13f   : > { %8655 = vmatpush3.bf16.msra.mxu0 %v10333_v4  ;;  %7647 = vmatprep.mubr.msk.f32.mxu0 %vm469_vm0, %v10098_v7  ;;  %v8668_v4 = vpack.c.bf16 %v1987_v5, %v1986_v32  ;;  %v12358_v32 = vld [vmem:[#allocation28_spill] sm:$0xff]  ;;  %v12359_v5 = vld [vmem:[#allocation29_spill] sm:$0xff] }
 0x140   : > { %8657 = vmatprep.subr.bf16.mxu0 %v8656_v13 }
 0x142   : > { %7648 = vmatmul.mubr.msk.f32.gmra.mrb[2].mxu0 %vm469_vm0, %v10106_v12 }
 0x143   : > { %7650 = vmatprep.mubr.msk.f32.mxu0 %vm469_vm0, %v10111_v14  ;;  %8659 = vmatpush3.bf16.msra.mxu0 %v8656_v13  ;;  %v12356_v13 = vld [vmem:[#allocation26_spill] sm:$0xff] }
 0x144   : > { %8661 = vmatprep.subr.bf16.mxu0 %v8660_v34 }
 0x146   : > { %7651 = vmatmul.mubr.msk.f32.gmra.mrb[4].mxu0 %vm469_vm0, %v10119_v20 }
 0x147   : > { %7653 = vmatprep.mubr.msk.f32.mxu0 %vm469_vm0, %v10124_v24  ;;  %8663 = vmatpush3.bf16.msra.mxu0 %v8660_v34  ;;  %v1437_v34 = vrot.slane %v10539_v16, 7 }
 0x148   : > { %8665 = vmatprep.subr.bf16.mxu0 %v8664_v63 }
 0x14a   : > { %7654 = vmatmul.mubr.msk.f32.gmra.mrb[6].mxu0 %vm469_vm0, %v10134_v29 }
 0x14b   : > { %7656 = vmatprep.mubr.msk.f32.mxu0 %vm469_vm0, %v10139_v31  ;;  %8667 = vmatpush3.bf16.msra.mxu0 %v8664_v63  ;;  %v10547_v63 = vld [vmem:[%s9909_s13 + $0xf8] sm:$0xff] }
 0x14c   : > { %8669 = vmatprep.subr.bf16.mxu0 %v8668_v4 }
 0x14e   : > { %7657 = vmatmul.mubr.msk.f32.gmra.mrb[8].mxu0 %vm469_vm0, %v10148_v59 }
 0x14f   : > { %7659 = vmatprep.mubr.msk.f32.mxu0 %vm469_vm0, %v10153_v61 }
 0x152   : > { %7660 = vmatmul.mubr.msk.f32.gmra.mrb[10].mxu0 %vm469_vm0, %v10161_v1 }
 0x153   : > { %7662 = vmatprep.mubr.msk.f32.mxu0 %vm469_vm0, %v10166_v3 }
 0x156   : > { %7663 = vmatmul.mubr.msk.f32.gmra.mrb[12].mxu0 %vm469_vm0, %v10174_v6 }
 0x157   : > { %7665 = vmatprep.mubr.msk.f32.mxu0 %vm469_vm0, %v10179_v9 }
 0x15a   : > { %7666 = vmatmul.mubr.msk.f32.gmra.mrb[14].mxu0 %vm469_vm0, %v10187_v11 }
 0x15b   : > { %7668 = vmatprep.mubr.msk.f32.mxu0 %vm469_vm0, %v10192_v15 }
 0x15e   : > { %7669 = vmatmul.mubr.msk.f32.gmra.mrb[16].mxu0 %vm469_vm0, %v10200_v17  ;;  %v12366_v17 = vld [vmem:[#allocation15_spill] sm:$0xff] }
 0x15f   : > { %7671 = vmatprep.mubr.msk.f32.mxu0 %vm469_vm0, %v10205_v21  ;;  %v12364_v21 = vld [vmem:[#allocation13_spill] sm:$0xff] }
 0x162   : > { %7672 = vmatmul.mubr.msk.f32.gmra.mrb[18].mxu0 %vm469_vm0, %v10213_v30  ;;  %v1991_v30 = vld [vmem:[#allocation5 + $0x168] sm:$0xff] }
 0x163   : > { %7674 = vmatprep.mubr.msk.f32.mxu0 %vm469_vm0, %v10218_v60 }
 0x166   : > { %7675 = vmatmul.mubr.msk.f32.gmra.mrb[20].mxu0 %vm469_vm0, %v10226_v2  ;;  %v1988_v2 = vld [vmem:[#allocation5 + $0x150] sm:$0xff] }
 0x167   : > { %7677 = vmatprep.mubr.msk.f32.mxu0 %vm469_vm0, %v12353_v8 }
 0x16a   : > { %7678 = vmatmul.mubr.msk.f32.gmra.mrb[22].mxu0 %vm469_vm0, %v12354_v10  ;;  %v12360_v10 = vld [vmem:[#allocation17_spill] sm:$0xff] }
 0x16b   : > { %7680 = vmatprep.mubr.msk.f32.mxu0 %vm469_vm0, %v12355_v23  ;;  %v1439_v23 = vrot.slane %v10547_v63, 7  ;;  %v10556_v8 = vsel %vm389_vm1, %v12360_v10, %v1437_v34  ;;  %v1990_v10 = vld [vmem:[#allocation5 + $0x160] sm:$0xff] }
 0x16c   : > { %12361 = vst [vmem:[#allocation54_spill] sm:$0xff] %v10556_v8 }
 0x16e   : > { %7681 = vmatmul.mubr.msk.f32.gmra.mrb[24].mxu0 %vm469_vm0, %v12356_v13  ;;  %v12362_v13 = vld [vmem:[#allocation31_spill] sm:$0xff] }
 0x16f   : > { %7683 = vmatprep.mubr.msk.f32.mxu0 %vm469_vm0, %v12357_v18  ;;  %v10563_v18 = vsel %vm389_vm1, %v1437_v34, %v1439_v23  ;;  %v8676_v23 = vpack.c.bf16 %v1991_v30, %v1990_v10  ;;  %v1992_v34 = vld [vmem:[#allocation5 + $0x170] sm:$0xff]  ;;  %v12381_v10 = vld [vmem:[#allocation45_spill] sm:$0xff] }
 0x172   : > { %7684 = vmatmul.mubr.msk.f32.gmra.mrb[26].mxu0 %vm469_vm0, %v12358_v32  ;;  %v1989_v32 = vld [vmem:[#allocation5 + $0x158] sm:$0xff] }
 0x173   : > { %7686 = vmatprep.mubr.msk.f32.mxu0 %vm469_vm0, %v12359_v5  ;;  %v12363_v5 = vld [vmem:[#allocation12_spill] sm:$0xff]  ;;  %v8672_v60 = vpack.c.bf16 %v1989_v32, %v1988_v2 }
 0x174   : > { %v2256_v32 = vld [vmem:[#allocation5 + $0x180] sm:$0xff] }
 0x176   : > { %7687 = vmatmul.mubr.msk.f32.gmra.mrb[28].mxu0 %vm469_vm0, %v12362_v13  ;;  %v12365_v13 = vld [vmem:[#allocation14_spill] sm:$0xff] }
 0x177   : > { %7689 = vmatprep.mubr.msk.f32.mxu0 %vm469_vm0, %v10556_v8  ;;  %v1993_v8 = vld [vmem:[#allocation5 + $0x178] sm:$0xff] }
 0x178   : > { %v8680_v2 = vpack.c.bf16 %v1993_v8, %v1992_v34  ;;  %v12380_v8 = vld [vmem:[#allocation44_spill] sm:$0xff] }
 0x179   : > { %v12384_v34 = vld [vmem:[#allocation48_spill] sm:$0xff] }
 0x17a   : > { %7690 = vmatmul.mubr.msk.f32.gmra.mrb[30].mxu0 %vm469_vm0, %v10563_v18 }
 0x17b   : > { %7708 = vmatprep.mubr.msk.f32.mxu0 %vm469_vm0, %v12363_v5  ;;  %v2257_v5 = vld [vmem:[#allocation5 + $0x188] sm:$0xff] }
 0x17c   : > { %v8684_v30 = vpack.c.bf16 %v2257_v5, %v2256_v32  ;;  %v12386_v32 = vld [vmem:[#allocation50_spill] sm:$0xff]  ;;  %v12387_v5 = vld [vmem:[#allocation51_spill] sm:$0xff] }
 0x17e   : > { %7709 = vmatmul.mubr.msk.f32.vlgmr.msra.gmra.mrb[0].mxu0 %vm469_vm0, %v12364_v21  ;;  %v12367_v21 = vld [vmem:[#allocation16_spill] sm:$0xff] }
 0x17f   : > { %8671 = vmatpush3.bf16.msra.mxu0 %v8668_v4  ;;  %7711 = vmatprep.mubr.msk.f32.mxu0 %vm469_vm0, %v12365_v13  ;;  %v12379_v4 = vld [vmem:[#allocation43_spill] sm:$0xff]  ;;  %v12382_v13 = vld [vmem:[#allocation46_spill] sm:$0xff] }
 0x180   : > { %8673 = vmatprep.subr.bf16.mxu0 %v8672_v60 }
 0x182   : > { %7712 = vmatmul.mubr.msk.f32.gmra.mrb[2].mxu0 %vm469_vm0, %v12366_v17  ;;  %v12377_v17 = vld [vmem:[#allocation41_spill] sm:$0xff] }
 0x183   : > { %7714 = vmatprep.mubr.msk.f32.mxu0 %vm469_vm0, %v9941_v28  ;;  %8675 = vmatpush3.bf16.msra.mxu0 %v8672_v60  ;;  %v2258_v28 = vld [vmem:[#allocation5 + $0x190] sm:$0xff] }
 0x184   : > { %8677 = vmatprep.subr.bf16.mxu0 %v8676_v23  ;;  %v12378_v60 = vld [vmem:[#allocation42_spill] sm:$0xff] }
 0x186   : > { %7715 = vmatmul.mubr.msk.f32.gmra.mrb[4].mxu0 %vm469_vm0, %v12367_v21  ;;  %v12388_v21 = vld [vmem:[#allocation52_spill] sm:$0xff] }
 0x187   : > { %7717 = vmatprep.mubr.msk.f32.mxu0 %vm469_vm0, %v9951_v33  ;;  %8679 = vmatpush3.bf16.msra.mxu0 %v8676_v23  ;;  %v2259_v33 = vld [vmem:[#allocation5 + $0x198] sm:$0xff] }
 0x188   : > { %8681 = vmatprep.subr.bf16.mxu0 %v8680_v2  ;;  %v12383_v23 = vld [vmem:[#allocation47_spill] sm:$0xff] }
 0x18a   : > { %7718 = vmatmul.mubr.msk.f32.gmra.mrb[6].mxu0 %vm469_vm0, %v9960_v35  ;;  %v12368_v35 = vld [vmem:[#allocation32_spill] sm:$0xff] }
 0x18b   : > { %7720 = vmatprep.mubr.msk.f32.mxu0 %vm469_vm0, %v9963_v36  ;;  %8683 = vmatpush3.bf16.msra.mxu0 %v8680_v2  ;;  %v8688_v36 = vpack.c.bf16 %v2259_v33, %v2258_v28  ;;  %v12385_v2 = vld [vmem:[#allocation49_spill] sm:$0xff]  ;;  %v1982_v28 = vrot.slane %v10547_v63, 1 }
 0x18c   : > { %8685 = vmatprep.subr.bf16.mxu0 %v8684_v30  ;;  %v12389_v33 = vld [vmem:[#allocation53_spill] sm:$0xff] }
 0x18e   : > { %7721 = vmatmul.mubr.msk.f32.gmra.mrb[8].mxu0 %vm469_vm0, %v9971_v37  ;;  %v2260_v37 = vld [vmem:[#allocation5 + $0x1a0] sm:$0xff] }
 0x18f   : > { %7723 = vmatprep.mubr.msk.f32.mxu0 %vm469_vm0, %v9974_v38  ;;  %v2261_v38 = vld [vmem:[#allocation5 + $0x1a8] sm:$0xff] }
 0x192   : > { %7724 = vmatmul.mubr.msk.f32.gmra.mrb[10].mxu0 %vm469_vm0, %v9981_v39  ;;  %v8692_v39 = vpack.c.bf16 %v2261_v38, %v2260_v37  ;;  %v2524_v38 = vld [vmem:[#allocation5 + $0x1d0] sm:$0xff] }
 0x193   : > { %7726 = vmatprep.mubr.msk.f32.mxu0 %vm469_vm0, %v9984_v40  ;;  %v2262_v40 = vld [vmem:[#allocation5 + $0x1b0] sm:$0xff] }
 0x196   : > { %7727 = vmatmul.mubr.msk.f32.gmra.mrb[12].mxu0 %vm469_vm0, %v9991_v41  ;;  %v2263_v41 = vld [vmem:[#allocation5 + $0x1b8] sm:$0xff] }
 0x197   : > { %7729 = vmatprep.mubr.msk.f32.mxu0 %vm469_vm0, %v9994_v42  ;;  %v12369_v42 = vld [vmem:[#allocation33_spill] sm:$0xff] }
 0x19a   : > { %7730 = vmatmul.mubr.msk.f32.gmra.mrb[14].mxu0 %vm469_vm0, %v10001_v43  ;;  %v8696_v43 = vpack.c.bf16 %v2263_v41, %v2262_v40  ;;  %v2526_v41 = vld [vmem:[#allocation5 + $0x1e0] sm:$0xff] }
 0x19b   : > { %7732 = vmatprep.mubr.msk.f32.mxu0 %vm469_vm0, %v10004_v44  ;;  %v2522_v44 = vld [vmem:[#allocation5 + $0x1c0] sm:$0xff] }
 0x19e   : > { %7733 = vmatmul.mubr.msk.f32.gmra.mrb[16].mxu0 %vm469_vm0, %v10011_v45  ;;  %v2523_v45 = vld [vmem:[#allocation5 + $0x1c8] sm:$0xff] }
 0x19f   : > { %7735 = vmatprep.mubr.msk.f32.mxu0 %vm469_vm0, %v10014_v46  ;;  %v12370_v46 = vld [vmem:[#allocation34_spill] sm:$0xff] }
 0x1a2   : > { %7736 = vmatmul.mubr.msk.f32.gmra.mrb[18].mxu0 %vm469_vm0, %v10021_v47  ;;  %v12371_v47 = vld [vmem:[#allocation35_spill] sm:$0xff] }
 0x1a3   : > { %7738 = vmatprep.mubr.msk.f32.mxu0 %vm469_vm0, %v10024_v48  ;;  %v12372_v48 = vld [vmem:[#allocation36_spill] sm:$0xff] }
 0x1a6   : > { %7739 = vmatmul.mubr.msk.f32.gmra.mrb[20].mxu0 %vm469_vm0, %v10031_v49  ;;  %v12373_v49 = vld [vmem:[#allocation37_spill] sm:$0xff] }
 0x1a7   : > { %7741 = vmatprep.mubr.msk.f32.mxu0 %vm469_vm0, %v10034_v50  ;;  %v12374_v50 = vld [vmem:[#allocation38_spill] sm:$0xff] }
 0x1aa   : > { %7742 = vmatmul.mubr.msk.f32.gmra.mrb[22].mxu0 %vm469_vm0, %v10041_v51  ;;  %v12375_v51 = vld [vmem:[#allocation39_spill] sm:$0xff] }
 0x1ab   : > { %7744 = vmatprep.mubr.msk.f32.mxu0 %vm469_vm0, %v10044_v52  ;;  %v12376_v52 = vld [vmem:[#allocation40_spill] sm:$0xff] }
 0x1ae   : > { %7745 = vmatmul.mubr.msk.f32.gmra.mrb[24].mxu0 %vm469_vm0, %v10051_v53 }
 0x1af   : > { %7747 = vmatprep.mubr.msk.f32.mxu0 %vm469_vm0, %v10054_v54 }
 0x1b2   : > { %7748 = vmatmul.mubr.msk.f32.gmra.mrb[26].mxu0 %vm469_vm0, %v10061_v55 }
 0x1b3   : > { %7750 = vmatprep.mubr.msk.f32.mxu0 %vm469_vm0, %v10064_v56 }
 0x1b6   : > { %7751 = vmatmul.mubr.msk.f32.gmra.mrb[28].mxu0 %vm469_vm0, %v10074_v58 }
 0x1b7   : > { %7753 = vmatprep.mubr.msk.f32.mxu0 %vm469_vm0, %v10539_v16 }
 0x1ba   : > { %7754 = vmatmul.mubr.msk.f32.gmra.mrb[30].mxu0 %vm469_vm0, %v10547_v63 }
 0x1bb   : > { %7772 = vmatprep.mubr.msk.f32.mxu0 %vm469_vm0, %v12368_v35 }
 0x1be   : > { %7773 = vmatmul.mubr.msk.f32.vlgmr.msra.gmra.mrb[0].mxu0 %vm469_vm0, %v10300_v22  ;;  %v8700_v22 = vpack.c.bf16 %v2523_v45, %v2522_v44  ;;  %v2528_v45 = vld [vmem:[#allocation5 + $0x1f0] sm:$0xff] }
 0x1bf   : > { %8687 = vmatpush3.bf16.msra.mxu0 %v8684_v30  ;;  %7775 = vmatprep.mubr.msk.f32.mxu0 %vm469_vm0, %v10303_v25  ;;  %v1981_v30 = vrot.slane %v10539_v16, 1 }
 0x1c0   : > { %8689 = vmatprep.subr.bf16.mxu0 %v8688_v36 }
 0x1c1   : > { %v10692_v35 = vsel %vm1044_vm2, %v1981_v30, %v1982_v28  ;;  %v2529_v30 = vld [vmem:[#allocation5 + $0x1f8] sm:$0xff] }
 0x1c2   : > { %7776 = vmatmul.mubr.msk.f32.gmra.mrb[2].mxu0 %vm469_vm0, %v10313_v26 }
 0x1c3   : > { %7778 = vmatprep.mubr.msk.f32.mxu0 %vm469_vm0, %v12369_v42  ;;  %8691 = vmatpush3.bf16.msra.mxu0 %v8688_v36  ;;  %v12390_v36 = vld [vmem:[#allocation30_spill] sm:$0xff] }
 0x1c4   : > { %8693 = vmatprep.subr.bf16.mxu0 %v8692_v39  ;;  %v10700_v37 = vsel %vm1044_vm2, %v1982_v28, %v12390_v36  ;;  %v2788_v28 = vld [vmem:[#allocation5 + $0x200] sm:$0xff] }
 0x1c6   : > { %7779 = vmatmul.mubr.msk.f32.gmra.mrb[4].mxu0 %vm469_vm0, %v10326_v0 }
 0x1c7   : > { %7781 = vmatprep.mubr.msk.f32.mxu0 %vm469_vm0, %v10329_v27  ;;  %8695 = vmatpush3.bf16.msra.mxu0 %v8692_v39  ;;  %v2525_v39 = vld [vmem:[#allocation5 + $0x1d8] sm:$0xff] }
 0x1c8   : > { %8697 = vmatprep.subr.bf16.mxu0 %v8696_v43  ;;  %v8704_v40 = vpack.c.bf16 %v2525_v39, %v2524_v38  ;;  %v2789_v38 = vld [vmem:[#allocation5 + $0x208] sm:$0xff] }
 0x1c9   : > { %v12405_v39 = vld [vmem:[#allocation17_spill] sm:$0xff] }
 0x1ca   : > { %7782 = vmatmul.mubr.msk.f32.gmra.mrb[6].mxu0 %vm469_vm0, %v10341_v57 }
 0x1cb   : > { %7784 = vmatprep.mubr.msk.f32.mxu0 %vm469_vm0, %v12370_v46  ;;  %8699 = vmatpush3.bf16.msra.mxu0 %v8696_v43  ;;  %v2527_v43 = vld [vmem:[#allocation5 + $0x1e8] sm:$0xff] }
 0x1cc   : > { %8701 = vmatprep.subr.bf16.mxu0 %v8700_v22  ;;  %v8708_v44 = vpack.c.bf16 %v2527_v43, %v2526_v41  ;;  %v2791_v41 = vld [vmem:[#allocation5 + $0x218] sm:$0xff]  ;;  %v3262_v43 = vld [vmem:[#allocation7 + $0x40] sm:$0xff] }
 0x1ce   : > { %7785 = vmatmul.mubr.msk.f32.gmra.mrb[8].mxu0 %vm469_vm0, %v12371_v47 }
 0x1cf   : > { %7787 = vmatprep.mubr.msk.f32.mxu0 %vm469_vm0, %v12372_v48 }
 0x1d2   : > { %7788 = vmatmul.mubr.msk.f32.gmra.mrb[10].mxu0 %vm469_vm0, %v12373_v49 }
 0x1d3   : > { %7790 = vmatprep.mubr.msk.f32.mxu0 %vm469_vm0, %v12374_v50 }
 0x1d6   : > { %7791 = vmatmul.mubr.msk.f32.gmra.mrb[12].mxu0 %vm469_vm0, %v12375_v51 }
 0x1d7   : > { %7793 = vmatprep.mubr.msk.f32.mxu0 %vm469_vm0, %v12376_v52 }
 0x1da   : > { %7794 = vmatmul.mubr.msk.f32.gmra.mrb[14].mxu0 %vm469_vm0, %v12377_v17 }
 0x1db   : > { %7796 = vmatprep.mubr.msk.f32.mxu0 %vm469_vm0, %v12378_v60 }
 0x1de   : > { %7797 = vmatmul.mubr.msk.f32.gmra.mrb[16].mxu0 %vm469_vm0, %v12379_v4 }
 0x1df   : > { %7799 = vmatprep.mubr.msk.f32.mxu0 %vm469_vm0, %v12380_v8 }
 0x1e2   : > { %7800 = vmatmul.mubr.msk.f32.gmra.mrb[18].mxu0 %vm469_vm0, %v12381_v10 }
 0x1e3   : > { %7802 = vmatprep.mubr.msk.f32.mxu0 %vm469_vm0, %v12382_v13 }
 0x1e6   : > { %7803 = vmatmul.mubr.msk.f32.gmra.mrb[20].mxu0 %vm469_vm0, %v12383_v23 }
 0x1e7   : > { %7805 = vmatprep.mubr.msk.f32.mxu0 %vm469_vm0, %v12384_v34 }
 0x1ea   : > { %7806 = vmatmul.mubr.msk.f32.gmra.mrb[22].mxu0 %vm469_vm0, %v12385_v2 }
 0x1eb   : > { %7808 = vmatprep.mubr.msk.f32.mxu0 %vm469_vm0, %v12386_v32 }
 0x1ee   : > { %7809 = vmatmul.mubr.msk.f32.gmra.mrb[24].mxu0 %vm469_vm0, %v12387_v5 }
 0x1ef   : > { %7811 = vmatprep.mubr.msk.f32.mxu0 %vm469_vm0, %v12388_v21 }
 0x1f2   : > { %7812 = vmatmul.mubr.msk.f32.gmra.mrb[26].mxu0 %vm469_vm0, %v10472_v19 }
 0x1f3   : > { %7814 = vmatprep.mubr.msk.f32.mxu0 %vm469_vm0, %v12389_v33 }
 0x1f6   : > { %7815 = vmatmul.mubr.msk.f32.gmra.mrb[28].mxu0 %vm469_vm0, %v10483_v62 }
 0x1f7   : > { %7817 = vmatprep.mubr.msk.f32.mxu0 %vm469_vm0, %v10692_v35 }
 0x1fa   : > { %7818 = vmatmul.mubr.msk.f32.gmra.mrb[30].mxu0 %vm469_vm0, %v10700_v37 }
 0x1fb   : > { %7836 = vmatprep.mubr.msk.f32.mxu0 %vm469_vm0, %v10098_v7  ;;  %v8712_v7 = vpack.c.bf16 %v2529_v30, %v2528_v45  ;;  %v3264_v45 = vld [vmem:[#allocation7 + $0x50] sm:$0xff] }
 0x1fc   : > { %v9460_v30 = vld [vmem:[%s9909_s13 + $0x10] sm:$0xff] }
 0x1fe   : > { %7837 = vmatmul.mubr.msk.f32.vlgmr.msra.gmra.mrb[0].mxu0 %vm469_vm0, %v10106_v12  ;;  %v8716_v12 = vpack.c.bf16 %v2789_v38, %v2788_v28  ;;  %v3265_v28 = vld [vmem:[#allocation7 + $0x58] sm:$0xff] }
 0x1ff   : > { %8703 = vmatpush3.bf16.msra.mxu0 %v8700_v22  ;;  %7839 = vmatprep.mubr.msk.f32.mxu0 %vm469_vm0, %v10111_v14  ;;  %v12391_v14 = vld [vmem:[#allocation18_spill] sm:$0xff] }
 0x200   : > { %8705 = vmatprep.subr.bf16.mxu0 %v8704_v40  ;;  %v12404_v22 = vld [vmem:[#allocation54_spill] sm:$0xff] }
 0x202   : > { %7840 = vmatmul.mubr.msk.f32.gmra.mrb[2].mxu0 %vm469_vm0, %v10119_v20  ;;  %v12392_v20 = vld [vmem:[#allocation19_spill] sm:$0xff] }
 0x203   : > { %7842 = vmatprep.mubr.msk.f32.mxu0 %vm469_vm0, %v10124_v24  ;;  %8707 = vmatpush3.bf16.msra.mxu0 %v8704_v40  ;;  %v12393_v24 = vld [vmem:[#allocation20_spill] sm:$0xff]  ;;  %v2790_v40 = vld [vmem:[#allocation5 + $0x210] sm:$0xff] }
 0x204   : > { %8709 = vmatprep.subr.bf16.mxu0 %v8708_v44  ;;  %v8720_v38 = vpack.c.bf16 %v2791_v41, %v2790_v40  ;;  %v9467_v40 = vld [vmem:[%s9909_s13 + $0x48] sm:$0xff]  ;;  %v9468_v41 = vld [vmem:[%s9909_s13 + $0x50] sm:$0xff] }
 0x206   : > { %7843 = vmatmul.mubr.msk.f32.gmra.mrb[4].mxu0 %vm469_vm0, %v10134_v29  ;;  %v12394_v29 = vld [vmem:[#allocation21_spill] sm:$0xff] }
 0x207   : > { %7845 = vmatprep.mubr.msk.f32.mxu0 %vm469_vm0, %v10139_v31  ;;  %8711 = vmatpush3.bf16.msra.mxu0 %v8708_v44  ;;  %v12395_v31 = vld [vmem:[#allocation22_spill] sm:$0xff]  ;;  %v3263_v44 = vld [vmem:[#allocation7 + $0x48] sm:$0xff] }
 0x208   : > { %8713 = vmatprep.subr.bf16.mxu0 %v8712_v7 }
 0x20a   : > { %7846 = vmatmul.mubr.msk.f32.gmra.mrb[6].mxu0 %vm469_vm0, %v10148_v59  ;;  %v12396_v59 = vld [vmem:[#allocation23_spill] sm:$0xff] }
 0x20b   : > { %7848 = vmatprep.mubr.msk.f32.mxu0 %vm469_vm0, %v10153_v61  ;;  %8715 = vmatpush3.bf16.msra.mxu0 %v8712_v7  ;;  %v12397_v61 = vld [vmem:[#allocation24_spill] sm:$0xff]  ;;  %v8732_v7 = vpack.c.bf16 %v3263_v44, %v3262_v43  ;;  %v9469_v43 = vld [vmem:[%s9909_s13 + $0x58] sm:$0xff] }
 0x20c   : > { %8717 = vmatprep.subr.bf16.mxu0 %v8716_v12  ;;  %v9470_v44 = vld [vmem:[%s9909_s13 + $0x60] sm:$0xff] }
 0x20d   : > { %8733 = vmatprep.subr.bf16.mxu1 %v8732_v7 }
 0x20e   : > { %7849 = vmatmul.mubr.msk.f32.gmra.mrb[8].mxu0 %vm469_vm0, %v10161_v1  ;;  %v12398_v1 = vld [vmem:[#allocation25_spill] sm:$0xff]  ;;  %8735 = vmatpush3.bf16.msra.mxu1 %v8732_v7  ;;  %v9473_v7 = vld [vmem:[%s9909_s13 + $0x78] sm:$0xff] }
 0x20f   : > { %7851 = vmatprep.mubr.msk.f32.mxu0 %vm469_vm0, %v10166_v3  ;;  %v12399_v3 = vld [vmem:[#allocation26_spill] sm:$0xff] }
 0x212   : > { %7852 = vmatmul.mubr.msk.f32.gmra.mrb[10].mxu0 %vm469_vm0, %v10174_v6  ;;  %v12400_v6 = vld [vmem:[#allocation27_spill] sm:$0xff] }
 0x213   : > { %7854 = vmatprep.mubr.msk.f32.mxu0 %vm469_vm0, %v10179_v9  ;;  %v12401_v9 = vld [vmem:[#allocation28_spill] sm:$0xff] }
 0x216   : > { %7855 = vmatmul.mubr.msk.f32.gmra.mrb[12].mxu0 %vm469_vm0, %v10187_v11  ;;  %v12402_v11 = vld [vmem:[#allocation29_spill] sm:$0xff] }
 0x217   : > { %7857 = vmatprep.mubr.msk.f32.mxu0 %vm469_vm0, %v10192_v15  ;;  %v12403_v15 = vld [vmem:[#allocation31_spill] sm:$0xff] }
 0x21a   : > { %7858 = vmatmul.mubr.msk.f32.gmra.mrb[14].mxu0 %vm469_vm0, %v12391_v14  ;;  %v8736_v14 = vpack.c.bf16 %v3265_v28, %v3264_v45  ;;  %v9471_v45 = vld [vmem:[%s9909_s13 + $0x68] sm:$0xff]  ;;  %v9474_v28 = vld [vmem:[%s9909_s13 + $0x80] sm:$0xff] }
 0x21b   : > { %7860 = vmatprep.mubr.msk.f32.mxu0 %vm469_vm0, %v12392_v20  ;;  %v2793_v20 = vld [vmem:[#allocation5 + $0x228] sm:$0xff] }
 0x21c   : > { %8737 = vmatprep.subr.bf16.mxu1 %v8736_v14 }
 0x21d   : > { %8739 = vmatpush3.bf16.msra.mxu1 %v8736_v14  ;;  %v9477_v14 = vld [vmem:[%s9909_s13 + $0x98] sm:$0xff] }
 0x21e   : > { %7861 = vmatmul.mubr.msk.f32.gmra.mrb[16].mxu0 %vm469_vm0, %v12393_v24  ;;  %v3266_v24 = vld [vmem:[#allocation7 + $0x60] sm:$0xff] }
 0x21f   : > { %7863 = vmatprep.mubr.msk.f32.mxu0 %vm469_vm0, %v12394_v29  ;;  %v3267_v29 = vld [vmem:[#allocation7 + $0x68] sm:$0xff] }
 0x222   : > { %7864 = vmatmul.mubr.msk.f32.gmra.mrb[18].mxu0 %vm469_vm0, %v12395_v31  ;;  %v9461_v31 = vld [vmem:[%s9909_s13 + $0x18] sm:$0xff] }
 0x223   : > { %7866 = vmatprep.mubr.msk.f32.mxu0 %vm469_vm0, %v12396_v59  ;;  %v9462_v59 = vld [vmem:[%s9909_s13 + $0x20] sm:$0xff] }
 0x226   : > { %7867 = vmatmul.mubr.msk.f32.gmra.mrb[20].mxu0 %vm469_vm0, %v12397_v61 }
 0x227   : > { %7869 = vmatprep.mubr.msk.f32.mxu0 %vm469_vm0, %v12398_v1  ;;  %v8740_v1 = vpack.c.bf16 %v3267_v29, %v3266_v24  ;;  %v9479_v24 = vld [vmem:[%s9909_s13 + $0xa8] sm:$0xff]  ;;  %v9480_v29 = vld [vmem:[%s9909_s13 + $0xb0] sm:$0xff] }
 0x229   : > { %8741 = vmatprep.subr.bf16.mxu1 %v8740_v1 }
 0x22a   : > { %7870 = vmatmul.mubr.msk.f32.gmra.mrb[22].mxu0 %vm469_vm0, %v12399_v3  ;;  %v2794_v3 = vld [vmem:[#allocation5 + $0x230] sm:$0xff]  ;;  %8743 = vmatpush3.bf16.msra.mxu1 %v8740_v1 }
 0x22b   : > { %7872 = vmatprep.mubr.msk.f32.mxu0 %vm469_vm0, %v12400_v6  ;;  %v2795_v6 = vld [vmem:[#allocation5 + $0x238] sm:$0xff] }
 0x22e   : > { %7873 = vmatmul.mubr.msk.f32.gmra.mrb[24].mxu0 %vm469_vm0, %v12401_v9  ;;  %v9463_v9 = vld [vmem:[%s9909_s13 + $0x28] sm:$0xff] }
 0x22f   : > { %7875 = vmatprep.mubr.msk.f32.mxu0 %vm469_vm0, %v12402_v11  ;;  %v9464_v11 = vld [vmem:[%s9909_s13 + $0x30] sm:$0xff] }
 0x232   : > { %7876 = vmatmul.mubr.msk.f32.gmra.mrb[26].mxu0 %vm469_vm0, %v12403_v15  ;;  %v9465_v15 = vld [vmem:[%s9909_s13 + $0x38] sm:$0xff] }
 0x233   : > { %7878 = vmatprep.mubr.msk.f32.mxu0 %vm469_vm0, %v12404_v22  ;;  %v9466_v22 = vld [vmem:[%s9909_s13 + $0x40] sm:$0xff] }
 0x236   : > { %7879 = vmatmul.mubr.msk.f32.gmra.mrb[28].mxu0 %vm469_vm0, %v10563_v18  ;;  %v2792_v18 = vld [vmem:[#allocation5 + $0x220] sm:$0xff] }
 0x237   : > { %7881 = vmatprep.mubr.msk.f32.mxu0 %vm469_vm0, %v12405_v39  ;;  %v8724_v61 = vpack.c.bf16 %v2793_v20, %v2792_v18  ;;  %v9476_v18 = vld [vmem:[%s9909_s13 + $0x90] sm:$0xff]  ;;  %v9478_v20 = vld [vmem:[%s9909_s13 + $0xa0] sm:$0xff] }
 0x23a   : > { %7882 = vmatmul.mubr.msk.f32.gmra.mrb[30].mxu0 %vm469_vm0, %v12405_v39 }
 0x23b   : > { %7900 = vmatprep.mubr.msk.f32.mxu0 %vm469_vm0, %v9460_v30  ;;  %v9472_v30 = vld [vmem:[%s9909_s13 + $0x70] sm:$0xff] }
 0x23e   : > { %7901 = vmatmul.mubr.msk.f32.vlgmr.msra.gmra.mrb[0].mxu0 %vm469_vm0, %v9461_v31  ;;  %v9481_v31 = vld [vmem:[%s9909_s13 + $0xb8] sm:$0xff] }
 0x23f   : > { %8719 = vmatpush3.bf16.msra.mxu0 %v8716_v12  ;;  %7903 = vmatprep.mubr.msk.f32.mxu0 %vm469_vm0, %v9462_v59  ;;  %v8728_v12 = vpack.c.bf16 %v2795_v6, %v2794_v3  ;;  %v9482_v59 = vld [vmem:[%s9909_s13 + $0xc0] sm:$0xff] }
 0x240   : > { %8721 = vmatprep.subr.bf16.mxu0 %v8720_v38 }
 0x242   : > { %7904 = vmatmul.mubr.msk.f32.gmra.mrb[2].mxu0 %vm469_vm0, %v9463_v9 }
 0x243   : > { %7906 = vmatprep.mubr.msk.f32.mxu0 %vm469_vm0, %v9464_v11  ;;  %8723 = vmatpush3.bf16.msra.mxu0 %v8720_v38  ;;  %v9475_v38 = vld [vmem:[%s9909_s13 + $0x88] sm:$0xff] }
 0x244   : > { %8725 = vmatprep.subr.bf16.mxu0 %v8724_v61 }
 0x246   : > { %7907 = vmatmul.mubr.msk.f32.gmra.mrb[4].mxu0 %vm469_vm0, %v9465_v15 }
 0x247   : > { %7909 = vmatprep.mubr.msk.f32.mxu0 %vm469_vm0, %v9466_v22  ;;  %8727 = vmatpush3.bf16.msra.mxu0 %v8724_v61  ;;  %v12406_v61 = vmov 0.0  }
 0x248   : > { %8729 = vmatprep.subr.bf16.mxu0 %v8728_v12 }
 0x24a   : > { %7910 = vmatmul.mubr.msk.f32.gmra.mrb[6].mxu0 %vm469_vm0, %v9467_v40 }
 0x24b   : > { %7912 = vmatprep.mubr.msk.f32.mxu0 %vm469_vm0, %v9468_v41  ;;  %8731 = vmatpush3.bf16.msra.mxu0 %v8728_v12 }
 0x24e   : > { %7913 = vmatmul.mubr.msk.f32.gmra.mrb[8].mxu0 %vm469_vm0, %v9469_v43 }
 0x24f   : > { %7915 = vmatprep.mubr.msk.f32.mxu0 %vm469_vm0, %v9470_v44 }
 0x252   : > { %7916 = vmatmul.mubr.msk.f32.gmra.mrb[10].mxu0 %vm469_vm0, %v9471_v45 }
 0x253   : > { %7918 = vmatprep.mubr.msk.f32.mxu0 %vm469_vm0, %v9472_v30 }
 0x256   : > { %7919 = vmatmul.mubr.msk.f32.gmra.mrb[12].mxu0 %vm469_vm0, %v9473_v7 }
 0x257   : > { %7921 = vmatprep.mubr.msk.f32.mxu0 %vm469_vm0, %v9474_v28 }
 0x25a   : > { %7922 = vmatmul.mubr.msk.f32.gmra.mrb[14].mxu0 %vm469_vm0, %v9475_v38 }
 0x25b   : > { %7924 = vmatprep.mubr.msk.f32.mxu0 %vm469_vm0, %v9476_v18 }
 0x25e   : > { %7925 = vmatmul.mubr.msk.f32.gmra.mrb[16].mxu0 %vm469_vm0, %v9477_v14 }
 0x25f   : > { %7927 = vmatprep.mubr.msk.f32.mxu0 %vm469_vm0, %v9478_v20 }
 0x262   : > { %7928 = vmatmul.mubr.msk.f32.gmra.mrb[18].mxu0 %vm469_vm0, %v9479_v24 }
 0x263   : > { %7930 = vmatprep.mubr.msk.f32.mxu0 %vm469_vm0, %v9480_v29 }
 0x266   : > { %7931 = vmatmul.mubr.msk.f32.gmra.mrb[20].mxu0 %vm469_vm0, %v9481_v31 }
 0x267   : > { %7933 = vmatprep.mubr.msk.f32.mxu0 %vm469_vm0, %v9482_v59 }
 0x26a   : > { %7934 = vmatmul.mubr.msk.f32.gmra.mrb[22].mxu0 %vm469_vm0, %v10051_v53  ;;  %v3268_v53 = vld [vmem:[#allocation7 + $0x70] sm:$0xff] }
 0x26b   : > { %7936 = vmatprep.mubr.msk.f32.mxu0 %vm469_vm0, %v10054_v54  ;;  %v3269_v54 = vld [vmem:[#allocation7 + $0x78] sm:$0xff] }
 0x26e   : > { %7937 = vmatmul.mubr.msk.f32.gmra.mrb[24].mxu0 %vm469_vm0, %v10061_v55  ;;  %v8744_v55 = vpack.c.bf16 %v3269_v54, %v3268_v53 }
 0x26f   : > { %7939 = vmatprep.mubr.msk.f32.mxu0 %vm469_vm0, %v10064_v56  ;;  %v3253_v56 = vld [vmem:[#allocation7] sm:$0xff] }
 0x270   : > { %8745 = vmatprep.subr.bf16.mxu1 %v8744_v55 }
 0x271   : > { %8747 = vmatpush3.bf16.msra.mxu1 %v8744_v55 }
 0x272   : > { %7940 = vmatmul.mubr.msk.f32.gmra.mrb[26].mxu0 %vm469_vm0, %v10074_v58  ;;  %v3254_v58 = vld [vmem:[#allocation7 + $0x8] sm:$0xff] }
 0x273   : > { %7942 = vmatprep.mubr.msk.f32.mxu0 %vm469_vm0, %v10539_v16  ;;  %v3259_v16 = vld [vmem:[#allocation7 + $0x30] sm:$0xff] }
 0x274   : > { %8029 = vmatmul.mubr.f32.vlgmr.msra.gmra.mrb[0].mxu1 %v12406_v61 }
 0x276   : > { %7943 = vmatmul.mubr.msk.f32.gmra.mrb[28].mxu0 %vm469_vm0, %v10547_v63  ;;  %v3260_v63 = vld [vmem:[#allocation7 + $0x38] sm:$0xff] }
 0x277   : > { %7945 = vmatprep.mubr.f32.mxu0 %v12406_v61 }
 0x27a   : > { %7946 = vmatmul.mubr.f32.gmra.mrb[30].mxu0 %v12406_v61 }
 0x27b   : > { %7964 = vmatprep.mubr.msk.f32.mxu0 %vm469_vm0, %v10303_v25  ;;  %v8748_v25 = vpack.c.bf16 %v3254_v58, %v3253_v56 }
 0x27d   : > { %8749 = vmatprep.subr.bf16.mxu1 %v8748_v25 }
 0x27e   : > { %7965 = vmatmul.mubr.msk.f32.vlgmr.msra.gmra.mrb[0].mxu0 %vm469_vm0, %v10313_v26  ;;  %8751 = vmatpush3.bf16.msra.mxu1 %v8748_v25  ;;  %v3255_v26 = vld [vmem:[#allocation7 + $0x10] sm:$0xff] }
 0x27f   : > { %7967 = vmatprep.mubr.msk.f32.mxu0 %vm469_vm0, %v12369_v42  ;;  %v8760_v42 = vpack.c.bf16 %v3260_v63, %v3259_v16 }
 0x282   : > { %7968 = vmatmul.mubr.msk.f32.gmra.mrb[2].mxu0 %vm469_vm0, %v10326_v0  ;;  %v3256_v0 = vld [vmem:[#allocation7 + $0x18] sm:$0xff] }
 0x283   : > { %7970 = vmatprep.mubr.msk.f32.mxu0 %vm469_vm0, %v10329_v27  ;;  %v8752_v27 = vpack.c.bf16 %v3256_v0, %v3255_v26 }
 0x285   : > { %8753 = vmatprep.subr.bf16.mxu1 %v8752_v27 }
 0x286   : > { %7971 = vmatmul.mubr.msk.f32.gmra.mrb[4].mxu0 %vm469_vm0, %v10341_v57  ;;  %8755 = vmatpush3.bf16.msra.mxu1 %v8752_v27  ;;  %v3257_v57 = vld [vmem:[#allocation7 + $0x20] sm:$0xff] }
 0x287   : > { %7973 = vmatprep.mubr.msk.f32.mxu0 %vm469_vm0, %v12370_v46  ;;  %v3901_v46 = vld [vmem:[#allocation7 + $0x80] sm:$0xff] }
 0x28a   : > { %7974 = vmatmul.mubr.msk.f32.gmra.mrb[6].mxu0 %vm469_vm0, %v12371_v47  ;;  %v3902_v47 = vld [vmem:[#allocation7 + $0x88] sm:$0xff] }
 0x28b   : > { %7976 = vmatprep.mubr.msk.f32.mxu0 %vm469_vm0, %v12372_v48  ;;  %v10895_v48 = vpack.c.bf16 %v3902_v47, %v3901_v46 }
 0x28e   : > { %7977 = vmatmul.mubr.msk.f32.gmra.mrb[8].mxu0 %vm469_vm0, %v12373_v49  ;;  %v10901_v49 = vld [vmem:[%s12136_s2] ss:$0 sm:$0xff] }
 0x28f   : > { %7979 = vmatprep.mubr.msk.f32.mxu0 %vm469_vm0, %v12374_v50 }
 0x292   : > { %7980 = vmatmul.mubr.msk.f32.gmra.mrb[10].mxu0 %vm469_vm0, %v12375_v51  ;;  %v10906_v51 = vld [vmem:[%s12137_s3] ss:$0 sm:$0xff] }
 0x293   : > { %7982 = vmatprep.mubr.msk.f32.mxu0 %vm469_vm0, %v12376_v52 }
 0x296   : > { %7983 = vmatmul.mubr.msk.f32.gmra.mrb[12].mxu0 %vm469_vm0, %v12377_v17 }
 0x297   : > { %7985 = vmatprep.mubr.msk.f32.mxu0 %vm469_vm0, %v12378_v60 }
 0x29a   : > { %7986 = vmatmul.mubr.msk.f32.gmra.mrb[14].mxu0 %vm469_vm0, %v12379_v4 }
 0x29b   : > { %7988 = vmatprep.mubr.msk.f32.mxu0 %vm469_vm0, %v12380_v8 }
 0x29e   : > { %7989 = vmatmul.mubr.msk.f32.gmra.mrb[16].mxu0 %vm469_vm0, %v12381_v10 }
 0x29f   : > { %7991 = vmatprep.mubr.msk.f32.mxu0 %vm469_vm0, %v12382_v13 }
 0x2a2   : > { %7992 = vmatmul.mubr.msk.f32.gmra.mrb[18].mxu0 %vm469_vm0, %v12383_v23 }
 0x2a3   : > { %7994 = vmatprep.mubr.msk.f32.mxu0 %vm469_vm0, %v12384_v34 }
 0x2a6   : > { %7995 = vmatmul.mubr.msk.f32.gmra.mrb[20].mxu0 %vm469_vm0, %v12385_v2 }
 0x2a7   : > { %7997 = vmatprep.mubr.msk.f32.mxu0 %vm469_vm0, %v12386_v32 }
 0x2aa   : > { %7998 = vmatmul.mubr.msk.f32.gmra.mrb[22].mxu0 %vm469_vm0, %v12387_v5 }
 0x2ab   : > { %8000 = vmatprep.mubr.msk.f32.mxu0 %vm469_vm0, %v12388_v21 }
 0x2ae   : > { %8001 = vmatmul.mubr.msk.f32.gmra.mrb[24].mxu0 %vm469_vm0, %v10472_v19  ;;  %v3258_v19 = vld [vmem:[#allocation7 + $0x28] sm:$0xff] }
 0x2af   : > { %8003 = vmatprep.mubr.msk.f32.mxu0 %vm469_vm0, %v12389_v33 }
 0x2b2   : > { %8004 = vmatmul.mubr.msk.f32.gmra.mrb[26].mxu0 %vm469_vm0, %v10483_v62  ;;  %v8756_v62 = vpack.c.bf16 %v3258_v19, %v3257_v57 }
 0x2b3   : > { %8006 = vmatprep.mubr.msk.f32.mxu0 %vm469_vm0, %v10692_v35 }
 0x2b4   : > { %8757 = vmatprep.subr.bf16.mxu1 %v8756_v62 }
 0x2b5   : > { %8759 = vmatpush3.bf16.msra.mxu1 %v8756_v62 }
 0x2b6   : > { %8007 = vmatmul.mubr.msk.f32.gmra.mrb[28].mxu0 %vm469_vm0, %v10700_v37  ;;  %8761 = vmatprep.subr.bf16.mxu1 %v8760_v42 }
 0x2b7   : > { %8009 = vmatprep.mubr.msk.f32.mxu0 %vm469_vm0, %v12390_v36 }
 0x2b9   : > { %8763 = vmatpush3.bf16.msra.mxu1 %v8760_v42 }
 0x2ba   : > { %8010 = vmatmul.mubr.msk.f32.gmra.mrb[30].mxu0 %vm469_vm0, %v12390_v36  ;;  %8765 = vmatprep.subr.bf16.mxu1 %v10895_v48 }
 0x351   : > { %v7966_v50 = vpop.f32.mrb[0].mxu0 }
 0x352   : > { %v3061_v52 = vmul.f32 %v7966_v50, %v10901_v49  ;;  %v2862_v17 = vpop.f32.mrb[1].mxu0 }
 0x353   : > { %v3060_v60 = vmul.f32 %v10901_v49, %v2862_v17 }
 0x354   : > { %v3100_v4 = vadd.f32 %v10906_v51, %v3061_v52 }
 0x355   : > { %v3099_v8 = vadd.f32 %v10906_v51, %v3060_v60  ;;  %v7969_v10 = vpop.f32.mrb[2].mxu0 }
 0x356   : > { %v3063_v13 = vmul.f32 %v7969_v10, %v10901_v49  ;;  %v2872_v23 = vpop.f32.mrb[3].mxu0  ;;  %v10916_v32 = vmax.f32 %v3100_v4, 0.0 }
 0x357   : > { %v10913_v34 = vmax.f32 %v3099_v8, 0.0  ;;  %v3062_v2 = vmul.f32 %v10901_v49, %v2872_v23 }
 0x358   : > { %12408 = vst [vmem:[#allocation13_spill] sm:$0xff] %v10916_v32  ;;  %v3102_v5 = vadd.f32 %v10906_v51, %v3063_v13 }
 0x359   : > { %12407 = vst [vmem:[#allocation12_spill] sm:$0xff] %v10913_v34  ;;  %v3101_v21 = vadd.f32 %v10906_v51, %v3062_v2  ;;  %v7972_v33 = vpop.f32.mrb[4].mxu0  ;;  %8031 = vmatprep.mubr.msk.f32.mxu1 %vm469_vm0, %v10913_v34 }
 0x35a   : > { %v3065_v35 = vmul.f32 %v7972_v33, %v10901_v49  ;;  %v2882_v37 = vpop.f32.mrb[5].mxu0  ;;  %8032 = vmatmul.mubr.msk.f32.gmra.mrb[2].mxu1 %vm469_vm0, %v10916_v32  ;;  %v10928_v6 = vmax.f32 %v3102_v5, 0.0 }
 0x35b   : > { %v10925_v1 = vmax.f32 %v3101_v21, 0.0  ;;  %v3064_v3 = vmul.f32 %v10901_v49, %v2882_v37 }
 0x35c   : > { %12409 = vst [vmem:[#allocation14_spill] sm:$0xff] %v10928_v6  ;;  %v3104_v9 = vadd.f32 %v10906_v51, %v3065_v35 }
 0x35d   : > { %v3103_v11 = vadd.f32 %v10906_v51, %v3064_v3  ;;  %v7975_v12 = vpop.f32.mrb[6].mxu0  ;;  %8034 = vmatprep.mubr.msk.f32.mxu1 %vm469_vm0, %v10925_v1 }
 0x35e   : > { %v3067_v15 = vmul.f32 %v7975_v12, %v10901_v49  ;;  %v2892_v22 = vpop.f32.mrb[7].mxu0  ;;  %8035 = vmatmul.mubr.msk.f32.gmra.mrb[4].mxu1 %vm469_vm0, %v10928_v6  ;;  %v10940_v43 = vmax.f32 %v3104_v9, 0.0 }
 0x35f   : > { %v10937_v40 = vmax.f32 %v3103_v11, 0.0  ;;  %v3066_v41 = vmul.f32 %v10901_v49, %v2892_v22 }
 0x360   : > { %12410 = vst [vmem:[#allocation15_spill] sm:$0xff] %v10940_v43  ;;  %v3106_v44 = vadd.f32 %v10906_v51, %v3067_v15 }
 0x361   : > { %v3105_v45 = vadd.f32 %v10906_v51, %v3066_v41  ;;  %v7978_v30 = vpop.f32.mrb[8].mxu0  ;;  %8037 = vmatprep.mubr.msk.f32.mxu1 %vm469_vm0, %v10937_v40 }
 0x362   : > { %v3069_v7 = vmul.f32 %v7978_v30, %v10901_v49  ;;  %v2902_v28 = vpop.f32.mrb[9].mxu0  ;;  %8038 = vmatmul.mubr.msk.f32.gmra.mrb[6].mxu1 %vm469_vm0, %v10940_v43  ;;  %v10952_v14 = vmax.f32 %v3106_v44, 0.0 }
 0x363   : > { %v10949_v38 = vmax.f32 %v3105_v45, 0.0  ;;  %v3068_v18 = vmul.f32 %v10901_v49, %v2902_v28 }
 0x364   : > { %v3108_v20 = vadd.f32 %v10906_v51, %v3069_v7 }
 0x365   : > { %v3107_v24 = vadd.f32 %v10906_v51, %v3068_v18  ;;  %v7981_v29 = vpop.f32.mrb[10].mxu0  ;;  %8040 = vmatprep.mubr.msk.f32.mxu1 %vm469_vm0, %v10949_v38 }
 0x366   : > { %v3071_v31 = vmul.f32 %v7981_v29, %v10901_v49  ;;  %v2912_v59 = vpop.f32.mrb[11].mxu0  ;;  %8041 = vmatmul.mubr.msk.f32.gmra.mrb[8].mxu1 %vm469_vm0, %v10952_v14  ;;  %v10964_v55 = vmax.f32 %v3108_v20, 0.0 }
 0x367   : > { %v10961_v53 = vmax.f32 %v3107_v24, 0.0  ;;  %v3070_v54 = vmul.f32 %v10901_v49, %v2912_v59 }
 0x368   : > { %v3110_v56 = vadd.f32 %v10906_v51, %v3071_v31 }
 0x369   : > { %v3109_v58 = vadd.f32 %v10906_v51, %v3070_v54  ;;  %v7984_v25 = vpop.f32.mrb[12].mxu0  ;;  %8043 = vmatprep.mubr.msk.f32.mxu1 %vm469_vm0, %v10961_v53 }
 0x36a   : > { %v3073_v26 = vmul.f32 %v7984_v25, %v10901_v49  ;;  %v2922_v0 = vpop.f32.mrb[13].mxu0  ;;  %8044 = vmatmul.mubr.msk.f32.gmra.mrb[10].mxu1 %vm469_vm0, %v10964_v55  ;;  %v10976_v19 = vmax.f32 %v3110_v56, 0.0 }
 0x36b   : > { %v10973_v27 = vmax.f32 %v3109_v58, 0.0  ;;  %v3072_v57 = vmul.f32 %v10901_v49, %v2922_v0 }
 0x36c   : > { %v3112_v62 = vadd.f32 %v10906_v51, %v3073_v26 }
 0x36d   : > { %v3111_v16 = vadd.f32 %v10906_v51, %v3072_v57  ;;  %v7987_v63 = vpop.f32.mrb[14].mxu0  ;;  %8046 = vmatprep.mubr.msk.f32.mxu1 %vm469_vm0, %v10973_v27 }
 0x36e   : > { %v3075_v42 = vmul.f32 %v7987_v63, %v10901_v49  ;;  %v2932_v46 = vpop.f32.mrb[15].mxu0  ;;  %8047 = vmatmul.mubr.msk.f32.gmra.mrb[12].mxu1 %vm469_vm0, %v10976_v19  ;;  %v10988_v52 = vmax.f32 %v3112_v62, 0.0 }
 0x36f   : > { %v10985_v47 = vmax.f32 %v3111_v16, 0.0  ;;  %v3074_v50 = vmul.f32 %v10901_v49, %v2932_v46 }
 0x370   : > { %v3114_v17 = vadd.f32 %v10906_v51, %v3075_v42 }
 0x371   : > { %v3113_v60 = vadd.f32 %v10906_v51, %v3074_v50  ;;  %v7990_v4 = vpop.f32.mrb[16].mxu0  ;;  %8049 = vmatprep.mubr.msk.f32.mxu1 %vm469_vm0, %v10985_v47 }
 0x372   : > { %v3077_v8 = vmul.f32 %v7990_v4, %v10901_v49  ;;  %v2942_v10 = vpop.f32.mrb[17].mxu0  ;;  %8050 = vmatmul.mubr.msk.f32.gmra.mrb[14].mxu1 %vm469_vm0, %v10988_v52  ;;  %v11000_v2 = vmax.f32 %v3114_v17, 0.0 }
 0x373   : > { %v10997_v13 = vmax.f32 %v3113_v60, 0.0  ;;  %v3076_v23 = vmul.f32 %v10901_v49, %v2942_v10 }
 0x374   : > { %v3116_v5 = vadd.f32 %v10906_v51, %v3077_v8 }
 0x375   : > { %v3115_v21 = vadd.f32 %v10906_v51, %v3076_v23  ;;  %v7993_v33 = vpop.f32.mrb[18].mxu0  ;;  %8052 = vmatprep.mubr.msk.f32.mxu1 %vm469_vm0, %v10997_v13 }
 0x376   : > { %v3079_v35 = vmul.f32 %v7993_v33, %v10901_v49  ;;  %v2952_v37 = vpop.f32.mrb[19].mxu0  ;;  %8053 = vmatmul.mubr.msk.f32.gmra.mrb[16].mxu1 %vm469_vm0, %v11000_v2  ;;  %v11012_v11 = vmax.f32 %v3116_v5, 0.0 }
 0x377   : > { %v11009_v3 = vmax.f32 %v3115_v21, 0.0  ;;  %v3078_v9 = vmul.f32 %v10901_v49, %v2952_v37 }
 0x378   : > { %v3118_v12 = vadd.f32 %v10906_v51, %v3079_v35 }
 0x379   : > { %v3117_v15 = vadd.f32 %v10906_v51, %v3078_v9  ;;  %v7996_v22 = vpop.f32.mrb[20].mxu0  ;;  %8055 = vmatprep.mubr.msk.f32.mxu1 %vm469_vm0, %v11009_v3 }
 0x37a   : > { %v3081_v41 = vmul.f32 %v7996_v22, %v10901_v49  ;;  %v2962_v44 = vpop.f32.mrb[21].mxu0  ;;  %8056 = vmatmul.mubr.msk.f32.gmra.mrb[18].mxu1 %vm469_vm0, %v11012_v11  ;;  %v11024_v7 = vmax.f32 %v3118_v12, 0.0 }
 0x37b   : > { %v11021_v45 = vmax.f32 %v3117_v15, 0.0  ;;  %v3080_v30 = vmul.f32 %v10901_v49, %v2962_v44 }
 0x37c   : > { %v3120_v28 = vadd.f32 %v10906_v51, %v3081_v41 }
 0x37d   : > { %v3119_v18 = vadd.f32 %v10906_v51, %v3080_v30  ;;  %v7999_v20 = vpop.f32.mrb[22].mxu0  ;;  %8058 = vmatprep.mubr.msk.f32.mxu1 %vm469_vm0, %v11021_v45 }
 0x37e   : > { %v3083_v24 = vmul.f32 %v7999_v20, %v10901_v49  ;;  %v2972_v29 = vpop.f32.mrb[23].mxu0  ;;  %8059 = vmatmul.mubr.msk.f32.gmra.mrb[20].mxu1 %vm469_vm0, %v11024_v7  ;;  %v11036_v54 = vmax.f32 %v3120_v28, 0.0 }
 0x37f   : > { %v11033_v31 = vmax.f32 %v3119_v18, 0.0  ;;  %v3082_v59 = vmul.f32 %v10901_v49, %v2972_v29  ;;  %v3903_v29 = vld [vmem:[#allocation7 + $0x90] sm:$0xff] }
 0x380   : > { %v3122_v56 = vadd.f32 %v10906_v51, %v3083_v24 }
 0x381   : > { %v3121_v58 = vadd.f32 %v10906_v51, %v3082_v59  ;;  %v8002_v25 = vpop.f32.mrb[24].mxu0  ;;  %8061 = vmatprep.mubr.msk.f32.mxu1 %vm469_vm0, %v11033_v31  ;;  %v3904_v59 = vld [vmem:[#allocation7 + $0x98] sm:$0xff] }
 0x382   : > { %v3085_v26 = vmul.f32 %v8002_v25, %v10901_v49  ;;  %v2982_v0 = vpop.f32.mrb[25].mxu0  ;;  %8062 = vmatmul.mubr.msk.f32.gmra.mrb[22].mxu1 %vm469_vm0, %v11036_v54  ;;  %v11048_v16 = vmax.f32 %v3122_v56, 0.0  ;;  %v3193_v56 = vrot.slane %v10913_v34, 7  ;;  %v3905_v25 = vld [vmem:[#allocation7 + $0xa0] sm:$0xff] }
 0x383   : > { %v11045_v57 = vmax.f32 %v3121_v58, 0.0  ;;  %v3084_v62 = vmul.f32 %v10901_v49, %v2982_v0  ;;  %v3195_v58 = vrot.slane %v10916_v32, 7  ;;  %v3197_v0 = vrot.slane %v10925_v1, 7 }
 0x384   : > { %v3124_v63 = vadd.f32 %v10906_v51, %v3085_v26  ;;  %v3906_v26 = vld [vmem:[#allocation7 + $0xa8] sm:$0xff] }
 0x385   : > { %v3123_v42 = vadd.f32 %v10906_v51, %v3084_v62  ;;  %v8005_v46 = vpop.f32.mrb[26].mxu0  ;;  %8064 = vmatprep.mubr.msk.f32.mxu1 %vm469_vm0, %v11045_v57  ;;  %v8772_v62 = vpack.c.bf16 %v3906_v26, %v3905_v25  ;;  %v3217_v26 = vrot.slane %v10985_v47, 7 }
 0x386   : > { %v3087_v50 = vmul.f32 %v8005_v46, %v10901_v49  ;;  %v2992_v17 = vpop.f32.mrb[27].mxu0  ;;  %8065 = vmatmul.mubr.msk.f32.gmra.mrb[24].mxu1 %vm469_vm0, %v11048_v16  ;;  %v11060_v8 = vmax.f32 %v3124_v63, 0.0  ;;  %v11111_v63 = vsel %vm389_vm1, %v3193_v56, %v3195_v58  ;;  %v3907_v46 = vld [vmem:[#allocation7 + $0xb0] sm:$0xff]  ;;  %v3215_v58 = vrot.slane %v10976_v19, 7 }
 0x387   : > { %v11057_v60 = vmax.f32 %v3123_v42, 0.0  ;;  %v3086_v4 = vmul.f32 %v10901_v49, %v2992_v17  ;;  %v3199_v42 = vrot.slane %v10928_v6, 7  ;;  %v11118_v17 = vsel %vm389_vm1, %v12405_v39, %v3197_v0 }
 0x388   : > { %v3126_v10 = vadd.f32 %v10906_v51, %v3087_v50  ;;  %v3908_v50 = vld [vmem:[#allocation7 + $0xb8] sm:$0xff] }
 0x389   : > { %v3125_v23 = vadd.f32 %v10906_v51, %v3086_v4  ;;  %v8008_v5 = vpop.f32.mrb[28].mxu0  ;;  %8067 = vmatprep.mubr.msk.f32.mxu1 %vm469_vm0, %v11057_v60  ;;  %v3201_v4 = vrot.slane %v10937_v40, 7 }
 0x38a   : > { %v3089_v21 = vmul.f32 %v8008_v5, %v10901_v49  ;;  %v3002_v33 = vpop.f32.mrb[29].mxu0  ;;  %8068 = vmatmul.mubr.msk.f32.gmra.mrb[26].mxu1 %vm469_vm0, %v11060_v8  ;;  %v11072_v9 = vmax.f32 %v3126_v10, 0.0  ;;  %v11124_v10 = vsel %vm389_vm1, %v3197_v0, %v3199_v42  ;;  %v4233_v5 = vld [vmem:[#allocation7 + $0xc0] sm:$0xff]  ;;  %v11186_v42 = vsel %vm389_vm1, %v12405_v39, %v3217_v26 }
 0x38b   : > { %v11069_v35 = vmax.f32 %v3125_v23, 0.0  ;;  %v3088_v37 = vmul.f32 %v10901_v49, %v3002_v33  ;;  %v3203_v23 = vrot.slane %v10940_v43, 7  ;;  %v11131_v33 = vsel %vm389_vm1, %v12405_v39, %v3201_v4 }
 0x38c   : > { %v3128_v12 = vadd.f32 %v10906_v51, %v3089_v21  ;;  %v4234_v21 = vld [vmem:[#allocation7 + $0xc8] sm:$0xff] }
 0x38d   : > { %v3127_v15 = vadd.f32 %v10906_v51, %v3088_v37  ;;  %v8011_v22 = vpop.f32.mrb[30].mxu0  ;;  %8070 = vmatprep.mubr.msk.f32.mxu1 %vm469_vm0, %v11069_v35  ;;  %v3205_v37 = vrot.slane %v10949_v38, 7 }
 0x38e   : > { %v3091_v41 = vmul.f32 %v8011_v22, %v10901_v49  ;;  %v3012_v44 = vpop.f32.mrb[31].mxu0  ;;  %8071 = vmatmul.mubr.msk.f32.gmra.mrb[28].mxu1 %vm469_vm0, %v11072_v9  ;;  %v11084_v18 = vmax.f32 %v3128_v12, 0.0  ;;  %v11136_v12 = vpack.c.bf16 %v4234_v21, %v4233_v5  ;;  %v3207_v22 = vrot.slane %v10952_v14, 7 }
 0x38f   : > { %v11081_v30 = vmax.f32 %v3127_v15, 0.0  ;;  %v3090_v28 = vmul.f32 %v10901_v49, %v3012_v44  ;;  %v8768_v49 = vpack.c.bf16 %v3904_v59, %v3903_v29  ;;  %v11139_v15 = vsel %vm389_vm1, %v3201_v4, %v3203_v23 }
 0x390   : > { %12411 = vst [vmem:[#allocation16_spill] sm:$0xff] %v11084_v18  ;;  %v11087_v20 = vadd.f32 %v10906_v51, %v3091_v41  ;;  %v11146_v41 = vsel %vm389_vm1, %v12405_v39, %v3205_v37  ;;  %v3209_v44 = vrot.slane %v10961_v53, 7  ;;  %v3211_v29 = vrot.slane %v10964_v55, 7 }
 0x391   : > { %v11090_v24 = vadd.f32 %v10906_v51, %v3090_v28  ;;  %8073 = vmatprep.mubr.msk.f32.mxu1 %vm469_vm0, %v11081_v30  ;;  %v11104_v51 = vsel %vm389_vm1, %v12405_v39, %v3193_v56  ;;  %v11153_v28 = vsel %vm389_vm1, %v3205_v37, %v3207_v22  ;;  %v3213_v56 = vrot.slane %v10973_v27, 7 }
 0x392   : > { %12412 = vst [vmem:[#allocation32_spill] sm:$0xff] %v11087_v20  ;;  %8074 = vmatmul.mubr.msk.f32.gmra.mrb[30].mxu1 %vm469_vm0, %v11084_v18  ;;  %v11160_v59 = vsel %vm389_vm1, %v12405_v39, %v3209_v44  ;;  %v3223_v4 = vrot.slane %v11000_v2, 7  ;;  %v3225_v23 = vrot.slane %v11009_v3, 7  ;;  %v3227_v21 = vrot.slane %v11012_v11, 7 }
 0x393   : > { %12413 = vst [vmem:[#allocation33_spill] sm:$0xff] %v11090_v24  ;;  %8092 = vmatprep.mubr.msk.f32.mxu1 %vm469_vm0, %v12405_v39  ;;  %v11173_v25 = vsel %vm389_vm1, %v12405_v39, %v3213_v56  ;;  %v11179_v0 = vsel %vm389_vm1, %v3213_v56, %v3215_v58  ;;  %v3229_v22 = vrot.slane %v11021_v45, 7  ;;  %v3233_v58 = vrot.slane %v11033_v31, 7 }
 0x394   : > { %v11212_v37 = vsel %vm389_vm1, %v12405_v39, %v3225_v23  ;;  %v3245_v20 = vrot.slane %v11069_v35, 7 }
 0x395   : > { %v11225_v56 = vsel %vm389_vm1, %v12405_v39, %v3229_v22 }
 0x396   : > { %8093 = vmatmul.mubr.msk.f32.vlgmr.msra.gmra.mrb[0].mxu1 %vm469_vm0, %v12405_v39  ;;  %12414 = vst [vmem:[#allocation34_spill] sm:$0xff] %v11225_v56 }
 0x397   : > { %8095 = vmatprep.mubr.msk.f32.mxu1 %vm469_vm0, %v11104_v51  ;;  %8767 = vmatpush3.bf16.msra.mxu1 %v10895_v48  ;;  %v8776_v48 = vpack.c.bf16 %v3908_v50, %v3907_v46  ;;  %v3221_v46 = vrot.slane %v10997_v13, 7 }
 0x398   : > { %8769 = vmatprep.subr.bf16.mxu1 %v8768_v49 }
 0x399   : > { %v11205_v5 = vsel %vm389_vm1, %v3221_v46, %v3223_v4  ;;  %v3237_v4 = vrot.slane %v11045_v57, 7 }
 0x39a   : > { %8096 = vmatmul.mubr.msk.f32.gmra.mrb[2].mxu1 %vm469_vm0, %v11111_v63 }
 0x39b   : > { %8098 = vmatprep.mubr.msk.f32.mxu1 %vm469_vm0, %v11118_v17  ;;  %8771 = vmatpush3.bf16.msra.mxu1 %v8768_v49  ;;  %v11166_v49 = vsel %vm389_vm1, %v3209_v44, %v3211_v29  ;;  %v11218_v44 = vsel %vm389_vm1, %v3225_v23, %v3227_v21  ;;  %v3231_v29 = vrot.slane %v11024_v7, 7  ;;  %v3239_v21 = vrot.slane %v11048_v16, 7 }
 0x39c   : > { %8773 = vmatprep.subr.bf16.mxu1 %v8772_v62 }
 0x39d   : > { %v11257_v61 = vsel %vm389_vm1, %v3237_v4, %v3239_v21  ;;  %v11277_v21 = vsel %vm389_vm1, %v12405_v39, %v3245_v20 }
 0x39e   : > { %8099 = vmatmul.mubr.msk.f32.gmra.mrb[4].mxu1 %vm469_vm0, %v11124_v10  ;;  %12419 = vst [vmem:[#allocation39_spill] sm:$0xff] %v11257_v61  ;;  %12422 = vst [vmem:[#allocation42_spill] sm:$0xff] %v11277_v21 }
 0x39f   : > { %8101 = vmatprep.mubr.msk.f32.mxu1 %vm469_vm0, %v11131_v33  ;;  %8775 = vmatpush3.bf16.msra.mxu1 %v8772_v62  ;;  %v3219_v62 = vrot.slane %v10988_v52, 7 }
 0x3a0   : > { %8777 = vmatprep.subr.bf16.mxu1 %v8776_v48 }
 0x3a1   : > { %v11192_v50 = vsel %vm389_vm1, %v3217_v26, %v3219_v62  ;;  %v11231_v26 = vsel %vm389_vm1, %v3229_v22, %v3231_v29  ;;  %v3235_v62 = vrot.slane %v11036_v54, 7  ;;  %v11251_v22 = vsel %vm389_vm1, %v12405_v39, %v3237_v4 }
 0x3a2   : > { %8102 = vmatmul.mubr.msk.f32.gmra.mrb[6].mxu1 %vm469_vm0, %v11139_v15  ;;  %12415 = vst [vmem:[#allocation35_spill] sm:$0xff] %v11231_v26  ;;  %12418 = vst [vmem:[#allocation38_spill] sm:$0xff] %v11251_v22  ;;  %v3241_v29 = vrot.slane %v11057_v60, 7  ;;  %v3247_v4 = vrot.slane %v11072_v9, 7 }
 0x3a3   : > { %8104 = vmatprep.mubr.msk.f32.mxu1 %vm469_vm0, %v11146_v41  ;;  %8779 = vmatpush3.bf16.msra.mxu1 %v8776_v48  ;;  %v11199_v48 = vsel %vm389_vm1, %v12405_v39, %v3221_v46  ;;  %v11238_v46 = vsel %vm389_vm1, %v12405_v39, %v3233_v58  ;;  %v11244_v23 = vsel %vm389_vm1, %v3233_v58, %v3235_v62  ;;  %v3243_v58 = vrot.slane %v11060_v8, 7 }
 0x3a4   : > { %8781 = vmatprep.subr.bf16.mxu1 %v11136_v12  ;;  %12416 = vst [vmem:[#allocation36_spill] sm:$0xff] %v11238_v46  ;;  %12417 = vst [vmem:[#allocation37_spill] sm:$0xff] %v11244_v23  ;;  %v11264_v62 = vsel %vm389_vm1, %v12405_v39, %v3241_v29 }
 0x3a5   : > { %12420 = vst [vmem:[#allocation40_spill] sm:$0xff] %v11264_v62  ;;  %v11270_v24 = vsel %vm389_vm1, %v3241_v29, %v3243_v58  ;;  %v3251_v29 = vrot.slane %v11084_v18, 7 }
 0x3a6   : > { %8105 = vmatmul.mubr.msk.f32.gmra.mrb[8].mxu1 %vm469_vm0, %v11153_v28  ;;  %12421 = vst [vmem:[#allocation41_spill] sm:$0xff] %v11270_v24 }
 0x3a7   : > { %8107 = vmatprep.mubr.msk.f32.mxu1 %vm469_vm0, %v11160_v59 }
 0x3aa   : > { %8108 = vmatmul.mubr.msk.f32.gmra.mrb[10].mxu1 %vm469_vm0, %v11166_v49 }
 0x3ab   : > { %8110 = vmatprep.mubr.msk.f32.mxu1 %vm469_vm0, %v11173_v25 }
 0x3ae   : > { %8111 = vmatmul.mubr.msk.f32.gmra.mrb[12].mxu1 %vm469_vm0, %v11179_v0 }
 0x3af   : > { %8113 = vmatprep.mubr.msk.f32.mxu1 %vm469_vm0, %v11186_v42 }
 0x3b2   : > { %8114 = vmatmul.mubr.msk.f32.gmra.mrb[14].mxu1 %vm469_vm0, %v11192_v50 }
 0x3b3   : > { %8116 = vmatprep.mubr.msk.f32.mxu1 %vm469_vm0, %v11199_v48 }
 0x3b6   : > { %8117 = vmatmul.mubr.msk.f32.gmra.mrb[16].mxu1 %vm469_vm0, %v11205_v5 }
 0x3b7   : > { %8119 = vmatprep.mubr.msk.f32.mxu1 %vm469_vm0, %v11212_v37 }
 0x3ba   : > { %8120 = vmatmul.mubr.msk.f32.gmra.mrb[18].mxu1 %vm469_vm0, %v11218_v44 }
 0x3bb   : > { %8122 = vmatprep.mubr.msk.f32.mxu1 %vm469_vm0, %v11225_v56 }
 0x3be   : > { %8123 = vmatmul.mubr.msk.f32.gmra.mrb[20].mxu1 %vm469_vm0, %v11231_v26 }
 0x3bf   : > { %8125 = vmatprep.mubr.msk.f32.mxu1 %vm469_vm0, %v11238_v46 }
 0x3c2   : > { %8126 = vmatmul.mubr.msk.f32.gmra.mrb[22].mxu1 %vm469_vm0, %v11244_v23  ;;  %v4238_v23 = vld [vmem:[#allocation7 + $0xe8] sm:$0xff] }
 0x3c3   : > { %8128 = vmatprep.mubr.msk.f32.mxu1 %vm469_vm0, %v11251_v22  ;;  %v11283_v22 = vsel %vm389_vm1, %v3245_v20, %v3247_v4  ;;  %v3840_v20 = vrot.slane %v10913_v34, 1  ;;  %v3841_v4 = vrot.slane %v10916_v32, 1  ;;  %v4240_v34 = vld [vmem:[#allocation7 + $0xf8] sm:$0xff] }
 0x3c4   : > { %12423 = vst [vmem:[#allocation43_spill] sm:$0xff] %v11283_v22 }
 0x3c6   : > { %8129 = vmatmul.mubr.msk.f32.gmra.mrb[24].mxu1 %vm469_vm0, %v11257_v61  ;;  %v3249_v61 = vrot.slane %v11081_v30, 7 }
 0x3c7   : > { %8131 = vmatprep.mubr.msk.f32.mxu1 %vm469_vm0, %v11264_v62  ;;  %v4235_v62 = vld [vmem:[#allocation7 + $0xd0] sm:$0xff] }
 0x3c8   : > { %v11290_v58 = vsel %vm389_vm1, %v12405_v39, %v3249_v61 }
 0x3c9   : > { %12424 = vst [vmem:[#allocation44_spill] sm:$0xff] %v11290_v58 }
 0x3ca   : > { %8132 = vmatmul.mubr.msk.f32.gmra.mrb[26].mxu1 %vm469_vm0, %v11270_v24  ;;  %v11295_v24 = vsel %vm389_vm1, %v3249_v61, %v3251_v29  ;;  %v11306_v61 = vsel %vm1044_vm2, %v3840_v20, %v3841_v4  ;;  %v3844_v29 = vrot.slane %v10925_v1, 1 }
 0x3cb   : > { %8134 = vmatprep.mubr.msk.f32.mxu1 %vm469_vm0, %v11277_v21  ;;  %12425 = vst [vmem:[#allocation45_spill] sm:$0xff] %v11295_v24  ;;  %v4236_v21 = vld [vmem:[#allocation7 + $0xd8] sm:$0xff]  ;;  %12426 = vst [vmem:[#allocation46_spill] sm:$0xff] %v11306_v61 }
 0x3cc   : > { %v8784_v39 = vpack.c.bf16 %v4236_v21, %v4235_v62  ;;  %v11315_v62 = vsel %vm1044_vm2, %v3841_v4, %v12390_v36  ;;  %v4239_v21 = vld [vmem:[#allocation7 + $0xf0] sm:$0xff]  ;;  %v4504_v4 = vld [vmem:[#allocation7 + $0x108] sm:$0xff] }
 0x3cd   : > { %12427 = vst [vmem:[#allocation47_spill] sm:$0xff] %v11315_v62 }
 0x3ce   : > { %8135 = vmatmul.mubr.msk.f32.gmra.mrb[28].mxu1 %vm469_vm0, %v11283_v22  ;;  %v4237_v22 = vld [vmem:[#allocation7 + $0xe0] sm:$0xff] }
 0x3cf   : > { %8137 = vmatprep.mubr.msk.f32.mxu1 %vm469_vm0, %v11290_v58  ;;  %v8788_v32 = vpack.c.bf16 %v4238_v23, %v4237_v22  ;;  %v4503_v22 = vld [vmem:[#allocation7 + $0x100] sm:$0xff] }
 0x3d2   : > { %8138 = vmatmul.mubr.msk.f32.gmra.mrb[30].mxu1 %vm469_vm0, %v11295_v24  ;;  %v3845_v24 = vrot.slane %v10928_v6, 1  ;;  %v3848_v6 = vrot.slane %v10937_v40, 1 }
 0x3d3   : > { %8156 = vmatprep.mubr.msk.f32.mxu1 %vm469_vm0, %v12390_v36 }
 0x3d4   : > { %v11320_v20 = vsel %vm1044_vm2, %v3844_v29, %v3845_v24  ;;  %v11328_v23 = vsel %vm1044_vm2, %v3845_v24, %v12390_v36  ;;  %v3856_v24 = vrot.slane %v10961_v53, 1 }
 0x3d6   : > { %8157 = vmatmul.mubr.msk.f32.vlgmr.msra.gmra.mrb[0].mxu1 %vm469_vm0, %v12390_v36 }
 0x3d7   : > { %8159 = vmatprep.mubr.msk.f32.mxu1 %vm469_vm0, %v11306_v61  ;;  %8783 = vmatpush3.bf16.msra.mxu1 %v11136_v12  ;;  %v3849_v61 = vrot.slane %v10940_v43, 1  ;;  %v8792_v12 = vpack.c.bf16 %v4240_v34, %v4239_v21  ;;  %v3853_v43 = vrot.slane %v10952_v14, 1  ;;  %v3857_v21 = vrot.slane %v10964_v55, 1 }
 0x3d8   : > { %8785 = vmatprep.subr.bf16.mxu1 %v8784_v39 }
 0x3d9   : > { %v11333_v29 = vsel %vm1044_vm2, %v3848_v6, %v3849_v61  ;;  %v11343_v34 = vsel %vm1044_vm2, %v3849_v61, %v12390_v36  ;;  %v11362_v61 = vsel %vm1044_vm2, %v3856_v24, %v3857_v21  ;;  %v3865_v24 = vrot.slane %v10988_v52, 1 }
 0x3da   : > { %8160 = vmatmul.mubr.msk.f32.gmra.mrb[2].mxu1 %vm469_vm0, %v11315_v62  ;;  %v3852_v62 = vrot.slane %v10949_v38, 1  ;;  %12429 = vst [vmem:[#allocation49_spill] sm:$0xff] %v11362_v61 }
 0x3db   : > { %8162 = vmatprep.mubr.msk.f32.mxu1 %vm469_vm0, %v11320_v20  ;;  %8787 = vmatpush3.bf16.msra.mxu1 %v8784_v39  ;;  %v11339_v39 = vpack.c.bf16 %v4504_v4, %v4503_v22  ;;  %v3861_v22 = vrot.slane %v10976_v19, 1  ;;  %v3864_v4 = vrot.slane %v10985_v47, 1 }
 0x3dc   : > { %8789 = vmatprep.subr.bf16.mxu1 %v8788_v32  ;;  %v11348_v6 = vsel %vm1044_vm2, %v3852_v62, %v3853_v43  ;;  %v3860_v62 = vrot.slane %v10973_v27, 1 }
 0x3de   : > { %8163 = vmatmul.mubr.msk.f32.gmra.mrb[4].mxu1 %vm469_vm0, %v11328_v23 }
 0x3df   : > { %8165 = vmatprep.mubr.msk.f32.mxu1 %vm469_vm0, %v11333_v29  ;;  %8791 = vmatpush3.bf16.msra.mxu1 %v8788_v32  ;;  %v11357_v32 = vsel %vm1044_vm2, %v3853_v43, %v12390_v36  ;;  %v11375_v43 = vsel %vm1044_vm2, %v3860_v62, %v3861_v22  ;;  %v3868_v62 = vrot.slane %v10997_v13, 1 }
 0x3e0   : > { %8793 = vmatprep.subr.bf16.mxu1 %v8792_v12  ;;  %12428 = vst [vmem:[#allocation48_spill] sm:$0xff] %v11357_v32  ;;  %12431 = vst [vmem:[#allocation51_spill] sm:$0xff] %v11375_v43 }
 0x3e2   : > { %8166 = vmatmul.mubr.msk.f32.gmra.mrb[6].mxu1 %vm469_vm0, %v11343_v34 }
 0x3e3   : > { %8168 = vmatprep.mubr.msk.f32.mxu1 %vm469_vm0, %v11348_v6  ;;  %8795 = vmatpush3.bf16.msra.mxu1 %v8792_v12  ;;  %v11370_v12 = vsel %vm1044_vm2, %v3857_v21, %v12390_v36  ;;  %v11388_v21 = vsel %vm1044_vm2, %v3864_v4, %v3865_v24  ;;  %v3872_v4 = vrot.slane %v11009_v3, 1 }
 0x3e4   : > { %8797 = vmatprep.subr.bf16.mxu1 %v11339_v39  ;;  %12430 = vst [vmem:[#allocation50_spill] sm:$0xff] %v11370_v12  ;;  %12433 = vst [vmem:[#allocation53_spill] sm:$0xff] %v11388_v21 }
 0x3e6   : > { %8169 = vmatmul.mubr.msk.f32.gmra.mrb[8].mxu1 %vm469_vm0, %v11357_v32  ;;  %v4506_v32 = vld [vmem:[#allocation7 + $0x118] sm:$0xff] }
 0x3e7   : > { %8171 = vmatprep.mubr.msk.f32.mxu1 %vm469_vm0, %v11362_v61  ;;  %v11383_v61 = vsel %vm1044_vm2, %v3861_v22, %v12390_v36 }
 0x3e8   : > { %12432 = vst [vmem:[#allocation52_spill] sm:$0xff] %v11383_v61 }
 0x3ea   : > { %8172 = vmatmul.mubr.msk.f32.gmra.mrb[10].mxu1 %vm469_vm0, %v11370_v12  ;;  %v3869_v12 = vrot.slane %v11000_v2, 1 }
 0x3eb   : > { %8174 = vmatprep.mubr.msk.f32.mxu1 %vm469_vm0, %v11375_v43  ;;  %v11396_v43 = vsel %vm1044_vm2, %v3865_v24, %v12390_v36 }
 0x3ec   : > { %12434 = vst [vmem:[#allocation18_spill] sm:$0xff] %v11396_v43  ;;  %v11401_v22 = vsel %vm1044_vm2, %v3868_v62, %v3869_v12  ;;  %v3876_v62 = vrot.slane %v11021_v45, 1 }
 0x3ed   : > { %12435 = vst [vmem:[#allocation19_spill] sm:$0xff] %v11401_v22 }
 0x3ee   : > { %8175 = vmatmul.mubr.msk.f32.gmra.mrb[12].mxu1 %vm469_vm0, %v11383_v61  ;;  %v3873_v61 = vrot.slane %v11012_v11, 1 }
 0x3ef   : > { %8177 = vmatprep.mubr.msk.f32.mxu1 %vm469_vm0, %v11388_v21  ;;  %v11409_v21 = vsel %vm1044_vm2, %v3869_v12, %v12390_v36 }
 0x3f0   : > { %12436 = vst [vmem:[#allocation20_spill] sm:$0xff] %v11409_v21  ;;  %v11414_v24 = vsel %vm1044_vm2, %v3872_v4, %v3873_v61  ;;  %v3880_v4 = vrot.slane %v11033_v31, 1 }
 0x3f1   : > { %12437 = vst [vmem:[#allocation21_spill] sm:$0xff] %v11414_v24 }
 0x3f2   : > { %8178 = vmatmul.mubr.msk.f32.gmra.mrb[14].mxu1 %vm469_vm0, %v11396_v43  ;;  %v3877_v43 = vrot.slane %v11024_v7, 1 }
 0x3f3   : > { %8180 = vmatprep.mubr.msk.f32.mxu1 %vm469_vm0, %v11401_v22  ;;  %v11422_v22 = vsel %vm1044_vm2, %v3873_v61, %v12390_v36 }
 0x3f4   : > { %12438 = vst [vmem:[#allocation22_spill] sm:$0xff] %v11422_v22  ;;  %v11427_v12 = vsel %vm1044_vm2, %v3876_v62, %v3877_v43  ;;  %v3884_v62 = vrot.slane %v11045_v57, 1 }
 0x3f5   : > { %12439 = vst [vmem:[#allocation23_spill] sm:$0xff] %v11427_v12 }
 0x3f6   : > { %8181 = vmatmul.mubr.msk.f32.gmra.mrb[16].mxu1 %vm469_vm0, %v11409_v21  ;;  %v3881_v21 = vrot.slane %v11036_v54, 1 }
 0x3f7   : > { %8183 = vmatprep.mubr.msk.f32.mxu1 %vm469_vm0, %v11414_v24  ;;  %v11435_v24 = vsel %vm1044_vm2, %v3877_v43, %v12390_v36 }
 0x3f8   : > { %12440 = vst [vmem:[#allocation24_spill] sm:$0xff] %v11435_v24  ;;  %v11440_v61 = vsel %vm1044_vm2, %v3880_v4, %v3881_v21  ;;  %v3888_v4 = vrot.slane %v11057_v60, 1 }
 0x3f9   : > { %12441 = vst [vmem:[#allocation25_spill] sm:$0xff] %v11440_v61 }
 0x3fa   : > { %8184 = vmatmul.mubr.msk.f32.gmra.mrb[18].mxu1 %vm469_vm0, %v11422_v22  ;;  %v3885_v22 = vrot.slane %v11048_v16, 1 }
 0x3fb   : > { %8186 = vmatprep.mubr.msk.f32.mxu1 %vm469_vm0, %v11427_v12  ;;  %v11448_v12 = vsel %vm1044_vm2, %v3881_v21, %v12390_v36 }
 0x3fc   : > { %12442 = vst [vmem:[#allocation26_spill] sm:$0xff] %v11448_v12  ;;  %v11453_v43 = vsel %vm1044_vm2, %v3884_v62, %v3885_v22  ;;  %v3892_v62 = vrot.slane %v11069_v35, 1 }
 0x3fd   : > { %12443 = vst [vmem:[#allocation27_spill] sm:$0xff] %v11453_v43 }
 0x3fe   : > { %8187 = vmatmul.mubr.msk.f32.gmra.mrb[20].mxu1 %vm469_vm0, %v11435_v24  ;;  %v3889_v24 = vrot.slane %v11060_v8, 1 }
 0x3ff   : > { %8189 = vmatprep.mubr.msk.f32.mxu1 %vm469_vm0, %v11440_v61  ;;  %v11461_v61 = vsel %vm1044_vm2, %v3885_v22, %v12390_v36 }
 0x400   : > { %12444 = vst [vmem:[#allocation28_spill] sm:$0xff] %v11461_v61  ;;  %v11466_v21 = vsel %vm1044_vm2, %v3888_v4, %v3889_v24  ;;  %v3896_v4 = vrot.slane %v11081_v30, 1 }
 0x401   : > { %12445 = vst [vmem:[#allocation29_spill] sm:$0xff] %v11466_v21 }
 0x402   : > { %8190 = vmatmul.mubr.msk.f32.gmra.mrb[22].mxu1 %vm469_vm0, %v11448_v12  ;;  %v3893_v12 = vrot.slane %v11072_v9, 1 }
 0x403   : > { %8192 = vmatprep.mubr.msk.f32.mxu1 %vm469_vm0, %v11453_v43  ;;  %v11474_v43 = vsel %vm1044_vm2, %v3889_v24, %v12390_v36 }
 0x404   : > { %12446 = vst [vmem:[#allocation31_spill] sm:$0xff] %v11474_v43  ;;  %v11479_v22 = vsel %vm1044_vm2, %v3892_v62, %v3893_v12 }
 0x405   : > { %12447 = vst [vmem:[#allocation54_spill] sm:$0xff] %v11479_v22 }
 0x406   : > { %8193 = vmatmul.mubr.msk.f32.gmra.mrb[24].mxu1 %vm469_vm0, %v11461_v61  ;;  %v3897_v61 = vrot.slane %v11084_v18, 1 }
 0x407   : > { %8195 = vmatprep.mubr.msk.f32.mxu1 %vm469_vm0, %v11466_v21  ;;  %v11487_v21 = vsel %vm1044_vm2, %v3893_v12, %v12390_v36 }
 0x408   : > { %12448 = vst [vmem:[#allocation55_spill] sm:$0xff] %v11487_v21  ;;  %v11492_v24 = vsel %vm1044_vm2, %v3896_v4, %v3897_v61  ;;  %v11498_v62 = vsel %vm1044_vm2, %v3897_v61, %v12390_v36  ;;  %v4509_v4 = vld [vmem:[#allocation7 + $0x130] sm:$0xff]  ;;  %v4510_v36 = vld [vmem:[#allocation7 + $0x138] sm:$0xff] }
 0x409   : > { %12449 = vst [vmem:[#allocation56_spill] sm:$0xff] %v11492_v24  ;;  %12450 = vst [vmem:[#allocation57_spill] sm:$0xff] %v11498_v62 }
 0x40a   : > { %8196 = vmatmul.mubr.msk.f32.gmra.mrb[26].mxu1 %vm469_vm0, %v11474_v43  ;;  %v4505_v43 = vld [vmem:[#allocation7 + $0x110] sm:$0xff] }
 0x40b   : > { %8198 = vmatprep.mubr.msk.f32.mxu1 %vm469_vm0, %v11479_v22  ;;  %v8800_v12 = vpack.c.bf16 %v4506_v32, %v4505_v43  ;;  %v4508_v22 = vld [vmem:[#allocation7 + $0x128] sm:$0xff]  ;;  %v4777_v32 = vld [vmem:[#allocation7 + $0x140] sm:$0xff]  ;;  %v12452_v43 = vld [vmem:[#allocation38_spill] sm:$0xff] }
 0x40e   : > { %8199 = vmatmul.mubr.msk.f32.gmra.mrb[28].mxu1 %vm469_vm0, %v11487_v21  ;;  %v4507_v21 = vld [vmem:[#allocation7 + $0x120] sm:$0xff] }
 0x40f   : > { %8201 = vmatprep.mubr.msk.f32.mxu1 %vm469_vm0, %v11492_v24  ;;  %v8804_v61 = vpack.c.bf16 %v4508_v22, %v4507_v21  ;;  %v12453_v21 = vld [vmem:[#allocation39_spill] sm:$0xff]  ;;  %v12454_v22 = vld [vmem:[#allocation40_spill] sm:$0xff] }
 0x412   : > { %8202 = vmatmul.mubr.msk.f32.gmra.mrb[30].mxu1 %vm469_vm0, %v11498_v62 }
 0x413   : > { %8220 = vmatprep.mubr.msk.f32.mxu1 %vm469_vm0, %v11104_v51  ;;  %v8808_v51 = vpack.c.bf16 %v4510_v36, %v4509_v4  ;;  %v12451_v36 = vld [vmem:[#allocation37_spill] sm:$0xff] }
 0x414   : > { %v12456_v4 = vld [vmem:[#allocation41_spill] sm:$0xff] }
 0x416   : > { %8221 = vmatmul.mubr.msk.f32.vlgmr.msra.gmra.mrb[0].mxu1 %vm469_vm0, %v11111_v63  ;;  %v4778_v63 = vld [vmem:[#allocation7 + $0x148] sm:$0xff] }
 0x417   : > { %8223 = vmatprep.mubr.msk.f32.mxu1 %vm469_vm0, %v11118_v17  ;;  %8799 = vmatpush3.bf16.msra.mxu1 %v11339_v39  ;;  %v8812_v39 = vpack.c.bf16 %v4778_v63, %v4777_v32  ;;  %v12458_v32 = vld [vmem:[#allocation32_spill] sm:$0xff] }
 0x418   : > { %8801 = vmatprep.subr.bf16.mxu1 %v8800_v12  ;;  %v11561_v63 = vmax.f32 %v12458_v32, 0.0 }
 0x41a   : > { %8224 = vmatmul.mubr.msk.f32.gmra.mrb[2].mxu1 %vm469_vm0, %v11124_v10 }
 0x41b   : > { %8226 = vmatprep.mubr.msk.f32.mxu1 %vm469_vm0, %v11131_v33  ;;  %8803 = vmatpush3.bf16.msra.mxu1 %v8800_v12  ;;  %v12455_v12 = vld [vmem:[#allocation33_spill] sm:$0xff] }
 0x41c   : > { %8805 = vmatprep.subr.bf16.mxu1 %v8804_v61 }
 0x41e   : > { %8227 = vmatmul.mubr.msk.f32.gmra.mrb[4].mxu1 %vm469_vm0, %v11139_v15 }
 0x41f   : > { %8229 = vmatprep.mubr.msk.f32.mxu1 %vm469_vm0, %v11146_v41  ;;  %8807 = vmatpush3.bf16.msra.mxu1 %v8804_v61  ;;  %v11554_v61 = vmax.f32 %v12455_v12, 0.0  ;;  %v4230_v12 = vrot.slane %v11561_v63, 7 }
 0x420   : > { %8809 = vmatprep.subr.bf16.mxu1 %v8808_v51 }
 0x422   : > { %8230 = vmatmul.mubr.msk.f32.gmra.mrb[6].mxu1 %vm469_vm0, %v11153_v28 }
 0x423   : > { %8232 = vmatprep.mubr.msk.f32.mxu1 %vm469_vm0, %v11160_v59  ;;  %8811 = vmatpush3.bf16.msra.mxu1 %v8808_v51  ;;  %v12457_v51 = vld [vmem:[#allocation42_spill] sm:$0xff] }
 0x424   : > { %8813 = vmatprep.subr.bf16.mxu1 %v8812_v39 }
 0x426   : > { %8233 = vmatmul.mubr.msk.f32.gmra.mrb[8].mxu1 %vm469_vm0, %v11166_v49 }
 0x427   : > { %8235 = vmatprep.mubr.msk.f32.mxu1 %vm469_vm0, %v11173_v25 }
 0x42a   : > { %8236 = vmatmul.mubr.msk.f32.gmra.mrb[10].mxu1 %vm469_vm0, %v11179_v0 }
 0x42b   : > { %8238 = vmatprep.mubr.msk.f32.mxu1 %vm469_vm0, %v11186_v42 }
 0x42e   : > { %8239 = vmatmul.mubr.msk.f32.gmra.mrb[12].mxu1 %vm469_vm0, %v11192_v50 }
 0x42f   : > { %8241 = vmatprep.mubr.msk.f32.mxu1 %vm469_vm0, %v11199_v48 }
 0x432   : > { %8242 = vmatmul.mubr.msk.f32.gmra.mrb[14].mxu1 %vm469_vm0, %v11205_v5 }
 0x433   : > { %8244 = vmatprep.mubr.msk.f32.mxu1 %vm469_vm0, %v11212_v37 }
 0x436   : > { %8245 = vmatmul.mubr.msk.f32.gmra.mrb[16].mxu1 %vm469_vm0, %v11218_v44 }
 0x437   : > { %8247 = vmatprep.mubr.msk.f32.mxu1 %vm469_vm0, %v11225_v56  ;;  %v12464_v56 = vld [vmem:[#allocation13_spill] sm:$0xff] }
 0x43a   : > { %8248 = vmatmul.mubr.msk.f32.gmra.mrb[18].mxu1 %vm469_vm0, %v11231_v26  ;;  %v4782_v26 = vld [vmem:[#allocation7 + $0x168] sm:$0xff] }
 0x43b   : > { %8250 = vmatprep.mubr.msk.f32.mxu1 %vm469_vm0, %v11238_v46 }
 0x43e   : > { %8251 = vmatmul.mubr.msk.f32.gmra.mrb[20].mxu1 %vm469_vm0, %v12451_v36  ;;  %v12459_v36 = vld [vmem:[#allocation43_spill] sm:$0xff] }
 0x43f   : > { %8253 = vmatprep.mubr.msk.f32.mxu1 %vm469_vm0, %v12452_v43 }
 0x442   : > { %8254 = vmatmul.mubr.msk.f32.gmra.mrb[22].mxu1 %vm469_vm0, %v12453_v21  ;;  %v4228_v21 = vrot.slane %v11554_v61, 7 }
 0x443   : > { %8256 = vmatprep.mubr.msk.f32.mxu1 %vm469_vm0, %v12454_v22  ;;  %v12460_v22 = vld [vmem:[#allocation45_spill] sm:$0xff] }
 0x444   : > { %v11578_v32 = vsel %vm389_vm1, %v4228_v21, %v4230_v12  ;;  %v4783_v12 = vld [vmem:[#allocation7 + $0x170] sm:$0xff] }
 0x446   : > { %8257 = vmatmul.mubr.msk.f32.gmra.mrb[24].mxu1 %vm469_vm0, %v12456_v4  ;;  %v12461_v4 = vld [vmem:[#allocation17_spill] sm:$0xff] }
 0x447   : > { %8259 = vmatprep.mubr.msk.f32.mxu1 %vm469_vm0, %v12457_v51  ;;  %v11573_v43 = vsel %vm389_vm1, %v12461_v4, %v4228_v21  ;;  %v4780_v51 = vld [vmem:[#allocation7 + $0x158] sm:$0xff] }
 0x448   : > { %12462 = vst [vmem:[#allocation33_spill] sm:$0xff] %v11573_v43  ;;  %v4784_v4 = vld [vmem:[#allocation7 + $0x178] sm:$0xff] }
 0x44a   : > { %8260 = vmatmul.mubr.msk.f32.gmra.mrb[26].mxu1 %vm469_vm0, %v12459_v36  ;;  %v4779_v36 = vld [vmem:[#allocation7 + $0x150] sm:$0xff] }
 0x44b   : > { %8262 = vmatprep.mubr.msk.f32.mxu1 %vm469_vm0, %v11290_v58  ;;  %v12463_v58 = vld [vmem:[#allocation12_spill] sm:$0xff]  ;;  %v8816_v46 = vpack.c.bf16 %v4780_v51, %v4779_v36  ;;  %v5048_v51 = vld [vmem:[#allocation7 + $0x188] sm:$0xff] }
 0x44c   : > { %v5047_v36 = vld [vmem:[#allocation7 + $0x180] sm:$0xff] }
 0x44e   : > { %8263 = vmatmul.mubr.msk.f32.gmra.mrb[28].mxu1 %vm469_vm0, %v12460_v22  ;;  %v4781_v22 = vld [vmem:[#allocation7 + $0x160] sm:$0xff] }
 0x44f   : > { %8265 = vmatprep.mubr.msk.f32.mxu1 %vm469_vm0, %v11573_v43  ;;  %v8820_v21 = vpack.c.bf16 %v4782_v26, %v4781_v22  ;;  %v12465_v43 = vld [vmem:[#allocation14_spill] sm:$0xff]  ;;  %v8828_v26 = vpack.c.bf16 %v5048_v51, %v5047_v36 }
 0x450   : > { %v12467_v22 = vld [vmem:[#allocation46_spill] sm:$0xff] }
 0x451   : > { %v5053_v51 = vld [vmem:[#allocation7 + $0x1b0] sm:$0xff] }
 0x452   : > { %8266 = vmatmul.mubr.msk.f32.gmra.mrb[30].mxu1 %vm469_vm0, %v11578_v32 }
 0x453   : > { %8284 = vmatprep.mubr.msk.f32.mxu1 %vm469_vm0, %v12463_v58  ;;  %v8824_v58 = vpack.c.bf16 %v4784_v4, %v4783_v12  ;;  %v5052_v12 = vld [vmem:[#allocation7 + $0x1a8] sm:$0xff] }
 0x456   : > { %8285 = vmatmul.mubr.msk.f32.vlgmr.msra.gmra.mrb[0].mxu1 %vm469_vm0, %v12464_v56  ;;  %v12466_v56 = vld [vmem:[#allocation15_spill] sm:$0xff] }
 0x457   : > { %8287 = vmatprep.mubr.msk.f32.mxu1 %vm469_vm0, %v10925_v1  ;;  %8815 = vmatpush3.bf16.msra.mxu1 %v8812_v39  ;;  %v5050_v39 = vld [vmem:[#allocation7 + $0x198] sm:$0xff] }
 0x458   : > { %8817 = vmatprep.subr.bf16.mxu1 %v8816_v46 }
 0x45a   : > { %8288 = vmatmul.mubr.msk.f32.gmra.mrb[2].mxu1 %vm469_vm0, %v12465_v43 }
 0x45b   : > { %8290 = vmatprep.mubr.msk.f32.mxu1 %vm469_vm0, %v10937_v40  ;;  %8819 = vmatpush3.bf16.msra.mxu1 %v8816_v46  ;;  %v5049_v46 = vld [vmem:[#allocation7 + $0x190] sm:$0xff] }
 0x45c   : > { %8821 = vmatprep.subr.bf16.mxu1 %v8820_v21  ;;  %v8832_v4 = vpack.c.bf16 %v5050_v39, %v5049_v46  ;;  %v5313_v39 = vld [vmem:[#allocation7 + $0x1c0] sm:$0xff] }
 0x45e   : > { %8291 = vmatmul.mubr.msk.f32.gmra.mrb[4].mxu1 %vm469_vm0, %v12466_v56 }
 0x45f   : > { %8293 = vmatprep.mubr.msk.f32.mxu1 %vm469_vm0, %v10949_v38  ;;  %8823 = vmatpush3.bf16.msra.mxu1 %v8820_v21  ;;  %v5051_v21 = vld [vmem:[#allocation7 + $0x1a0] sm:$0xff] }
 0x460   : > { %8825 = vmatprep.subr.bf16.mxu1 %v8824_v58  ;;  %v8836_v36 = vpack.c.bf16 %v5052_v12, %v5051_v21  ;;  %v12469_v21 = vld [vmem:[#allocation48_spill] sm:$0xff]  ;;  %v12470_v12 = vld [vmem:[#allocation49_spill] sm:$0xff] }
 0x462   : > { %8294 = vmatmul.mubr.msk.f32.gmra.mrb[6].mxu1 %vm469_vm0, %v10952_v14 }
 0x463   : > { %8296 = vmatprep.mubr.msk.f32.mxu1 %vm469_vm0, %v10961_v53  ;;  %8827 = vmatpush3.bf16.msra.mxu1 %v8824_v58  ;;  %v12468_v58 = vld [vmem:[#allocation47_spill] sm:$0xff] }
 0x464   : > { %8829 = vmatprep.subr.bf16.mxu1 %v8828_v26 }
 0x466   : > { %8297 = vmatmul.mubr.msk.f32.gmra.mrb[8].mxu1 %vm469_vm0, %v10964_v55 }
 0x467   : > { %8299 = vmatprep.mubr.msk.f32.mxu1 %vm469_vm0, %v10973_v27 }
 0x46a   : > { %8300 = vmatmul.mubr.msk.f32.gmra.mrb[10].mxu1 %vm469_vm0, %v10976_v19 }
 0x46b   : > { %8302 = vmatprep.mubr.msk.f32.mxu1 %vm469_vm0, %v10985_v47 }
 0x46e   : > { %8303 = vmatmul.mubr.msk.f32.gmra.mrb[12].mxu1 %vm469_vm0, %v10988_v52 }
 0x46f   : > { %8305 = vmatprep.mubr.msk.f32.mxu1 %vm469_vm0, %v10997_v13 }
 0x472   : > { %8306 = vmatmul.mubr.msk.f32.gmra.mrb[14].mxu1 %vm469_vm0, %v11000_v2 }
 0x473   : > { %8308 = vmatprep.mubr.msk.f32.mxu1 %vm469_vm0, %v11009_v3 }
 0x476   : > { %8309 = vmatmul.mubr.msk.f32.gmra.mrb[16].mxu1 %vm469_vm0, %v11012_v11 }
 0x477   : > { %8311 = vmatprep.mubr.msk.f32.mxu1 %vm469_vm0, %v11021_v45 }
 0x47a   : > { %8312 = vmatmul.mubr.msk.f32.gmra.mrb[18].mxu1 %vm469_vm0, %v11024_v7 }
 0x47b   : > { %8314 = vmatprep.mubr.msk.f32.mxu1 %vm469_vm0, %v11033_v31 }
 0x47e   : > { %8315 = vmatmul.mubr.msk.f32.gmra.mrb[20].mxu1 %vm469_vm0, %v11036_v54 }
 0x47f   : > { %8317 = vmatprep.mubr.msk.f32.mxu1 %vm469_vm0, %v11045_v57 }
 0x482   : > { %8318 = vmatmul.mubr.msk.f32.gmra.mrb[22].mxu1 %vm469_vm0, %v11048_v16 }
 0x483   : > { %8320 = vmatprep.mubr.msk.f32.mxu1 %vm469_vm0, %v11057_v60 }
 0x486   : > { %8321 = vmatmul.mubr.msk.f32.gmra.mrb[24].mxu1 %vm469_vm0, %v11060_v8 }
 0x487   : > { %8323 = vmatprep.mubr.msk.f32.mxu1 %vm469_vm0, %v11069_v35 }
 0x48a   : > { %8324 = vmatmul.mubr.msk.f32.gmra.mrb[26].mxu1 %vm469_vm0, %v11072_v9 }
 0x48b   : > { %8326 = vmatprep.mubr.msk.f32.mxu1 %vm469_vm0, %v11081_v30 }
 0x48e   : > { %8327 = vmatmul.mubr.msk.f32.gmra.mrb[28].mxu1 %vm469_vm0, %v11084_v18  ;;  %v5054_v18 = vld [vmem:[#allocation7 + $0x1b8] sm:$0xff] }
 0x48f   : > { %8329 = vmatprep.mubr.msk.f32.mxu1 %vm469_vm0, %v11554_v61  ;;  %v8840_v46 = vpack.c.bf16 %v5054_v18, %v5053_v51  ;;  %v12471_v18 = vld [vmem:[#allocation50_spill] sm:$0xff] }
 0x490   : > { %v12475_v51 = vld [vmem:[#allocation18_spill] sm:$0xff] }
 0x492   : > { %8330 = vmatmul.mubr.msk.f32.gmra.mrb[30].mxu1 %vm469_vm0, %v11561_v63 }
 0x493   : > { %8348 = vmatprep.mubr.msk.f32.mxu1 %vm469_vm0, %v12467_v22  ;;  %v5314_v22 = vld [vmem:[#allocation7 + $0x1c8] sm:$0xff] }
 0x496   : > { %8349 = vmatmul.mubr.msk.f32.vlgmr.msra.gmra.mrb[0].mxu1 %vm469_vm0, %v12468_v58  ;;  %v12473_v58 = vld [vmem:[#allocation52_spill] sm:$0xff] }
 0x497   : > { %8351 = vmatprep.mubr.msk.f32.mxu1 %vm469_vm0, %v11320_v20  ;;  %8831 = vmatpush3.bf16.msra.mxu1 %v8828_v26  ;;  %v8844_v26 = vpack.c.bf16 %v5314_v22, %v5313_v39  ;;  %v12476_v39 = vld [vmem:[#allocation19_spill] sm:$0xff]  ;;  %v12478_v22 = vld [vmem:[#allocation21_spill] sm:$0xff] }
 0x498   : > { %8833 = vmatprep.subr.bf16.mxu1 %v8832_v4 }
 0x49a   : > { %8352 = vmatmul.mubr.msk.f32.gmra.mrb[2].mxu1 %vm469_vm0, %v11328_v23 }
 0x49b   : > { %8354 = vmatprep.mubr.msk.f32.mxu1 %vm469_vm0, %v11333_v29  ;;  %8835 = vmatpush3.bf16.msra.mxu1 %v8832_v4  ;;  %v12472_v4 = vld [vmem:[#allocation51_spill] sm:$0xff] }
 0x49c   : > { %8837 = vmatprep.subr.bf16.mxu1 %v8836_v36 }
 0x49e   : > { %8355 = vmatmul.mubr.msk.f32.gmra.mrb[4].mxu1 %vm469_vm0, %v11343_v34 }
 0x49f   : > { %8357 = vmatprep.mubr.msk.f32.mxu1 %vm469_vm0, %v11348_v6  ;;  %8839 = vmatpush3.bf16.msra.mxu1 %v8836_v36  ;;  %v12474_v36 = vld [vmem:[#allocation53_spill] sm:$0xff] }
 0x4a0   : > { %8841 = vmatprep.subr.bf16.mxu1 %v8840_v46 }
 0x4a2   : > { %8358 = vmatmul.mubr.msk.f32.gmra.mrb[6].mxu1 %vm469_vm0, %v12469_v21 }
 0x4a3   : > { %8360 = vmatprep.mubr.msk.f32.mxu1 %vm469_vm0, %v12470_v12  ;;  %8843 = vmatpush3.bf16.msra.mxu1 %v8840_v46  ;;  %v12477_v46 = vld [vmem:[#allocation20_spill] sm:$0xff] }
 0x4a4   : > { %8845 = vmatprep.subr.bf16.mxu1 %v8844_v26 }
 0x4a6   : > { %8361 = vmatmul.mubr.msk.f32.gmra.mrb[8].mxu1 %vm469_vm0, %v12471_v18  ;;  %v12479_v18 = vld [vmem:[#allocation22_spill] sm:$0xff] }
 0x4a7   : > { %8363 = vmatprep.mubr.msk.f32.mxu1 %vm469_vm0, %v12472_v4  ;;  %v12480_v4 = vld [vmem:[#allocation23_spill] sm:$0xff] }
 0x4aa   : > { %8364 = vmatmul.mubr.msk.f32.gmra.mrb[10].mxu1 %vm469_vm0, %v12473_v58  ;;  %v12481_v58 = vld [vmem:[#allocation24_spill] sm:$0xff] }
 0x4ab   : > { %8366 = vmatprep.mubr.msk.f32.mxu1 %vm469_vm0, %v12474_v36  ;;  %v12482_v36 = vld [vmem:[#allocation25_spill] sm:$0xff] }
 0x4ae   : > { %8367 = vmatmul.mubr.msk.f32.gmra.mrb[12].mxu1 %vm469_vm0, %v12475_v51  ;;  %v12483_v51 = vld [vmem:[#allocation26_spill] sm:$0xff] }
 0x4af   : > { %8369 = vmatprep.mubr.msk.f32.mxu1 %vm469_vm0, %v12476_v39  ;;  %v12484_v39 = vld [vmem:[#allocation27_spill] sm:$0xff] }
 0x4b2   : > { %8370 = vmatmul.mubr.msk.f32.gmra.mrb[14].mxu1 %vm469_vm0, %v12477_v46  ;;  %v12485_v46 = vld [vmem:[#allocation28_spill] sm:$0xff] }
 0x4b3   : > { %8372 = vmatprep.mubr.msk.f32.mxu1 %vm469_vm0, %v12478_v22  ;;  %v12486_v22 = vld [vmem:[#allocation29_spill] sm:$0xff] }
 0x4b6   : > { %8373 = vmatmul.mubr.msk.f32.gmra.mrb[16].mxu1 %vm469_vm0, %v12479_v18  ;;  %v12487_v18 = vld [vmem:[#allocation31_spill] sm:$0xff] }
 0x4b7   : > { %8375 = vmatprep.mubr.msk.f32.mxu1 %vm469_vm0, %v12480_v4  ;;  %v12488_v4 = vld [vmem:[#allocation54_spill] sm:$0xff] }
 0x4ba   : > { %8376 = vmatmul.mubr.msk.f32.gmra.mrb[18].mxu1 %vm469_vm0, %v12481_v58  ;;  %v12489_v58 = vld [vmem:[#allocation55_spill] sm:$0xff] }
 0x4bb   : > { %8378 = vmatprep.mubr.msk.f32.mxu1 %vm469_vm0, %v12482_v36  ;;  %v4773_v36 = vrot.slane %v11561_v63, 1 }
 0x4be   : > { %8379 = vmatmul.mubr.msk.f32.gmra.mrb[20].mxu1 %vm469_vm0, %v12483_v51  ;;  %v4772_v51 = vrot.slane %v11554_v61, 1 }
 0x4bf   : > { %8381 = vmatprep.mubr.msk.f32.mxu1 %vm469_vm0, %v12484_v39  ;;  %v5318_v39 = vld [vmem:[#allocation7 + $0x1e8] sm:$0xff] }
 0x4c2   : > { %8382 = vmatmul.mubr.msk.f32.gmra.mrb[22].mxu1 %vm469_vm0, %v12485_v46  ;;  %v5316_v46 = vld [vmem:[#allocation7 + $0x1d8] sm:$0xff] }
 0x4c3   : > { %8384 = vmatprep.mubr.msk.f32.mxu1 %vm469_vm0, %v12486_v22  ;;  %v11709_v22 = vsel %vm1044_vm2, %v4772_v51, %v4773_v36  ;;  %v5319_v51 = vld [vmem:[#allocation7 + $0x1f0] sm:$0xff] }
 0x4c6   : > { %8385 = vmatmul.mubr.msk.f32.gmra.mrb[24].mxu1 %vm469_vm0, %v12487_v18 }
 0x4c7   : > { %8387 = vmatprep.mubr.msk.f32.mxu1 %vm469_vm0, %v12488_v4  ;;  %v12490_v4 = vld [vmem:[#allocation30_spill] sm:$0xff] }
 0x4c8   : > { %v11715_v18 = vsel %vm1044_vm2, %v4773_v36, %v12490_v4  ;;  %v5320_v4 = vld [vmem:[#allocation7 + $0x1f8] sm:$0xff] }
 0x4ca   : > { %8388 = vmatmul.mubr.msk.f32.gmra.mrb[26].mxu1 %vm469_vm0, %v12489_v58  ;;  %v5315_v58 = vld [vmem:[#allocation7 + $0x1d0] sm:$0xff] }
 0x4cb   : > { %8390 = vmatprep.mubr.msk.f32.mxu1 %vm469_vm0, %v11492_v24  ;;  %v8848_v24 = vpack.c.bf16 %v5316_v46, %v5315_v58  ;;  %v5579_v58 = vld [vmem:[#allocation7 + $0x200] sm:$0xff]  ;;  %v5580_v46 = vld [vmem:[#allocation7 + $0x208] sm:$0xff] }
 0x4ce   : > { %8391 = vmatmul.mubr.msk.f32.gmra.mrb[28].mxu1 %vm469_vm0, %v11498_v62  ;;  %v5317_v62 = vld [vmem:[#allocation7 + $0x1e0] sm:$0xff] }
 0x4cf   : > { %8393 = vmatprep.mubr.msk.f32.mxu1 %vm469_vm0, %v11709_v22  ;;  %v8852_v36 = vpack.c.bf16 %v5318_v39, %v5317_v62  ;;  %v5582_v62 = vld [vmem:[#allocation7 + $0x218] sm:$0xff]  ;;  %v5584_v39 = vld [vmem:[#allocation7 + $0x228] sm:$0xff] }
 0x4d2   : > { %8394 = vmatmul.mubr.msk.f32.gmra.mrb[30].mxu1 %vm469_vm0, %v11715_v18 }
 0x4d3   : > { %8412 = vmatprep.mubr.msk.f32.mxu1 %vm469_vm0, %v11118_v17  ;;  %v8856_v17 = vpack.c.bf16 %v5320_v4, %v5319_v51  ;;  %v5583_v4 = vld [vmem:[#allocation7 + $0x220] sm:$0xff]  ;;  %v5586_v51 = vld [vmem:[#allocation7 + $0x238] sm:$0xff] }
 0x4d6   : > { %8413 = vmatmul.mubr.msk.f32.vlgmr.msra.gmra.mrb[0].mxu1 %vm469_vm0, %v11124_v10  ;;  %v8860_v10 = vpack.c.bf16 %v5580_v46, %v5579_v58 }
 0x4d7   : > { %8415 = vmatprep.mubr.msk.f32.mxu1 %vm469_vm0, %v11131_v33  ;;  %8847 = vmatpush3.bf16.msra.mxu1 %v8844_v26  ;;  %v12491_v33 = vld [vmem:[#allocation34_spill] sm:$0xff] }
 0x4d8   : > { %8849 = vmatprep.subr.bf16.mxu1 %v8848_v24 }
 0x4da   : > { %8416 = vmatmul.mubr.msk.f32.gmra.mrb[2].mxu1 %vm469_vm0, %v11139_v15  ;;  %v12492_v15 = vld [vmem:[#allocation35_spill] sm:$0xff] }
 0x4db   : > { %8418 = vmatprep.mubr.msk.f32.mxu1 %vm469_vm0, %v11146_v41  ;;  %8851 = vmatpush3.bf16.msra.mxu1 %v8848_v24  ;;  %v12493_v41 = vld [vmem:[#allocation36_spill] sm:$0xff]  ;;  %v5581_v24 = vld [vmem:[#allocation7 + $0x210] sm:$0xff] }
 0x4dc   : > { %8853 = vmatprep.subr.bf16.mxu1 %v8852_v36  ;;  %v8864_v26 = vpack.c.bf16 %v5582_v62, %v5581_v24 }
 0x4de   : > { %8419 = vmatmul.mubr.msk.f32.gmra.mrb[4].mxu1 %vm469_vm0, %v11153_v28  ;;  %v12494_v28 = vld [vmem:[#allocation37_spill] sm:$0xff] }
 0x4df   : > { %8421 = vmatprep.mubr.msk.f32.mxu1 %vm469_vm0, %v11160_v59  ;;  %8855 = vmatpush3.bf16.msra.mxu1 %v8852_v36  ;;  %v12495_v59 = vld [vmem:[#allocation38_spill] sm:$0xff] }
 0x4e0   : > { %8857 = vmatprep.subr.bf16.mxu1 %v8856_v17  ;;  %v5585_v36 = vld [vmem:[#allocation7 + $0x230] sm:$0xff] }
 0x4e2   : > { %8422 = vmatmul.mubr.msk.f32.gmra.mrb[6].mxu1 %vm469_vm0, %v11166_v49  ;;  %v12496_v49 = vld [vmem:[#allocation39_spill] sm:$0xff] }
 0x4e3   : > { %8424 = vmatprep.mubr.msk.f32.mxu1 %vm469_vm0, %v11173_v25  ;;  %8859 = vmatpush3.bf16.msra.mxu1 %v8856_v17  ;;  %v12497_v25 = vld [vmem:[#allocation40_spill] sm:$0xff] }
 0x4e4   : > { %8861 = vmatprep.subr.bf16.mxu1 %v8860_v10  ;;  %v9484_v17 = vld [vmem:[%s9909_s13] sm:$0xff] }
 0x4e6   : > { %8425 = vmatmul.mubr.msk.f32.gmra.mrb[8].mxu1 %vm469_vm0, %v11179_v0  ;;  %v12498_v0 = vld [vmem:[#allocation41_spill] sm:$0xff] }
 0x4e7   : > { %8427 = vmatprep.mubr.msk.f32.mxu1 %vm469_vm0, %v11186_v42  ;;  %v12499_v42 = vld [vmem:[#allocation42_spill] sm:$0xff] }
 0x4ea   : > { %8428 = vmatmul.mubr.msk.f32.gmra.mrb[10].mxu1 %vm469_vm0, %v11192_v50  ;;  %v12500_v50 = vld [vmem:[#allocation43_spill] sm:$0xff] }
 0x4eb   : > { %8430 = vmatprep.mubr.msk.f32.mxu1 %vm469_vm0, %v11199_v48  ;;  %v12501_v48 = vld [vmem:[#allocation44_spill] sm:$0xff] }
 0x4ee   : > { %8431 = vmatmul.mubr.msk.f32.gmra.mrb[12].mxu1 %vm469_vm0, %v11205_v5  ;;  %v12502_v5 = vld [vmem:[#allocation45_spill] sm:$0xff] }
 0x4ef   : > { %8433 = vmatprep.mubr.msk.f32.mxu1 %vm469_vm0, %v11212_v37  ;;  %v12503_v37 = vld [vmem:[#allocation33_spill] sm:$0xff] }
 0x4f2   : > { %8434 = vmatmul.mubr.msk.f32.gmra.mrb[14].mxu1 %vm469_vm0, %v11218_v44  ;;  %v12504_v44 = vld [vmem:[#allocation17_spill] sm:$0xff] }
 0x4f3   : > { %8436 = vmatprep.mubr.msk.f32.mxu1 %vm469_vm0, %v12491_v33 }
 0x4f6   : > { %8437 = vmatmul.mubr.msk.f32.gmra.mrb[16].mxu1 %vm469_vm0, %v12492_v15 }
 0x4f7   : > { %8439 = vmatprep.mubr.msk.f32.mxu1 %vm469_vm0, %v12493_v41 }
 0x4fa   : > { %8440 = vmatmul.mubr.msk.f32.gmra.mrb[18].mxu1 %vm469_vm0, %v12494_v28 }
 0x4fb   : > { %8442 = vmatprep.mubr.msk.f32.mxu1 %vm469_vm0, %v12495_v59  ;;  %v9485_v59 = vld [vmem:[%s9909_s13 + $0x18] sm:$0xff] }
 0x4fe   : > { %8443 = vmatmul.mubr.msk.f32.gmra.mrb[20].mxu1 %vm469_vm0, %v12496_v49 }
 0x4ff   : > { %8445 = vmatprep.mubr.msk.f32.mxu1 %vm469_vm0, %v12497_v25 }
 0x502   : > { %8446 = vmatmul.mubr.msk.f32.gmra.mrb[22].mxu1 %vm469_vm0, %v12498_v0 }
 0x503   : > { %8448 = vmatprep.mubr.msk.f32.mxu1 %vm469_vm0, %v12499_v42  ;;  %v9486_v42 = vld [vmem:[%s9909_s13 + $0x10] sm:$0xff] }
 0x506   : > { %8449 = vmatmul.mubr.msk.f32.gmra.mrb[24].mxu1 %vm469_vm0, %v12500_v50 }
 0x507   : > { %8451 = vmatprep.mubr.msk.f32.mxu1 %vm469_vm0, %v12501_v48 }
 0x50a   : > { %8452 = vmatmul.mubr.msk.f32.gmra.mrb[26].mxu1 %vm469_vm0, %v12502_v5 }
 0x50b   : > { %8454 = vmatprep.mubr.msk.f32.mxu1 %vm469_vm0, %v12503_v37 }
 0x50e   : > { %8455 = vmatmul.mubr.msk.f32.gmra.mrb[28].mxu1 %vm469_vm0, %v11578_v32  ;;  %v8868_v32 = vpack.c.bf16 %v5584_v39, %v5583_v4 }
 0x50f   : > { %8457 = vmatprep.mubr.msk.f32.mxu1 %vm469_vm0, %v12504_v44 }
 0x512   : > { %8458 = vmatmul.mubr.msk.f32.gmra.mrb[30].mxu1 %vm469_vm0, %v12504_v44 }
 0x513   : > { %8476 = vmatprep.mubr.msk.f32.mxu1 %vm469_vm0, %v10925_v1  ;;  %v8872_v1 = vpack.c.bf16 %v5586_v51, %v5585_v36  ;;  %v9488_v36 = vld [vmem:[%s9909_s13 + $0x20] sm:$0xff] }
 0x516   : > { %8477 = vmatmul.mubr.msk.f32.vlgmr.msra.gmra.mrb[0].mxu1 %vm469_vm0, %v12465_v43 }
 0x517   : > { %8479 = vmatprep.mubr.msk.f32.mxu1 %vm469_vm0, %v10937_v40  ;;  %8863 = vmatpush3.bf16.msra.mxu1 %v8860_v10  ;;  %v12505_v40 = vld [vmem:[#allocation16_spill] sm:$0xff] }
 0x518   : > { %8865 = vmatprep.subr.bf16.mxu1 %v8864_v26 }
 0x51a   : > { %8480 = vmatmul.mubr.msk.f32.gmra.mrb[2].mxu1 %vm469_vm0, %v12466_v56 }
 0x51b   : > { %8482 = vmatprep.mubr.msk.f32.mxu1 %vm469_vm0, %v10949_v38  ;;  %8867 = vmatpush3.bf16.msra.mxu1 %v8864_v26  ;;  %v12506_v38 = vmov 0.0   ;;  %v9487_v26 = vld [vmem:[%s9909_s13 + $0x28] sm:$0xff] }
 0x51c   : > { %8869 = vmatprep.subr.bf16.mxu1 %v8868_v32 }
 0x51e   : > { %8483 = vmatmul.mubr.msk.f32.gmra.mrb[4].mxu1 %vm469_vm0, %v10952_v14  ;;  %v12507_v14 = vld [vmem:[#allocation50_spill] sm:$0xff] }
 0x51f   : > { %8485 = vmatprep.mubr.msk.f32.mxu1 %vm469_vm0, %v10961_v53  ;;  %8871 = vmatpush3.bf16.msra.mxu1 %v8868_v32  ;;  %v12508_v53 = vld [vmem:[#allocation51_spill] sm:$0xff] }
 0x520   : > { %8873 = vmatprep.subr.bf16.mxu1 %v8872_v1 }
 0x522   : > { %8486 = vmatmul.mubr.msk.f32.gmra.mrb[6].mxu1 %vm469_vm0, %v10964_v55  ;;  %v12509_v55 = vld [vmem:[#allocation52_spill] sm:$0xff] }
 0x523   : > { %8488 = vmatprep.mubr.msk.f32.mxu1 %vm469_vm0, %v10973_v27  ;;  %8875 = vmatpush3.bf16.msra.mxu1 %v8872_v1  ;;  %v12510_v27 = vld [vmem:[#allocation53_spill] sm:$0xff] }
 0x526   : > { %8489 = vmatmul.mubr.msk.f32.gmra.mrb[8].mxu1 %vm469_vm0, %v10976_v19  ;;  %v12511_v19 = vld [vmem:[#allocation18_spill] sm:$0xff] }
 0x527   : > { %8491 = vmatprep.mubr.msk.f32.mxu1 %vm469_vm0, %v10985_v47  ;;  %v12512_v47 = vld [vmem:[#allocation19_spill] sm:$0xff] }
 0x52a   : > { %8492 = vmatmul.mubr.msk.f32.gmra.mrb[10].mxu1 %vm469_vm0, %v10988_v52  ;;  %v12513_v52 = vld [vmem:[#allocation20_spill] sm:$0xff] }
 0x52b   : > { %8494 = vmatprep.mubr.msk.f32.mxu1 %vm469_vm0, %v10997_v13  ;;  %v12514_v13 = vld [vmem:[#allocation21_spill] sm:$0xff] }
 0x52e   : > { %8495 = vmatmul.mubr.msk.f32.gmra.mrb[12].mxu1 %vm469_vm0, %v11000_v2  ;;  %v12515_v2 = vld [vmem:[#allocation22_spill] sm:$0xff] }
 0x52f   : > { %8497 = vmatprep.mubr.msk.f32.mxu1 %vm469_vm0, %v11009_v3  ;;  %v12516_v3 = vld [vmem:[#allocation23_spill] sm:$0xff] }
 0x532   : > { %8498 = vmatmul.mubr.msk.f32.gmra.mrb[14].mxu1 %vm469_vm0, %v11012_v11  ;;  %v12517_v11 = vld [vmem:[#allocation24_spill] sm:$0xff] }
 0x533   : > { %8500 = vmatprep.mubr.msk.f32.mxu1 %vm469_vm0, %v11021_v45  ;;  %v12518_v45 = vld [vmem:[#allocation25_spill] sm:$0xff] }
 0x536   : > { %8501 = vmatmul.mubr.msk.f32.gmra.mrb[16].mxu1 %vm469_vm0, %v11024_v7  ;;  %v12519_v7 = vld [vmem:[#allocation26_spill] sm:$0xff] }
 0x537   : > { %8503 = vmatprep.mubr.msk.f32.mxu1 %vm469_vm0, %v11033_v31  ;;  %v12520_v31 = vld [vmem:[#allocation27_spill] sm:$0xff] }
 0x53a   : > { %8504 = vmatmul.mubr.msk.f32.gmra.mrb[18].mxu1 %vm469_vm0, %v11036_v54  ;;  %v12521_v54 = vld [vmem:[#allocation28_spill] sm:$0xff] }
 0x53b   : > { %8506 = vmatprep.mubr.msk.f32.mxu1 %vm469_vm0, %v11045_v57  ;;  %v12522_v57 = vld [vmem:[#allocation29_spill] sm:$0xff] }
 0x53e   : > { %8507 = vmatmul.mubr.msk.f32.gmra.mrb[20].mxu1 %vm469_vm0, %v11048_v16  ;;  %v12523_v16 = vld [vmem:[#allocation31_spill] sm:$0xff] }
 0x53f   : > { %8509 = vmatprep.mubr.msk.f32.mxu1 %vm469_vm0, %v11057_v60  ;;  %v12524_v60 = vld [vmem:[#allocation54_spill] sm:$0xff] }
 0x542   : > { %8510 = vmatmul.mubr.msk.f32.gmra.mrb[22].mxu1 %vm469_vm0, %v11060_v8  ;;  %v12525_v8 = vld [vmem:[#allocation55_spill] sm:$0xff] }
 0x543   : > { %8512 = vmatprep.mubr.msk.f32.mxu1 %vm469_vm0, %v11069_v35  ;;  %v12526_v35 = vld [vmem:[#allocation56_spill] sm:$0xff] }
 0x546   : > { %8513 = vmatmul.mubr.msk.f32.gmra.mrb[24].mxu1 %vm469_vm0, %v11072_v9  ;;  %v12527_v9 = vld [vmem:[#allocation57_spill] sm:$0xff] }
 0x547   : > { %8515 = vmatprep.mubr.msk.f32.mxu1 %vm469_vm0, %v11081_v30  ;;  %v12528_v30 = vld [vmem:[#allocation30_spill] sm:$0xff] }
 0x54a   : > { %8516 = vmatmul.mubr.msk.f32.gmra.mrb[26].mxu1 %vm469_vm0, %v12505_v40 }
 0x54b   : > { %8518 = vmatprep.mubr.msk.f32.mxu1 %vm469_vm0, %v11554_v61 }
 0x54e   : > { %8519 = vmatmul.mubr.msk.f32.gmra.mrb[28].mxu1 %vm469_vm0, %v11561_v63 }
 0x54f   : > { %8521 = vmatprep.mubr.f32.mxu1 %v12506_v38 }
 0x552   : > { %8522 = vmatmul.mubr.f32.gmra.mrb[30].mxu1 %v12506_v38 }
 0x553   : > { %8540 = vmatprep.mubr.msk.f32.mxu1 %vm469_vm0, %v11320_v20  ;;  %v11912_v20 = vld [vmem:[%s12139_s5] ss:$0 sm:$0xff] }
 0x556   : > { %8541 = vmatmul.mubr.msk.f32.vlgmr.msra.gmra.mrb[0].mxu1 %vm469_vm0, %v11328_v23 }
 0x557   : > { %8543 = vmatprep.mubr.msk.f32.mxu1 %vm469_vm0, %v11333_v29  ;;  %v11917_v29 = vld [vmem:[%s12140_s6] ss:$0 sm:$0xff] }
 0x55a   : > { %8544 = vmatmul.mubr.msk.f32.gmra.mrb[2].mxu1 %vm469_vm0, %v11343_v34 }
 0x55b   : > { %8546 = vmatprep.mubr.msk.f32.mxu1 %vm469_vm0, %v11348_v6 }
 0x55e   : > { %8547 = vmatmul.mubr.msk.f32.gmra.mrb[4].mxu1 %vm469_vm0, %v12469_v21  ;;  %v9483_v21 = vld [vmem:[%s9909_s13 + $0x8] sm:$0xff] }
 0x55f   : > { %8549 = vmatprep.mubr.msk.f32.mxu1 %vm469_vm0, %v12470_v12 }
 0x562   : > { %8550 = vmatmul.mubr.msk.f32.gmra.mrb[6].mxu1 %vm469_vm0, %v12507_v14 }
 0x563   : > { %8552 = vmatprep.mubr.msk.f32.mxu1 %vm469_vm0, %v12508_v53 }
 0x566   : > { %8553 = vmatmul.mubr.msk.f32.gmra.mrb[8].mxu1 %vm469_vm0, %v12509_v55 }
 0x567   : > { %8555 = vmatprep.mubr.msk.f32.mxu1 %vm469_vm0, %v12510_v27  ;;  %v9489_v27 = vld [vmem:[%s9909_s13 + $0x38] sm:$0xff] }
 0x56a   : > { %8556 = vmatmul.mubr.msk.f32.gmra.mrb[10].mxu1 %vm469_vm0, %v12511_v19 }
 0x56b   : > { %8558 = vmatprep.mubr.msk.f32.mxu1 %vm469_vm0, %v12512_v47 }
 0x56e   : > { %8559 = vmatmul.mubr.msk.f32.gmra.mrb[12].mxu1 %vm469_vm0, %v12513_v52 }
 0x56f   : > { %8561 = vmatprep.mubr.msk.f32.mxu1 %vm469_vm0, %v12514_v13  ;;  %v9490_v13 = vld [vmem:[%s9909_s13 + $0x30] sm:$0xff] }
 0x572   : > { %8562 = vmatmul.mubr.msk.f32.gmra.mrb[14].mxu1 %vm469_vm0, %v12515_v2 }
 0x573   : > { %8564 = vmatprep.mubr.msk.f32.mxu1 %vm469_vm0, %v12516_v3 }
 0x576   : > { %8565 = vmatmul.mubr.msk.f32.gmra.mrb[16].mxu1 %vm469_vm0, %v12517_v11 }
 0x577   : > { %8567 = vmatprep.mubr.msk.f32.mxu1 %vm469_vm0, %v12518_v45 }
 0x57a   : > { %8568 = vmatmul.mubr.msk.f32.gmra.mrb[18].mxu1 %vm469_vm0, %v12519_v7 }
 0x57b   : > { %8570 = vmatprep.mubr.msk.f32.mxu1 %vm469_vm0, %v12520_v31 }
 0x57e   : > { %8571 = vmatmul.mubr.msk.f32.gmra.mrb[20].mxu1 %vm469_vm0, %v12521_v54 }
 0x57f   : > { %8573 = vmatprep.mubr.msk.f32.mxu1 %vm469_vm0, %v12522_v57  ;;  %v9491_v57 = vld [vmem:[%s9909_s13 + $0x48] sm:$0xff] }
 0x582   : > { %8574 = vmatmul.mubr.msk.f32.gmra.mrb[22].mxu1 %vm469_vm0, %v12523_v16 }
 0x583   : > { %8576 = vmatprep.mubr.msk.f32.mxu1 %vm469_vm0, %v12524_v60 }
 0x586   : > { %8577 = vmatmul.mubr.msk.f32.gmra.mrb[24].mxu1 %vm469_vm0, %v12525_v8 }
 0x587   : > { %8579 = vmatprep.mubr.msk.f32.mxu1 %vm469_vm0, %v12526_v35  ;;  %v9492_v35 = vld [vmem:[%s9909_s13 + $0x40] sm:$0xff] }
 0x58a   : > { %8580 = vmatmul.mubr.msk.f32.gmra.mrb[26].mxu1 %vm469_vm0, %v12527_v9 }
 0x58b   : > { %8582 = vmatprep.mubr.msk.f32.mxu1 %vm469_vm0, %v11709_v22 }
 0x58e   : > { %8583 = vmatmul.mubr.msk.f32.gmra.mrb[28].mxu1 %vm469_vm0, %v11715_v18 }
 0x58f   : > { %8585 = vmatprep.mubr.msk.f32.mxu1 %vm469_vm0, %v12528_v30 }
 0x592   : > { %8586 = vmatmul.mubr.msk.f32.gmra.mrb[30].mxu1 %vm469_vm0, %v12528_v30 }
 0x629   : > { %v8542_v23 = vpop.f32.mrb[0].mxu1 }
 0x62a   : > { %v5852_v34 = vmul.f32 %v8542_v23, %v11912_v20  ;;  %v5653_v6 = vpop.f32.mrb[1].mxu1 }
 0x62b   : > { %v5851_v43 = vmul.f32 %v11912_v20, %v5653_v6 }
 0x62c   : > { %v5891_v61 = vadd.f32 %v11917_v29, %v5852_v34 }
 0x62d   : > { %v5890_v63 = vadd.f32 %v11917_v29, %v5851_v43  ;;  %v8545_v56 = vpop.f32.mrb[2].mxu1 }
 0x62e   : > { %v5923_v12 = vadd.f32 %v9483_v21, %v5891_v61  ;;  %v5854_v18 = vmul.f32 %v8545_v56, %v11912_v20  ;;  %v5663_v22 = vpop.f32.mrb[3].mxu1 }
 0x62f   : > { %v5922_v58 = vadd.f32 %v9484_v17, %v5890_v63  ;;  %v5853_v46 = vmul.f32 %v11912_v20, %v5663_v22  ;;  %v9493_v63 = vld [vmem:[%s9909_s13 + $0x58] sm:$0xff] }
 0x630   : > { %v5955_v10 = vmax.f32 %v5923_v12, 0.0  ;;  %v5893_v33 = vadd.f32 %v11917_v29, %v5854_v18  ;;  %v9494_v18 = vld [vmem:[%s9909_s13 + $0x50] sm:$0xff] }
 0x631   : > { %v5954_v15 = vmax.f32 %v5922_v58, 0.0  ;;  %v5892_v41 = vadd.f32 %v11917_v29, %v5853_v46  ;;  %v8548_v28 = vpop.f32.mrb[4].mxu1 }
 0x632   : > { %5987 = vst.msk [vmem:[%s11931_s21 + $0x8] sm:$0xff] %vm469_vm0, %v5955_v10  ;;  %v5925_v49 = vadd.f32 %v9485_v59, %v5893_v33  ;;  %v5856_v25 = vmul.f32 %v8548_v28, %v11912_v20  ;;  %v5673_v0 = vpop.f32.mrb[5].mxu1 }
 0x633   : > { %5986 = vst.msk [vmem:[%s11931_s21] sm:$0xff] %vm469_vm0, %v5954_v15  ;;  %v5924_v50 = vadd.f32 %v9486_v42, %v5892_v41  ;;  %v5855_v48 = vmul.f32 %v11912_v20, %v5673_v0  ;;  %v9495_v41 = vld [vmem:[%s9909_s13 + $0x68] sm:$0xff] }
 0x634   : > { %v5957_v5 = vmax.f32 %v5925_v49, 0.0  ;;  %v5895_v37 = vadd.f32 %v11917_v29, %v5856_v25  ;;  %v9496_v25 = vld [vmem:[%s9909_s13 + $0x60] sm:$0xff] }
 0x635   : > { %v5956_v44 = vmax.f32 %v5924_v50, 0.0  ;;  %v5894_v24 = vadd.f32 %v11917_v29, %v5855_v48  ;;  %v8551_v62 = vpop.f32.mrb[6].mxu1 }
 0x636   : > { %5989 = vst.msk [vmem:[%s11931_s21 + $0x18] sm:$0xff] %vm469_vm0, %v5957_v5  ;;  %v5927_v4 = vadd.f32 %v9487_v26, %v5895_v37  ;;  %v5858_v39 = vmul.f32 %v8551_v62, %v11912_v20  ;;  %v5683_v32 = vpop.f32.mrb[7].mxu1 }
 0x637   : > { %5988 = vst.msk [vmem:[%s11931_s21 + $0x10] sm:$0xff] %vm469_vm0, %v5956_v44  ;;  %v5926_v51 = vadd.f32 %v9488_v36, %v5894_v24  ;;  %v5857_v1 = vmul.f32 %v11912_v20, %v5683_v32  ;;  %v9497_v24 = vld [vmem:[%s9909_s13 + $0x78] sm:$0xff] }
 0x638   : > { %v5959_v40 = vmax.f32 %v5927_v4, 0.0  ;;  %v5897_v38 = vadd.f32 %v11917_v29, %v5858_v39  ;;  %v9498_v39 = vld [vmem:[%s9909_s13 + $0x70] sm:$0xff] }
 0x639   : > { %v5958_v14 = vmax.f32 %v5926_v51, 0.0  ;;  %v5896_v53 = vadd.f32 %v11917_v29, %v5857_v1  ;;  %v8554_v55 = vpop.f32.mrb[8].mxu1 }
 0x63a   : > { %5991 = vst.msk [vmem:[%s11931_s21 + $0x28] sm:$0xff] %vm469_vm0, %v5959_v40  ;;  %v5929_v19 = vadd.f32 %v9489_v27, %v5897_v38  ;;  %v5860_v47 = vmul.f32 %v8554_v55, %v11912_v20  ;;  %v5693_v52 = vpop.f32.mrb[9].mxu1 }
 0x63b   : > { %5990 = vst.msk [vmem:[%s11931_s21 + $0x20] sm:$0xff] %vm469_vm0, %v5958_v14  ;;  %v5928_v2 = vadd.f32 %v9490_v13, %v5896_v53  ;;  %v5859_v3 = vmul.f32 %v11912_v20, %v5693_v52  ;;  %v9499_v53 = vld [vmem:[%s9909_s13 + $0x88] sm:$0xff] }
 0x63c   : > { %v5961_v11 = vmax.f32 %v5929_v19, 0.0  ;;  %v5899_v45 = vadd.f32 %v11917_v29, %v5860_v47  ;;  %v9500_v47 = vld [vmem:[%s9909_s13 + $0x80] sm:$0xff] }
 0x63d   : > { %v5960_v7 = vmax.f32 %v5928_v2, 0.0  ;;  %v5898_v31 = vadd.f32 %v11917_v29, %v5859_v3  ;;  %v8557_v54 = vpop.f32.mrb[10].mxu1 }
 0x63e   : > { %5993 = vst.msk [vmem:[%s11931_s21 + $0x38] sm:$0xff] %vm469_vm0, %v5961_v11  ;;  %v5931_v16 = vadd.f32 %v9491_v57, %v5899_v45  ;;  %v5862_v60 = vmul.f32 %v8557_v54, %v11912_v20  ;;  %v5703_v8 = vpop.f32.mrb[11].mxu1 }
 0x63f   : > { %5992 = vst.msk [vmem:[%s11931_s21 + $0x30] sm:$0xff] %vm469_vm0, %v5960_v7  ;;  %v5930_v9 = vadd.f32 %v9492_v35, %v5898_v31  ;;  %v5861_v30 = vmul.f32 %v11912_v20, %v5703_v8  ;;  %v9501_v31 = vld [vmem:[%s9909_s13 + $0x98] sm:$0xff] }
 0x640   : > { %v5963_v23 = vmax.f32 %v5931_v16, 0.0  ;;  %v5901_v34 = vadd.f32 %v11917_v29, %v5862_v60  ;;  %v9502_v60 = vld [vmem:[%s9909_s13 + $0x90] sm:$0xff] }
 0x641   : > { %v5962_v6 = vmax.f32 %v5930_v9, 0.0  ;;  %v5900_v43 = vadd.f32 %v11917_v29, %v5861_v30  ;;  %v8560_v61 = vpop.f32.mrb[12].mxu1 }
 0x642   : > { %5995 = vst.msk [vmem:[%s11931_s21 + $0x48] sm:$0xff] %vm469_vm0, %v5963_v23  ;;  %v5933_v56 = vadd.f32 %v9493_v63, %v5901_v34  ;;  %v5864_v21 = vmul.f32 %v8560_v61, %v11912_v20  ;;  %v5713_v12 = vpop.f32.mrb[13].mxu1 }
 0x643   : > { %5994 = vst.msk [vmem:[%s11931_s21 + $0x40] sm:$0xff] %vm469_vm0, %v5962_v6  ;;  %v5932_v22 = vadd.f32 %v9494_v18, %v5900_v43  ;;  %v5863_v17 = vmul.f32 %v11912_v20, %v5713_v12  ;;  %v9503_v43 = vld [vmem:[%s9909_s13 + $0xa8] sm:$0xff] }
 0x644   : > { %v5965_v58 = vmax.f32 %v5933_v56, 0.0  ;;  %v5903_v46 = vadd.f32 %v11917_v29, %v5864_v21  ;;  %v9504_v21 = vld [vmem:[%s9909_s13 + $0xa0] sm:$0xff] }
 0x645   : > { %v5964_v10 = vmax.f32 %v5932_v22, 0.0  ;;  %v5902_v33 = vadd.f32 %v11917_v29, %v5863_v17  ;;  %v8563_v15 = vpop.f32.mrb[14].mxu1 }
 0x646   : > { %5997 = vst.msk [vmem:[%s11931_s21 + $0x58] sm:$0xff] %vm469_vm0, %v5965_v58  ;;  %v5935_v28 = vadd.f32 %v9495_v41, %v5903_v46  ;;  %v5866_v59 = vmul.f32 %v8563_v15, %v11912_v20  ;;  %v5723_v49 = vpop.f32.mrb[15].mxu1 }
 0x647   : > { %5996 = vst.msk [vmem:[%s11931_s21 + $0x50] sm:$0xff] %vm469_vm0, %v5964_v10  ;;  %v5934_v0 = vadd.f32 %v9496_v25, %v5902_v33  ;;  %v5865_v42 = vmul.f32 %v11912_v20, %v5723_v49  ;;  %v9505_v33 = vld [vmem:[%s9909_s13 + $0xb8] sm:$0xff] }
 0x648   : > { %v5967_v50 = vmax.f32 %v5935_v28, 0.0  ;;  %v5905_v48 = vadd.f32 %v11917_v29, %v5866_v59  ;;  %v9506_v59 = vld [vmem:[%s9909_s13 + $0xb0] sm:$0xff] }
 0x649   : > { %v5966_v5 = vmax.f32 %v5934_v0, 0.0  ;;  %v5904_v37 = vadd.f32 %v11917_v29, %v5865_v42  ;;  %v8566_v44 = vpop.f32.mrb[16].mxu1 }
 0x64a   : > { %5999 = vst.msk [vmem:[%s11931_s21 + $0x68] sm:$0xff] %vm469_vm0, %v5967_v50  ;;  %v5937_v62 = vadd.f32 %v9497_v24, %v5905_v48  ;;  %v5868_v26 = vmul.f32 %v8566_v44, %v11912_v20  ;;  %v5733_v4 = vpop.f32.mrb[17].mxu1 }
 0x64b   : > { %5998 = vst.msk [vmem:[%s11931_s21 + $0x60] sm:$0xff] %vm469_vm0, %v5966_v5  ;;  %v5936_v32 = vadd.f32 %v9498_v39, %v5904_v37  ;;  %v5867_v36 = vmul.f32 %v11912_v20, %v5733_v4  ;;  %v9507_v37 = vld [vmem:[%s9909_s13 + $0xc8] sm:$0xff] }
 0x64c   : > { %v5969_v51 = vmax.f32 %v5937_v62, 0.0  ;;  %v5907_v1 = vadd.f32 %v11917_v29, %v5868_v26  ;;  %v9508_v26 = vld [vmem:[%s9909_s13 + $0xc0] sm:$0xff] }
 0x64d   : > { %v5968_v40 = vmax.f32 %v5936_v32, 0.0  ;;  %v5906_v38 = vadd.f32 %v11917_v29, %v5867_v36  ;;  %v8569_v14 = vpop.f32.mrb[18].mxu1 }
 0x64e   : > { %6001 = vst.msk [vmem:[%s11931_s21 + $0x78] sm:$0xff] %vm469_vm0, %v5969_v51  ;;  %v5939_v55 = vadd.f32 %v9499_v53, %v5907_v1  ;;  %v5870_v27 = vmul.f32 %v8569_v14, %v11912_v20  ;;  %v5743_v19 = vpop.f32.mrb[19].mxu1 }
 0x64f   : > { %6000 = vst.msk [vmem:[%s11931_s21 + $0x70] sm:$0xff] %vm469_vm0, %v5968_v40  ;;  %v5938_v52 = vadd.f32 %v9500_v47, %v5906_v38  ;;  %v5869_v13 = vmul.f32 %v11912_v20, %v5743_v19  ;;  %v9509_v38 = vld [vmem:[%s9909_s13 + $0xd8] sm:$0xff] }
 0x650   : > { %v5971_v2 = vmax.f32 %v5939_v55, 0.0  ;;  %v5909_v3 = vadd.f32 %v11917_v29, %v5870_v27  ;;  %v9510_v27 = vld [vmem:[%s9909_s13 + $0xd0] sm:$0xff] }
 0x651   : > { %v5970_v11 = vmax.f32 %v5938_v52, 0.0  ;;  %v5908_v45 = vadd.f32 %v11917_v29, %v5869_v13  ;;  %v8572_v7 = vpop.f32.mrb[20].mxu1 }
 0x652   : > { %6003 = vst.msk [vmem:[%s11931_s21 + $0x88] sm:$0xff] %vm469_vm0, %v5971_v2  ;;  %v5941_v54 = vadd.f32 %v9501_v31, %v5909_v3  ;;  %v5872_v57 = vmul.f32 %v8572_v7, %v11912_v20  ;;  %v5753_v16 = vpop.f32.mrb[21].mxu1 }
 0x653   : > { %6002 = vst.msk [vmem:[%s11931_s21 + $0x80] sm:$0xff] %vm469_vm0, %v5970_v11  ;;  %v5940_v8 = vadd.f32 %v9502_v60, %v5908_v45  ;;  %v5871_v35 = vmul.f32 %v11912_v20, %v5753_v16  ;;  %v9511_v45 = vld [vmem:[%s9909_s13 + $0xe8] sm:$0xff] }
 0x654   : > { %v5973_v9 = vmax.f32 %v5941_v54, 0.0  ;;  %v5911_v30 = vadd.f32 %v11917_v29, %v5872_v57  ;;  %v9512_v57 = vld [vmem:[%s9909_s13 + $0xe0] sm:$0xff] }
 0x655   : > { %v5972_v23 = vmax.f32 %v5940_v8, 0.0  ;;  %v5910_v34 = vadd.f32 %v11917_v29, %v5871_v35  ;;  %v8575_v6 = vpop.f32.mrb[22].mxu1 }
 0x656   : > { %6005 = vst.msk [vmem:[%s11931_s21 + $0x98] sm:$0xff] %vm469_vm0, %v5973_v9  ;;  %v5943_v61 = vadd.f32 %v9503_v43, %v5911_v30  ;;  %v5874_v63 = vmul.f32 %v8575_v6, %v11912_v20  ;;  %v5763_v56 = vpop.f32.mrb[23].mxu1  ;;  %v9514_v6 = vld [vmem:[%s9909_s13 + $0xf0] sm:$0xff] }
 0x657   : > { %6004 = vst.msk [vmem:[%s11931_s21 + $0x90] sm:$0xff] %vm469_vm0, %v5972_v23  ;;  %v5942_v12 = vadd.f32 %v9504_v21, %v5910_v34  ;;  %v5873_v18 = vmul.f32 %v11912_v20, %v5763_v56  ;;  %v9513_v23 = vld [vmem:[%s9909_s13 + $0xf8] sm:$0xff]  ;;  %s9679_s13 = smov [#allocation8]  }
 0x658   : > { %v5975_v22 = vmax.f32 %v5943_v61, 0.0  ;;  %v5913_v17 = vadd.f32 %v11917_v29, %v5874_v63  ;;  %s9605_s11 = sshll.u32 %s9679_s13, 4  ;;  %s9606_s11 = int_to_ptr.vmem [resolvable:$false] %s9605_s11 }
 0x659   : > { %v5974_v58 = vmax.f32 %v5942_v12, 0.0  ;;  %v5912_v46 = vadd.f32 %v11917_v29, %v5873_v18  ;;  %v8578_v10 = vpop.f32.mrb[24].mxu1  ;;  %s9607_s10 = scalar_lea.vmem %s9606_s11, 8192  ;;  %p9608_p7 = scmp.lt.s32.totalorder %s12086_s22, %s9606_s11 }
 0x65a   : > { %6007 = vst.msk [vmem:[%s11931_s21 + $0xa8] sm:$0xff] %vm469_vm0, %v5975_v22  ;;  %v5945_v15 = vadd.f32 %v9505_v33, %v5913_v17  ;;  %v5876_v41 = vmul.f32 %v8578_v10, %v11912_v20  ;;  %v5773_v28 = vpop.f32.mrb[25].mxu1  ;;  %p9609_p9 = scmp.lt.s32.totalorder %s9607_s10, %s9601_s29 }
 0x65b   : > { %6006 = vst.msk [vmem:[%s11931_s21 + $0xa0] sm:$0xff] %vm469_vm0, %v5974_v58  ;;  %v5944_v49 = vadd.f32 %v9506_v59, %v5912_v46  ;;  %v5875_v25 = vmul.f32 %v11912_v20, %v5773_v28 }
 0x65c   : > { %v5977_v0 = vmax.f32 %v5945_v15, 0.0  ;;  %v5915_v42 = vadd.f32 %v11917_v29, %v5876_v41  ;;  %p9610_p12 = por %p9609_p9, %p9608_p7 }
 0x65d   : > { %v5976_v50 = vmax.f32 %v5944_v49, 0.0  ;;  %v5914_v48 = vadd.f32 %v11917_v29, %v5875_v25  ;;  %v8581_v5 = vpop.f32.mrb[26].mxu1 }
 0x65e   : > { %6009 = vst.msk [vmem:[%s11931_s21 + $0xb8] sm:$0xff] %vm469_vm0, %v5977_v0  ;;  %v5947_v44 = vadd.f32 %v9507_v37, %v5915_v42  ;;  %v5878_v24 = vmul.f32 %v8581_v5, %v11912_v20  ;;  %v5783_v62 = vpop.f32.mrb[27].mxu1  ;;  %p9611_p1 = pnand %p9610_p12, %p9604_p3 }
 0x65f   : > { %6008 = vst.msk [vmem:[%s11931_s21 + $0xb0] sm:$0xff] %vm469_vm0, %v5976_v50  ;;  %v5946_v4 = vadd.f32 %v9508_v26, %v5914_v48  ;;  %v5877_v39 = vmul.f32 %v11912_v20, %v5783_v62 }
 0x660   : > { %v5979_v32 = vmax.f32 %v5947_v44, 0.0  ;;  %v5917_v36 = vadd.f32 %v11917_v29, %v5878_v24 }
 0x661   : > { %v5978_v51 = vmax.f32 %v5946_v4, 0.0  ;;  %v5916_v1 = vadd.f32 %v11917_v29, %v5877_v39  ;;  %v8584_v40 = vpop.f32.mrb[28].mxu1 }
 0x662   : > { %6011 = vst.msk [vmem:[%s11931_s21 + $0xc8] sm:$0xff] %vm469_vm0, %v5979_v32  ;;  %v5949_v14 = vadd.f32 %v9509_v38, %v5917_v36  ;;  %v5880_v53 = vmul.f32 %v8584_v40, %v11912_v20  ;;  %v5793_v55 = vpop.f32.mrb[29].mxu1 }
 0x663   : > { %6010 = vst.msk [vmem:[%s11931_s21 + $0xc0] sm:$0xff] %vm469_vm0, %v5978_v51  ;;  %v5948_v19 = vadd.f32 %v9510_v27, %v5916_v1  ;;  %v5879_v47 = vmul.f32 %v11912_v20, %v5793_v55 }
 0x664   : > { %v5981_v52 = vmax.f32 %v5949_v14, 0.0  ;;  %v5919_v13 = vadd.f32 %v11917_v29, %v5880_v53 }
 0x665   : > { %v5980_v2 = vmax.f32 %v5948_v19, 0.0  ;;  %v5918_v3 = vadd.f32 %v11917_v29, %v5879_v47  ;;  %v8587_v11 = vpop.f32.mrb[30].mxu1 }
 0x666   : > { %6013 = vst.msk [vmem:[%s11931_s21 + $0xd8] sm:$0xff] %vm469_vm0, %v5981_v52  ;;  %v5951_v7 = vadd.f32 %v9511_v45, %v5919_v13  ;;  %v5882_v31 = vmul.f32 %v8587_v11, %v11912_v20  ;;  %v5803_v54 = vpop.f32.mrb[31].mxu1 }
 0x667   : > { %6012 = vst.msk [vmem:[%s11931_s21 + $0xd0] sm:$0xff] %vm469_vm0, %v5980_v2  ;;  %v5950_v16 = vadd.f32 %v9512_v57, %v5918_v3  ;;  %v5881_v60 = vmul.f32 %v11912_v20, %v5803_v54 }
 0x668   : > { %v5983_v8 = vmax.f32 %v5951_v7, 0.0  ;;  %v5921_v35 = vadd.f32 %v11917_v29, %v5882_v31 }
 0x669   : > { %v5982_v9 = vmax.f32 %v5950_v16, 0.0  ;;  %v5920_v30 = vadd.f32 %v11917_v29, %v5881_v60 }
 0x66a   : > { %6015 = vst.msk [vmem:[%s11931_s21 + $0xe8] sm:$0xff] %vm469_vm0, %v5983_v8  ;;  %v5953_v34 = vadd.f32 %v9513_v23, %v5921_v35 }
 0x66b   : > { %6014 = vst.msk [vmem:[%s11931_s21 + $0xe0] sm:$0xff] %vm469_vm0, %v5982_v9  ;;  %v5952_v20 = vadd.f32 %v9514_v6, %v5920_v30 }
 0x66c   : > { %v5985_v43 = vmax.f32 %v5953_v34, 0.0 }
 0x66d   : > { %v5984_v29 = vmax.f32 %v5952_v20, 0.0 }
 0x66e   : > { %6017 = vst.msk [vmem:[%s11931_s21 + $0xf8] sm:$0xff] %vm469_vm0, %v5985_v43 }
 0x66f   : > { %6016 = vst.msk [vmem:[%s11931_s21 + $0xf0] sm:$0xff] %vm469_vm0, %v5984_v29 }
 0x670   : > { %9614 = shalt.err (!%p9611_p1)
}
 0x671   : > { %s9615_s15 = scalar_lea.hbm %s12084_s9, 4096  ;;  %s9619_s21 = scalar_lea.hbm %s12141_s7, 8192 }
 0x672   : > { %p9616_p13 = scmp.ne.s32.totalorder %s12084_s9, %s9615_s15  ;;  %p9620_p4 = scmp.lt.u32.totalorder %s12084_s9, %s12141_s7 }
 0x673   : > { %p9621_p5 = scmp.lt.u32.totalorder %s9619_s21, %s9615_s15  ;;  %p9623_p11 = scmp.lt.u32.totalorder %s9615_s15, %s12084_s9 }
 0x674   : > { %p9617_p6 = pnand %p9616_p13, %p12529_p0 }
 0x675   : > { %p9622_p8 = por %p9621_p5, %p9620_p4 }
 0x676   : > { %p9618_p10 = pneg %p9617_p6 }
 0x677   : > { %p9624_p2 = por %p9623_p11, %p9622_p8 }
 0x679   : > { %p9625_p3 = pnand %p9624_p2, %p9618_p10 }
 0x67b   : > { %9628 = shalt.err (!%p9625_p3)
}
 0x67c   : > { %s9680_s30 = smov 128   ;;  %s9681_s29 = smov 8  }
 0x67d   : > { %9398 = dma.vmem_to_hbm [thread:$0]  (%p12529_p0), %s12086_s22, 4096, %s12084_s9, %s6019_s28, %s9680_s30, %s9680_s30, %s9681_s29  }
 0x67e PF: > { %s6047_s13 = sand.u32 1, %s9659_s24   ;;  %p12530_p7 = scmp.ne.s32.totalorder %s12300_s8, 0 }
 0x67f   : > { %p12531_p9 = scmp.ge.s32.totalorder %s9671_s27, 2  ;;  %s6048_s11 = scalar_lea.sflag [#allocation4], %s6047_s13 }
 0x681   : > { %p9412_p12 = pnand %p12531_p9, %p12530_p7 }
 0x683   : > { %9654 = dma.done.wait (!%p9412_p12), %s6048_s11, 4096  }
 0x684   : > { %9656 = vsyncadd (!%p9412_p12), %s6048_s11, 4294963200  ;;  %p21_p1 = scmp.ge.s32.totalorder %s9838_s12, 4   ;;  %s12532_s24 = smov %s9663_s25 }
 0x685   : > { %s12533_s25 = smov %s9667_s26  ;;  %s12534_s26 = smov %s9854_s17 }
 0x686   : > { %s12535_s27 = smov %s9838_s12  ;;  %23 = sbr.rel (!%p21_p1) target bundleno = 6 (0x6), region = 117 }
 0x68d   :  { %6053 = vsyncpa [#allocation3], 1 }
 0x68e   :  { %6055 = vsyncpa [#allocation3 + $0x1], 1 }
 0x68f   :  { %6056 = vsyncpa [#allocation6], 1 }
 0x690   :  { %6057 = vsyncpa [#allocation4], 1 }
 0x691   :  { %6059 = vsyncpa [#allocation4 + $0x1], 1 }

</bundles_post_ra>
